<compile_context>
chip_gen: v7x
topology: tpu7x:2x2x1
jax: 0.10.0
libtpu: 0.0.40
codegen_flags: <defaults>
</compile_context>

<pallas_src>
import jax
import jax.numpy as jnp
from jax.experimental import pallas as pl
from jax.experimental.pallas import tpu as pltpu

_VMEM_LIMIT_BYTES = 32 * 1024 * 1024


def _round_up(x, m):
    return (x + m - 1) // m * m


def _pick_tile_h(h):
    """H-tile height: prefer 8 rows (small slabs, deep pipeline); fall back to
    the whole image if no small divisor exists."""
    for th in (8, 16, 32):
        if h % th == 0:
            return th
    return h


# ---------------------------------------------------------------------------
# In-kernel helpers
# ---------------------------------------------------------------------------

def _suffix_max(x, axis):
    """Inclusive suffix-max scan along `axis` of a (th, w, c) tile.

    Log-step scan: <= log2(n) dense maximum + shift ops (no serial per-row /
    per-column ref writes).  Zero fill is the identity for the max because all
    inputs here are post-ReLU (>= 0).
    """
    n = x.shape[axis]
    s = 1
    while s < n:
        if axis == 0:
            shifted = jnp.concatenate(
                [x[s:], jnp.zeros((s,) + x.shape[1:], x.dtype)], axis=0)
        else:  # axis == 1 of a 3-D tile
            shifted = jnp.concatenate(
                [x[:, s:, :],
                 jnp.zeros((x.shape[0], s, x.shape[2]), x.dtype)], axis=1)
        x = jnp.maximum(x, shifted)
        s *= 2
    return x


def _halo_slab(body_ref, up_ref, dn_ref, tb, n_th):
    """(th+2, W+2, C) conv slab: body rows plus the single rows above/below the
    tile, masked to zero at the image border (== the conv's zero padding)."""
    zero_row = jnp.zeros(up_ref.shape[1:], up_ref.dtype)        # (1, W+2, C)
    top = jnp.where(tb > 0, up_ref[0], zero_row)
    bot = jnp.where(tb < n_th - 1, dn_ref[0], zero_row)
    return jnp.concatenate([top, body_ref[0], bot], axis=0)


def _conv3x3_acc(slab, w_ref, th, w):
    """3x3 conv as 9 shifted MXU matmuls over an NHWC halo slab.

    slab: (th+2, w+2, ci) bf16; w_ref: (9, ci, co) bf16 with BN scale folded.
    One dh-slab is sliced per tap row and reused for the three dw taps.
    Returns an (th*w, co) f32 accumulator.
    """
    ci = slab.shape[-1]
    acc = jnp.zeros((th * w, w_ref.shape[2]), jnp.float32)
    for dh in range(3):
        rows = slab[dh:dh + th]                       # (th, w+2, ci), reused x3
        for dw in range(3):
            patch = rows[:, dw:dw + w, :].reshape(th * w, ci)
            acc = acc + jnp.dot(patch, w_ref[dh * 3 + dw],
                                preferred_element_type=jnp.float32)
    return acc


def _store_padded_rows(o_ref, tile):
    """Store a (th, w, c) tile as full-width rows with zero border columns in
    one dense store (no halo zero-then-rewrite, no masked partial stores)."""
    th, _, c = tile.shape
    zcol = jnp.zeros((th, 1, c), tile.dtype)
    o_ref[0] = jnp.concatenate([zcol, tile, zcol], axis=1).astype(o_ref.dtype)


# ---------------------------------------------------------------------------
# Pallas kernels
# ---------------------------------------------------------------------------

def _tl_pool_conv_kernel(x_ref, xup_ref, xdn_ref, w_ref, b_ref, o_ref,
                         carry_ref):
    """Fused p1_conv1 || p2_conv1 (3x3 conv + folded BN + ReLU, 256-wide MXU
    output) -> TopPool + LeftPool -> pool1 + pool2, for one H-tile.

    H-tiles are visited bottom-to-top; carry_ref holds the running TopPool
    (suffix-over-H) max of all rows below the current tile.
    """
    th, wp2, cp = o_ref.shape[1], o_ref.shape[2], o_ref.shape[3]
    w = wp2 - 2
    t = pl.program_id(1)
    n_th = pl.num_programs(1)
    tb = n_th - 1 - t                       # tile index counted from the top

    slab = _halo_slab(x_ref, xup_ref, xdn_ref, tb, n_th)
    acc = _conv3x3_acc(slab, w_ref, th, w)            # (th*w, 2*cp) f32
    acc = jnp.maximum(acc + b_ref[...], 0.0)          # folded BN bias + ReLU
    p1 = acc[:, :cp].reshape(th, w, cp)               # TopPool branch
    p2 = acc[:, cp:].reshape(th, w, cp)               # LeftPool branch

    # Zero is the identity for the carried max because p1/p2 are post-ReLU
    # (>= 0); do NOT change this init if the activation changes.
    @pl.when(t == 0)
    def _():
        carry_ref[...] = jnp.zeros_like(carry_ref)

    # TopPool: intra-tile suffix max (log scan) combined with the carried max
    # over every row below this tile.
    top_pool = jnp.maximum(_suffix_max(p1, axis=0), carry_ref[...][None])
    carry_ref[...] = top_pool[0]
    # LeftPool: suffix max along W, local to the tile.
    left_pool = _suffix_max(p2, axis=1)

    _store_padded_rows(o_ref, top_pool + left_pool)


def _dual_branch_kernel(p_ref, pup_ref, pdn_ref, x_ref, w1_ref, w2_ref, b_ref,
                        o_ref):
    """relu1 = relu(p_bn1(p_conv1(pool_sum)) + bn1(conv1(x))) for one H-tile."""
    th, wp2, dp = o_ref.shape[1], o_ref.shape[2], o_ref.shape[3]
    w = wp2 - 2
    ci = x_ref.shape[3]
    tb = pl.program_id(1)
    n_th = pl.num_programs(1)

    # 1x1-conv branch on x (interior columns of the W-padded block).
    x_in = x_ref[0, :, 1:w + 1, :].reshape(th * w, ci)
    acc = jnp.dot(x_in, w2_ref[...], preferred_element_type=jnp.float32)
    # 3x3-conv branch on pool_sum (halo rows masked at the image border).
    slab = _halo_slab(p_ref, pup_ref, pdn_ref, tb, n_th)
    acc = acc + _conv3x3_acc(slab, w1_ref, th, w)
    acc = jnp.maximum(acc + b_ref[...], 0.0)          # combined BN biases+ReLU

    _store_padded_rows(o_ref, acc.reshape(th, w, dp))


def _conv3x3_bn_relu_kernel(r_ref, rup_ref, rdn_ref, w_ref, b_ref, o_ref):
    """conv2: 3x3 conv + folded BN + ReLU for one H-tile (unpadded bf16 out)."""
    th, w, co = o_ref.shape[1], o_ref.shape[2], o_ref.shape[3]
    tb = pl.program_id(1)
    n_th = pl.num_programs(1)
    slab = _halo_slab(r_ref, rup_ref, rdn_ref, tb, n_th)
    acc = _conv3x3_acc(slab, w_ref, th, w)
    acc = jnp.maximum(acc + b_ref[...], 0.0)
    o_ref[0] = acc.reshape(th, w, co).astype(o_ref.dtype)


# ---------------------------------------------------------------------------
# pallas_call wrappers (grid = (batch, H tiles))
# ---------------------------------------------------------------------------

def _halo_specs(chans, h, w2, th, n_th, bottom_up):
    """Body-tile BlockSpec plus 1-row above/below BlockSpecs for a
    (n, h, w2, chans) activation (3x3-conv H halo without manual DMA)."""
    def tile_idx(t):
        return n_th - 1 - t if bottom_up else t

    body = pl.BlockSpec((1, th, w2, chans),
                        lambda b, t: (b, tile_idx(t), 0, 0))
    above = pl.BlockSpec(
        (1, 1, w2, chans),
        lambda b, t: (b, jnp.maximum(tile_idx(t) * th - 1, 0), 0, 0))
    below = pl.BlockSpec(
        (1, 1, w2, chans),
        lambda b, t: (b, jnp.minimum((tile_idx(t) + 1) * th, h - 1), 0, 0))
    return body, above, below


def _tl_pool_conv(xpw, wgt, bias, th):
    n, h, w2, ci = xpw.shape
    c2 = wgt.shape[2]
    cp = c2 // 2
    n_th = h // th
    xbody, xabove, xbelow = _halo_specs(ci, h, w2, th, n_th, bottom_up=True)
    return pl.pallas_call(
        _tl_pool_conv_kernel,
        out_shape=jax.ShapeDtypeStruct((n, h, w2, cp), jnp.bfloat16),
        grid_spec=pltpu.PrefetchScalarGridSpec(
            num_scalar_prefetch=0,
            grid=(n, n_th),
            in_specs=[
                xbody, xabove, xbelow,
                pl.BlockSpec((9, ci, c2), lambda b, t: (0, 0, 0)),
                pl.BlockSpec((1, c2), lambda b, t: (0, 0)),
            ],
            out_specs=pl.BlockSpec((1, th, w2, cp),
                                   lambda b, t: (b, n_th - 1 - t, 0, 0)),
            scratch_shapes=[pltpu.VMEM((w2 - 2, cp), jnp.float32)],
        ),
        compiler_params=pltpu.CompilerParams(
            dimension_semantics=("parallel", "arbitrary"),
            vmem_limit_bytes=_VMEM_LIMIT_BYTES),
    )(xpw, xpw, xpw, wgt, bias)


def _dual_branch(pool_sum, w_pc, xpw, w_c1, bias, th):
    n, h, w2, cp = pool_sum.shape
    ci = xpw.shape[3]
    dp = w_pc.shape[2]
    n_th = h // th
    pbody, pabove, pbelow = _halo_specs(cp, h, w2, th, n_th, bottom_up=False)
    return pl.pallas_call(
        _dual_branch_kernel,
        out_shape=jax.ShapeDtypeStruct((n, h, w2, dp), jnp.bfloat16),
        grid_spec=pltpu.PrefetchScalarGridSpec(
            num_scalar_prefetch=0,
            grid=(n, n_th),
            in_specs=[
                pbody, pabove, pbelow,
                pl.BlockSpec((1, th, w2, ci), lambda b, t: (b, t, 0, 0)),
                pl.BlockSpec((9, cp, dp), lambda b, t: (0, 0, 0)),
                pl.BlockSpec((ci, dp), lambda b, t: (0, 0)),
                pl.BlockSpec((1, dp), lambda b, t: (0, 0)),
            ],
            out_specs=pl.BlockSpec((1, th, w2, dp), lambda b, t: (b, t, 0, 0)),
        ),
        compiler_params=pltpu.CompilerParams(
            dimension_semantics=("parallel", "parallel"),
            vmem_limit_bytes=_VMEM_LIMIT_BYTES),
    )(pool_sum, pool_sum, pool_sum, xpw, w_pc, w_c1, bias)


def _conv3x3_bn_relu(relu1, wgt, bias, th):
    n, h, w2, cin = relu1.shape
    w = w2 - 2
    co = wgt.shape[2]
    n_th = h // th
    rbody, rabove, rbelow = _halo_specs(cin, h, w2, th, n_th, bottom_up=False)
    return pl.pallas_call(
        _conv3x3_bn_relu_kernel,
        out_shape=jax.ShapeDtypeStruct((n, h, w, co), jnp.bfloat16),
        grid_spec=pltpu.PrefetchScalarGridSpec(
            num_scalar_prefetch=0,
            grid=(n, n_th),
            in_specs=[
                rbody, rabove, rbelow,
                pl.BlockSpec((9, cin, co), lambda b, t: (0, 0, 0)),
                pl.BlockSpec((1, co), lambda b, t: (0, 0)),
            ],
            out_specs=pl.BlockSpec((1, th, w, co), lambda b, t: (b, t, 0, 0)),
        ),
        compiler_params=pltpu.CompilerParams(
            dimension_semantics=("parallel", "parallel"),
            vmem_limit_bytes=_VMEM_LIMIT_BYTES),
    )(relu1, relu1, relu1, wgt, bias)


# ---------------------------------------------------------------------------
# Parameters: random init, BN folding, channel padding, bf16 packing
# ---------------------------------------------------------------------------

def _fold_bn(gamma, beta, mean, var, eps=1e-5):
    scale = gamma * jax.lax.rsqrt(var + eps)
    bias = beta - mean * scale
    return scale, bias


def init_params(key, dim):
    """Raw parameters: conv weights (kh, kw, cin, cout) + folded inference-mode
    BatchNorm (scale, bias) pairs."""
    keys = iter(jax.random.split(key, 15))

    def conv_w(cin, cout, k=3):
        fan_in = k * k * cin
        return jax.random.normal(next(keys), (k, k, cin, cout),
                                 jnp.float32) / jnp.sqrt(float(fan_in))

    def bn(c):
        gamma = 1.0 + 0.1 * jax.random.normal(next(keys), (c,), jnp.float32)
        beta = 0.1 * jax.random.normal(next(keys), (c,), jnp.float32)
        mean = jnp.zeros((c,), jnp.float32)   # BatchNorm2d running-stat defaults
        var = jnp.ones((c,), jnp.float32)
        return _fold_bn(gamma, beta, mean, var)

    return {
        'p1_w': conv_w(dim, 128), 'p1_bn': bn(128),        # p1_conv1
        'p2_w': conv_w(dim, 128), 'p2_bn': bn(128),        # p2_conv1
        'pc_w': conv_w(128, dim), 'pc_bn': bn(dim),        # p_conv1 / p_bn1
        'c1_w': conv_w(dim, dim, k=1), 'c1_bn': bn(dim),   # conv1 / bn1
        'c2_w': conv_w(dim, dim), 'c2_bn': bn(dim),        # conv2
    }


def prepare_params(raw, dim):
    """Fold BN scale into the conv weights, pad channel dims to multiples of
    128 and cast the matmul operands to bf16 (kernel-ready layout)."""
    ci = _round_up(dim, 128)   # padded input-channel count
    dp = _round_up(dim, 128)   # padded `dim`-channel count (outputs)
    cp = 128                   # p1/p2 channel count (fixed by the module)

    def pack3x3(w, scale, cin_p, cout_p):
        cin, cout = w.shape[2], w.shape[3]
        wf = w * scale.reshape(1, 1, 1, cout)
        wf = jnp.pad(wf, ((0, 0), (0, 0), (0, cin_p - cin), (0, cout_p - cout)))
        return wf.reshape(9, cin_p, cout_p).astype(jnp.bfloat16)

    def pad_bias(b, cout_p):
        return jnp.pad(b, (0, cout_p - b.shape[0])).reshape(1, cout_p).astype(jnp.float32)

    s_p1, b_p1 = raw['p1_bn']
    s_p2, b_p2 = raw['p2_bn']
    s_pc, b_pc = raw['pc_bn']
    s_c1, b_c1 = raw['c1_bn']
    s_c2, b_c2 = raw['c2_bn']

    w_c1 = raw['c1_w'][0, 0] * s_c1.reshape(1, dim)                 # (dim, dim)
    w_c1 = jnp.pad(w_c1, ((0, ci - dim), (0, dp - dim))).astype(jnp.bfloat16)

    return {
        # fused p1_conv1 || p2_conv1 (256-wide MXU output)
        'wA': jnp.concatenate([pack3x3(raw['p1_w'], s_p1, ci, cp),
                               pack3x3(raw['p2_w'], s_p2, ci, cp)], axis=-1),
        'bA': jnp.concatenate([pad_bias(b_p1, cp), pad_bias(b_p2, cp)], axis=-1),
        # p_conv1 (3x3, 128->dim) + conv1 (1x1, dim->dim); BN biases combined
        'w_pc': pack3x3(raw['pc_w'], s_pc, cp, dp),
        'w_c1': w_c1,
        'bB': pad_bias(b_pc + b_c1, dp),
        # conv2 (3x3, dim->dim)
        'w_c2': pack3x3(raw['c2_w'], s_c2, dp, dp),
        'b_c2': pad_bias(b_c2, dp),
    }


# ---------------------------------------------------------------------------
# Full forward pass (NCHW in / NCHW out, matching the PyTorch module)
# ---------------------------------------------------------------------------

def pool_forward(kparams, x_nchw):
    x = jnp.transpose(x_nchw, (0, 2, 3, 1))             # NHWC
    n, h, w, dim = x.shape
    ci = _round_up(dim, 128)
    th = _pick_tile_h(h)

    # One W- and channel-padded bf16 copy of x feeds kernels A and B.
    xpw = jnp.pad(x.astype(jnp.bfloat16),
                  ((0, 0), (0, 0), (1, 1), (0, ci - dim)))   # (n, h, w+2, ci)

    # kernel A: p1_conv1 & p2_conv1 + TopPool + LeftPool + add (W-padded out)
    pool_sum = _tl_pool_conv(xpw, kparams['wA'], kparams['bA'], th)
    # kernel B: relu1 = relu(p_bn1(p_conv1(pool_sum)) + bn1(conv1(x)))
    relu1 = _dual_branch(pool_sum, kparams['w_pc'], xpw, kparams['w_c1'],
                         kparams['bB'], th)
    # kernel C: conv2 = relu(bn(conv3x3(relu1)))   (bf16 HBM write)
    out = _conv3x3_bn_relu(relu1, kparams['w_c2'], kparams['b_c2'], th)

    out = out[..., :dim]                                  # drop channel padding
    return jnp.transpose(out, (0, 3, 1, 2)).astype(jnp.float32)   # NCHW f32


if __name__ == "__main__":
    dim = 4
    key = jax.random.PRNGKey(0)
    kx, kp = jax.random.split(key)
    x = jax.random.normal(kx, (2, dim, 16, 16), jnp.float32)

    raw = init_params(kp, dim)
    kparams = prepare_params(raw, dim)

    fwd = jax.jit(pool_forward)
    out = fwd(kparams, x)
    jax.block_until_ready(out)
    assert out.shape == (2, dim, 16, 16)
    assert bool(jnp.all(jnp.isfinite(out)))
    print("KERNEL_OK")
</pallas_src>

<mosaic_0001>
module attributes {stable_mosaic.version = 11 : i64} {
  func.func @_tl_pool_conv_kernel(%arg0: i32, %arg1: i32, %arg2: memref<1x8x18x128xbf16, #tpu.memory_space<vmem>>, %arg3: memref<1x1x18x128xbf16, #tpu.memory_space<vmem>>, %arg4: memref<1x1x18x128xbf16, #tpu.memory_space<vmem>>, %arg5: memref<9x128x256xbf16, #tpu.memory_space<vmem>>, %arg6: memref<1x256xf32, #tpu.memory_space<vmem>>, %arg7: memref<1x8x18x128xbf16, #tpu.memory_space<vmem>>, %arg8: memref<16x128xf32, #tpu.memory_space<vmem>>) attributes {dimension_semantics = [#tpu.dimension_semantics<parallel>, #tpu.dimension_semantics<arbitrary>], iteration_bounds = array<i64: 2, 2>, scalar_prefetch = 0 : i64, scratch_operands = 1 : i64, tpu.core_type = #tpu.core_type<tc>, window_params = [{transform_indices = @transform_0, window_bounds = array<i64: 1, 8, 18, 128>}, {transform_indices = @transform_1, window_bounds = array<i64: 1, 1, 18, 128>}, {transform_indices = @transform_2, window_bounds = array<i64: 1, 1, 18, 128>}, {pipeline_mode = #tpu.pipeline_mode<synchronous>, transform_indices = @transform_3, window_bounds = array<i64: 9, 128, 256>}, {pipeline_mode = #tpu.pipeline_mode<synchronous>, transform_indices = @transform_4, window_bounds = array<i64: 1, 256>}, {transform_indices = @transform_5, window_bounds = array<i64: 1, 8, 18, 128>}]} {
    %c1_i32 = arith.constant 1 : i32
    %0 = arith.subi %c1_i32, %arg1 : i32
    %cst = arith.constant 0.000000e+00 : bf16
    %1 = vector.broadcast %cst : bf16 to vector<1x18x128xbf16>
    %c0_i32 = arith.constant 0 : i32
    %2 = arith.cmpi sgt, %0, %c0_i32 : i32
    %c0 = arith.constant 0 : index
    %c0_0 = arith.constant 0 : index
    %c0_1 = arith.constant 0 : index
    %c0_2 = arith.constant 0 : index
    %3 = vector.load %arg3[%c0, %c0_0, %c0_1, %c0_2] : memref<1x1x18x128xbf16, #tpu.memory_space<vmem>>, vector<1x1x18x128xbf16>
    %4 = vector.shape_cast %3 : vector<1x1x18x128xbf16> to vector<1x18x128xbf16>
    %5 = arith.select %2, %4, %1 : vector<1x18x128xbf16>
    %c1_i32_3 = arith.constant 1 : i32
    %6 = arith.cmpi slt, %0, %c1_i32_3 : i32
    %c0_4 = arith.constant 0 : index
    %c0_5 = arith.constant 0 : index
    %c0_6 = arith.constant 0 : index
    %c0_7 = arith.constant 0 : index
    %7 = vector.load %arg4[%c0_4, %c0_5, %c0_6, %c0_7] : memref<1x1x18x128xbf16, #tpu.memory_space<vmem>>, vector<1x1x18x128xbf16>
    %8 = vector.shape_cast %7 : vector<1x1x18x128xbf16> to vector<1x18x128xbf16>
    %9 = arith.select %6, %8, %1 : vector<1x18x128xbf16>
    %c0_8 = arith.constant 0 : index
    %c0_9 = arith.constant 0 : index
    %c0_10 = arith.constant 0 : index
    %c0_11 = arith.constant 0 : index
    %10 = vector.load %arg2[%c0_8, %c0_9, %c0_10, %c0_11] : memref<1x8x18x128xbf16, #tpu.memory_space<vmem>>, vector<1x8x18x128xbf16>
    %11 = vector.shape_cast %10 : vector<1x8x18x128xbf16> to vector<8x18x128xbf16>
    %12 = tpu.concatenate %5, %11, %9 in 0 : vector<1x18x128xbf16>, vector<8x18x128xbf16>, vector<1x18x128xbf16> -> vector<10x18x128xbf16>
    %cst_12 = arith.constant 0.000000e+00 : f32
    %13 = vector.broadcast %cst_12 : f32 to vector<128x256xf32>
    %14 = vector.extract_strided_slice %12 {offsets = [0, 0, 0], sizes = [8, 18, 128], strides = [1, 1, 1]} : vector<10x18x128xbf16> to vector<8x18x128xbf16>
    %15 = vector.extract_strided_slice %14 {offsets = [0, 0, 0], sizes = [8, 16, 128], strides = [1, 1, 1]} : vector<8x18x128xbf16> to vector<8x16x128xbf16>
    %16 = vector.shape_cast %15 : vector<8x16x128xbf16> to vector<128x128xbf16>
    %c0_13 = arith.constant 0 : index
    %c0_14 = arith.constant 0 : index
    %c0_15 = arith.constant 0 : index
    %17 = vector.load %arg5[%c0_13, %c0_14, %c0_15] : memref<9x128x256xbf16, #tpu.memory_space<vmem>>, vector<1x128x256xbf16>
    %18 = vector.shape_cast %17 : vector<1x128x256xbf16> to vector<128x256xbf16>
    %cst_16 = arith.constant dense<0.000000e+00> : vector<128x256xf32>
    %19 = tpu.matmul %16, %18, %cst_16 {dimension_numbers = #tpu.dot_dimension_numbers<[1], [0], [0], [1], [0, 0, 1, 1], [], []>} : vector<128x128xbf16>, vector<128x256xbf16>, vector<128x256xf32> -> vector<128x256xf32>
    %20 = arith.addf %13, %19 : vector<128x256xf32>
    %21 = vector.extract_strided_slice %14 {offsets = [0, 1, 0], sizes = [8, 16, 128], strides = [1, 1, 1]} : vector<8x18x128xbf16> to vector<8x16x128xbf16>
    %22 = vector.shape_cast %21 : vector<8x16x128xbf16> to vector<128x128xbf16>
    %c1 = arith.constant 1 : index
    %c0_17 = arith.constant 0 : index
    %c0_18 = arith.constant 0 : index
    %23 = vector.load %arg5[%c1, %c0_17, %c0_18] : memref<9x128x256xbf16, #tpu.memory_space<vmem>>, vector<1x128x256xbf16>
    %24 = vector.shape_cast %23 : vector<1x128x256xbf16> to vector<128x256xbf16>
    %cst_19 = arith.constant dense<0.000000e+00> : vector<128x256xf32>
    %25 = tpu.matmul %22, %24, %cst_19 {dimension_numbers = #tpu.dot_dimension_numbers<[1], [0], [0], [1], [0, 0, 1, 1], [], []>} : vector<128x128xbf16>, vector<128x256xbf16>, vector<128x256xf32> -> vector<128x256xf32>
    %26 = arith.addf %20, %25 : vector<128x256xf32>
    %27 = vector.extract_strided_slice %14 {offsets = [0, 2, 0], sizes = [8, 16, 128], strides = [1, 1, 1]} : vector<8x18x128xbf16> to vector<8x16x128xbf16>
    %28 = vector.shape_cast %27 : vector<8x16x128xbf16> to vector<128x128xbf16>
    %c2 = arith.constant 2 : index
    %c0_20 = arith.constant 0 : index
    %c0_21 = arith.constant 0 : index
    %29 = vector.load %arg5[%c2, %c0_20, %c0_21] : memref<9x128x256xbf16, #tpu.memory_space<vmem>>, vector<1x128x256xbf16>
    %30 = vector.shape_cast %29 : vector<1x128x256xbf16> to vector<128x256xbf16>
    %cst_22 = arith.constant dense<0.000000e+00> : vector<128x256xf32>
    %31 = tpu.matmul %28, %30, %cst_22 {dimension_numbers = #tpu.dot_dimension_numbers<[1], [0], [0], [1], [0, 0, 1, 1], [], []>} : vector<128x128xbf16>, vector<128x256xbf16>, vector<128x256xf32> -> vector<128x256xf32>
    %32 = arith.addf %26, %31 : vector<128x256xf32>
    %33 = vector.extract_strided_slice %12 {offsets = [1, 0, 0], sizes = [8, 18, 128], strides = [1, 1, 1]} : vector<10x18x128xbf16> to vector<8x18x128xbf16>
    %34 = vector.extract_strided_slice %33 {offsets = [0, 0, 0], sizes = [8, 16, 128], strides = [1, 1, 1]} : vector<8x18x128xbf16> to vector<8x16x128xbf16>
    %35 = vector.shape_cast %34 : vector<8x16x128xbf16> to vector<128x128xbf16>
    %c3 = arith.constant 3 : index
    %c0_23 = arith.constant 0 : index
    %c0_24 = arith.constant 0 : index
    %36 = vector.load %arg5[%c3, %c0_23, %c0_24] : memref<9x128x256xbf16, #tpu.memory_space<vmem>>, vector<1x128x256xbf16>
    %37 = vector.shape_cast %36 : vector<1x128x256xbf16> to vector<128x256xbf16>
    %cst_25 = arith.constant dense<0.000000e+00> : vector<128x256xf32>
    %38 = tpu.matmul %35, %37, %cst_25 {dimension_numbers = #tpu.dot_dimension_numbers<[1], [0], [0], [1], [0, 0, 1, 1], [], []>} : vector<128x128xbf16>, vector<128x256xbf16>, vector<128x256xf32> -> vector<128x256xf32>
    %39 = arith.addf %32, %38 : vector<128x256xf32>
    %40 = vector.extract_strided_slice %33 {offsets = [0, 1, 0], sizes = [8, 16, 128], strides = [1, 1, 1]} : vector<8x18x128xbf16> to vector<8x16x128xbf16>
    %41 = vector.shape_cast %40 : vector<8x16x128xbf16> to vector<128x128xbf16>
    %c4 = arith.constant 4 : index
    %c0_26 = arith.constant 0 : index
    %c0_27 = arith.constant 0 : index
    %42 = vector.load %arg5[%c4, %c0_26, %c0_27] : memref<9x128x256xbf16, #tpu.memory_space<vmem>>, vector<1x128x256xbf16>
    %43 = vector.shape_cast %42 : vector<1x128x256xbf16> to vector<128x256xbf16>
    %cst_28 = arith.constant dense<0.000000e+00> : vector<128x256xf32>
    %44 = tpu.matmul %41, %43, %cst_28 {dimension_numbers = #tpu.dot_dimension_numbers<[1], [0], [0], [1], [0, 0, 1, 1], [], []>} : vector<128x128xbf16>, vector<128x256xbf16>, vector<128x256xf32> -> vector<128x256xf32>
    %45 = arith.addf %39, %44 : vector<128x256xf32>
    %46 = vector.extract_strided_slice %33 {offsets = [0, 2, 0], sizes = [8, 16, 128], strides = [1, 1, 1]} : vector<8x18x128xbf16> to vector<8x16x128xbf16>
    %47 = vector.shape_cast %46 : vector<8x16x128xbf16> to vector<128x128xbf16>
    %c5 = arith.constant 5 : index
    %c0_29 = arith.constant 0 : index
    %c0_30 = arith.constant 0 : index
    %48 = vector.load %arg5[%c5, %c0_29, %c0_30] : memref<9x128x256xbf16, #tpu.memory_space<vmem>>, vector<1x128x256xbf16>
    %49 = vector.shape_cast %48 : vector<1x128x256xbf16> to vector<128x256xbf16>
    %cst_31 = arith.constant dense<0.000000e+00> : vector<128x256xf32>
    %50 = tpu.matmul %47, %49, %cst_31 {dimension_numbers = #tpu.dot_dimension_numbers<[1], [0], [0], [1], [0, 0, 1, 1], [], []>} : vector<128x128xbf16>, vector<128x256xbf16>, vector<128x256xf32> -> vector<128x256xf32>
    %51 = arith.addf %45, %50 : vector<128x256xf32>
    %52 = vector.extract_strided_slice %12 {offsets = [2, 0, 0], sizes = [8, 18, 128], strides = [1, 1, 1]} : vector<10x18x128xbf16> to vector<8x18x128xbf16>
    %53 = vector.extract_strided_slice %52 {offsets = [0, 0, 0], sizes = [8, 16, 128], strides = [1, 1, 1]} : vector<8x18x128xbf16> to vector<8x16x128xbf16>
    %54 = vector.shape_cast %53 : vector<8x16x128xbf16> to vector<128x128xbf16>
    %c6 = arith.constant 6 : index
    %c0_32 = arith.constant 0 : index
    %c0_33 = arith.constant 0 : index
    %55 = vector.load %arg5[%c6, %c0_32, %c0_33] : memref<9x128x256xbf16, #tpu.memory_space<vmem>>, vector<1x128x256xbf16>
    %56 = vector.shape_cast %55 : vector<1x128x256xbf16> to vector<128x256xbf16>
    %cst_34 = arith.constant dense<0.000000e+00> : vector<128x256xf32>
    %57 = tpu.matmul %54, %56, %cst_34 {dimension_numbers = #tpu.dot_dimension_numbers<[1], [0], [0], [1], [0, 0, 1, 1], [], []>} : vector<128x128xbf16>, vector<128x256xbf16>, vector<128x256xf32> -> vector<128x256xf32>
    %58 = arith.addf %51, %57 : vector<128x256xf32>
    %59 = vector.extract_strided_slice %52 {offsets = [0, 1, 0], sizes = [8, 16, 128], strides = [1, 1, 1]} : vector<8x18x128xbf16> to vector<8x16x128xbf16>
    %60 = vector.shape_cast %59 : vector<8x16x128xbf16> to vector<128x128xbf16>
    %c7 = arith.constant 7 : index
    %c0_35 = arith.constant 0 : index
    %c0_36 = arith.constant 0 : index
    %61 = vector.load %arg5[%c7, %c0_35, %c0_36] : memref<9x128x256xbf16, #tpu.memory_space<vmem>>, vector<1x128x256xbf16>
    %62 = vector.shape_cast %61 : vector<1x128x256xbf16> to vector<128x256xbf16>
    %cst_37 = arith.constant dense<0.000000e+00> : vector<128x256xf32>
    %63 = tpu.matmul %60, %62, %cst_37 {dimension_numbers = #tpu.dot_dimension_numbers<[1], [0], [0], [1], [0, 0, 1, 1], [], []>} : vector<128x128xbf16>, vector<128x256xbf16>, vector<128x256xf32> -> vector<128x256xf32>
    %64 = arith.addf %58, %63 : vector<128x256xf32>
    %65 = vector.extract_strided_slice %52 {offsets = [0, 2, 0], sizes = [8, 16, 128], strides = [1, 1, 1]} : vector<8x18x128xbf16> to vector<8x16x128xbf16>
    %66 = vector.shape_cast %65 : vector<8x16x128xbf16> to vector<128x128xbf16>
    %c8 = arith.constant 8 : index
    %c0_38 = arith.constant 0 : index
    %c0_39 = arith.constant 0 : index
    %67 = vector.load %arg5[%c8, %c0_38, %c0_39] : memref<9x128x256xbf16, #tpu.memory_space<vmem>>, vector<1x128x256xbf16>
    %68 = vector.shape_cast %67 : vector<1x128x256xbf16> to vector<128x256xbf16>
    %cst_40 = arith.constant dense<0.000000e+00> : vector<128x256xf32>
    %69 = tpu.matmul %66, %68, %cst_40 {dimension_numbers = #tpu.dot_dimension_numbers<[1], [0], [0], [1], [0, 0, 1, 1], [], []>} : vector<128x128xbf16>, vector<128x256xbf16>, vector<128x256xf32> -> vector<128x256xf32>
    %70 = arith.addf %64, %69 : vector<128x256xf32>
    %c0_41 = arith.constant 0 : index
    %c0_42 = arith.constant 0 : index
    %71 = vector.load %arg6[%c0_41, %c0_42] : memref<1x256xf32, #tpu.memory_space<vmem>>, vector<1x256xf32>
    %72 = vector.broadcast %71 : vector<1x256xf32> to vector<128x256xf32>
    %73 = arith.addf %70, %72 : vector<128x256xf32>
    %cst_43 = arith.constant 0.000000e+00 : f32
    %74 = vector.broadcast %cst_43 : f32 to vector<128x256xf32>
    %75 = arith.maximumf %73, %74 : vector<128x256xf32>
    %76 = vector.extract_strided_slice %75 {offsets = [0, 0], sizes = [128, 128], strides = [1, 1]} : vector<128x256xf32> to vector<128x128xf32>
    %77 = vector.shape_cast %76 : vector<128x128xf32> to vector<8x16x128xf32>
    %78 = vector.extract_strided_slice %75 {offsets = [0, 128], sizes = [128, 128], strides = [1, 1]} : vector<128x256xf32> to vector<128x128xf32>
    %79 = vector.shape_cast %78 : vector<128x128xf32> to vector<8x16x128xf32>
    %c0_i32_44 = arith.constant 0 : i32
    %80 = arith.cmpi eq, %arg1, %c0_i32_44 : i32
    %81 = arith.extui %80 : i1 to i32
    %c0_i32_45 = arith.constant 0 : i32
    %82 = arith.cmpi ne, %81, %c0_i32_45 : i32
    scf.if %82 {
      %cst_62 = arith.constant 0.000000e+00 : f32
      %125 = vector.broadcast %cst_62 : f32 to vector<16x128xf32>
      %c0_63 = arith.constant 0 : index
      %c0_64 = arith.constant 0 : index
      %126 = vector.load %arg8[%c0_63, %c0_64] : memref<16x128xf32, #tpu.memory_space<vmem>>, vector<16x128xf32>
      tpu.vector_store %arg8[%c0_63, %c0_64], %125 {strides = array<i32>} : memref<16x128xf32, #tpu.memory_space<vmem>>, vector<16x128xf32>,
    } else {
    }
    %83 = vector.extract_strided_slice %77 {offsets = [1, 0, 0], sizes = [7, 16, 128], strides = [1, 1, 1]} : vector<8x16x128xf32> to vector<7x16x128xf32>
    %cst_46 = arith.constant 0.000000e+00 : f32
    %84 = vector.broadcast %cst_46 : f32 to vector<1x16x128xf32>
    %85 = tpu.concatenate %83, %84 in 0 : vector<7x16x128xf32>, vector<1x16x128xf32> -> vector<8x16x128xf32>
    %86 = arith.maximumf %77, %85 : vector<8x16x128xf32>
    %87 = vector.extract_strided_slice %86 {offsets = [2, 0, 0], sizes = [6, 16, 128], strides = [1, 1, 1]} : vector<8x16x128xf32> to vector<6x16x128xf32>
    %cst_47 = arith.constant 0.000000e+00 : f32
    %88 = vector.broadcast %cst_47 : f32 to vector<2x16x128xf32>
    %89 = tpu.concatenate %87, %88 in 0 : vector<6x16x128xf32>, vector<2x16x128xf32> -> vector<8x16x128xf32>
    %90 = arith.maximumf %86, %89 : vector<8x16x128xf32>
    %91 = vector.extract_strided_slice %90 {offsets = [4, 0, 0], sizes = [4, 16, 128], strides = [1, 1, 1]} : vector<8x16x128xf32> to vector<4x16x128xf32>
    %cst_48 = arith.constant 0.000000e+00 : f32
    %92 = vector.broadcast %cst_48 : f32 to vector<4x16x128xf32>
    %93 = tpu.concatenate %91, %92 in 0 : vector<4x16x128xf32>, vector<4x16x128xf32> -> vector<8x16x128xf32>
    %94 = arith.maximumf %90, %93 : vector<8x16x128xf32>
    %c0_49 = arith.constant 0 : index
    %c0_50 = arith.constant 0 : index
    %95 = vector.load %arg8[%c0_49, %c0_50] : memref<16x128xf32, #tpu.memory_space<vmem>>, vector<16x128xf32>
    %96 = vector.shape_cast %95 : vector<16x128xf32> to vector<1x16x128xf32>
    %97 = vector.broadcast %96 : vector<1x16x128xf32> to vector<8x16x128xf32>
    %98 = arith.maximumf %94, %97 : vector<8x16x128xf32>
    %99 = vector.extract_strided_slice %98 {offsets = [0, 0, 0], sizes = [1, 16, 128], strides = [1, 1, 1]} : vector<8x16x128xf32> to vector<1x16x128xf32>
    %100 = vector.shape_cast %99 : vector<1x16x128xf32> to vector<16x128xf32>
    %c0_51 = arith.constant 0 : index
    %c0_52 = arith.constant 0 : index
    %101 = vector.load %arg8[%c0_51, %c0_52] : memref<16x128xf32, #tpu.memory_space<vmem>>, vector<16x128xf32>
    tpu.vector_store %arg8[%c0_51, %c0_52], %100 {strides = array<i32>} : memref<16x128xf32, #tpu.memory_space<vmem>>, vector<16x128xf32>,
    %102 = vector.extract_strided_slice %79 {offsets = [0, 1, 0], sizes = [8, 15, 128], strides = [1, 1, 1]} : vector<8x16x128xf32> to vector<8x15x128xf32>
    %cst_53 = arith.constant 0.000000e+00 : f32
    %103 = vector.broadcast %cst_53 : f32 to vector<8x1x128xf32>
    %104 = tpu.concatenate %102, %103 in 1 : vector<8x15x128xf32>, vector<8x1x128xf32> -> vector<8x16x128xf32>
    %105 = arith.maximumf %79, %104 : vector<8x16x128xf32>
    %106 = vector.extract_strided_slice %105 {offsets = [0, 2, 0], sizes = [8, 14, 128], strides = [1, 1, 1]} : vector<8x16x128xf32> to vector<8x14x128xf32>
    %cst_54 = arith.constant 0.000000e+00 : f32
    %107 = vector.broadcast %cst_54 : f32 to vector<8x2x128xf32>
    %108 = tpu.concatenate %106, %107 in 1 : vector<8x14x128xf32>, vector<8x2x128xf32> -> vector<8x16x128xf32>
    %109 = arith.maximumf %105, %108 : vector<8x16x128xf32>
    %110 = vector.extract_strided_slice %109 {offsets = [0, 4, 0], sizes = [8, 12, 128], strides = [1, 1, 1]} : vector<8x16x128xf32> to vector<8x12x128xf32>
    %cst_55 = arith.constant 0.000000e+00 : f32
    %111 = vector.broadcast %cst_55 : f32 to vector<8x4x128xf32>
    %112 = tpu.concatenate %110, %111 in 1 : vector<8x12x128xf32>, vector<8x4x128xf32> -> vector<8x16x128xf32>
    %113 = arith.maximumf %109, %112 : vector<8x16x128xf32>
    %114 = vector.extract_strided_slice %113 {offsets = [0, 8, 0], sizes = [8, 8, 128], strides = [1, 1, 1]} : vector<8x16x128xf32> to vector<8x8x128xf32>
    %cst_56 = arith.constant 0.000000e+00 : f32
    %115 = vector.broadcast %cst_56 : f32 to vector<8x8x128xf32>
    %116 = tpu.concatenate %114, %115 in 1 : vector<8x8x128xf32>, vector<8x8x128xf32> -> vector<8x16x128xf32>
    %117 = arith.maximumf %113, %116 : vector<8x16x128xf32>
    %118 = arith.addf %98, %117 : vector<8x16x128xf32>
    %cst_57 = arith.constant 0.000000e+00 : f32
    %119 = vector.broadcast %cst_57 : f32 to vector<8x1x128xf32>
    %120 = tpu.concatenate %119, %118, %119 in 1 : vector<8x1x128xf32>, vector<8x16x128xf32>, vector<8x1x128xf32> -> vector<8x18x128xf32>
    %121 = arith.truncf %120 : vector<8x18x128xf32> to vector<8x18x128xbf16>
    %c0_58 = arith.constant 0 : index
    %c0_59 = arith.constant 0 : index
    %c0_60 = arith.constant 0 : index
    %c0_61 = arith.constant 0 : index
    %122 = vector.load %arg7[%c0_58, %c0_59, %c0_60, %c0_61] : memref<1x8x18x128xbf16, #tpu.memory_space<vmem>>, vector<1x8x18x128xbf16>
    %123 = vector.shape_cast %122 : vector<1x8x18x128xbf16> to vector<8x18x128xbf16>
    %124 = vector.shape_cast %121 : vector<8x18x128xbf16> to vector<1x8x18x128xbf16>
    tpu.vector_store %arg7[%c0_58, %c0_59, %c0_60, %c0_61], %124 {strides = array<i32>} : memref<1x8x18x128xbf16, #tpu.memory_space<vmem>>, vector<1x8x18x128xbf16>,
    return
  }
  func.func @transform_0(%arg0: i32, %arg1: i32) -> (i32, i32, i32, i32) {
    %c1_i32 = arith.constant 1 : i32
    %0 = arith.subi %c1_i32, %arg1 : i32
    %c0_i32 = arith.constant 0 : i32
    %c0_i32_0 = arith.constant 0 : i32
    %c0_i32_1 = arith.constant 0 : i32
    return %arg0, %0, %c0_i32, %c0_i32_0 : i32, i32, i32, i32
  }
  func.func @transform_1(%arg0: i32, %arg1: i32) -> (i32, i32, i32, i32) {
    %c1_i32 = arith.constant 1 : i32
    %0 = arith.subi %c1_i32, %arg1 : i32
    %c8_i32 = arith.constant 8 : i32
    %1 = arith.muli %0, %c8_i32 : i32
    %c1_i32_0 = arith.constant 1 : i32
    %2 = arith.subi %1, %c1_i32_0 : i32
    %c0_i32 = arith.constant 0 : i32
    %3 = arith.maxsi %2, %c0_i32 : i32
    %c0_i32_1 = arith.constant 0 : i32
    %c0_i32_2 = arith.constant 0 : i32
    %c0_i32_3 = arith.constant 0 : i32
    return %arg0, %3, %c0_i32_1, %c0_i32_2 : i32, i32, i32, i32
  }
  func.func @transform_2(%arg0: i32, %arg1: i32) -> (i32, i32, i32, i32) {
    %c1_i32 = arith.constant 1 : i32
    %0 = arith.subi %c1_i32, %arg1 : i32
    %c1_i32_0 = arith.constant 1 : i32
    %1 = arith.addi %0, %c1_i32_0 : i32
    %c8_i32 = arith.constant 8 : i32
    %2 = arith.muli %1, %c8_i32 : i32
    %c15_i32 = arith.constant 15 : i32
    %3 = arith.minsi %2, %c15_i32 : i32
    %c0_i32 = arith.constant 0 : i32
    %c0_i32_1 = arith.constant 0 : i32
    %c0_i32_2 = arith.constant 0 : i32
    return %arg0, %3, %c0_i32, %c0_i32_1 : i32, i32, i32, i32
  }
  func.func @transform_3(%arg0: i32, %arg1: i32) -> (i32, i32, i32) {
    %c0_i32 = arith.constant 0 : i32
    %c0_i32_0 = arith.constant 0 : i32
    %c0_i32_1 = arith.constant 0 : i32
    %c0_i32_2 = arith.constant 0 : i32
    return %c0_i32, %c0_i32_0, %c0_i32_1 : i32, i32, i32
  }
  func.func @transform_4(%arg0: i32, %arg1: i32) -> (i32, i32) {
    %c0_i32 = arith.constant 0 : i32
    %c0_i32_0 = arith.constant 0 : i32
    %c0_i32_1 = arith.constant 0 : i32
    return %c0_i32, %c0_i32_0 : i32, i32
  }
  func.func @transform_5(%arg0: i32, %arg1: i32) -> (i32, i32, i32, i32) {
    %c1_i32 = arith.constant 1 : i32
    %0 = arith.subi %c1_i32, %arg1 : i32
    %c0_i32 = arith.constant 0 : i32
    %c0_i32_0 = arith.constant 0 : i32
    %c0_i32_1 = arith.constant 0 : i32
    return %arg0, %0, %c0_i32, %c0_i32_0 : i32, i32, i32, i32
  }
}

module attributes {stable_mosaic.version = 11 : i64} {
  func.func @_conv3x3_bn_relu_kernel(%arg0: i32, %arg1: i32, %arg2: memref<1x8x18x128xbf16, #tpu.memory_space<vmem>>, %arg3: memref<1x1x18x128xbf16, #tpu.memory_space<vmem>>, %arg4: memref<1x1x18x128xbf16, #tpu.memory_space<vmem>>, %arg5: memref<9x128x128xbf16, #tpu.memory_space<vmem>>, %arg6: memref<1x128xf32, #tpu.memory_space<vmem>>, %arg7: memref<1x8x16x128xbf16, #tpu.memory_space<vmem>>) attributes {dimension_semantics = [#tpu.dimension_semantics<parallel>, #tpu.dimension_semantics<parallel>], iteration_bounds = array<i64: 2, 2>, scalar_prefetch = 0 : i64, scratch_operands = 0 : i64, tpu.core_type = #tpu.core_type<tc>, window_params = [{transform_indices = @transform_0, window_bounds = array<i64: 1, 8, 18, 128>}, {transform_indices = @transform_1, window_bounds = array<i64: 1, 1, 18, 128>}, {transform_indices = @transform_2, window_bounds = array<i64: 1, 1, 18, 128>}, {pipeline_mode = #tpu.pipeline_mode<synchronous>, transform_indices = @transform_3, window_bounds = array<i64: 9, 128, 128>}, {pipeline_mode = #tpu.pipeline_mode<synchronous>, transform_indices = @transform_4, window_bounds = array<i64: 1, 128>}, {transform_indices = @transform_5, window_bounds = array<i64: 1, 8, 16, 128>}]} {
    %cst = arith.constant 0.000000e+00 : bf16
    %0 = vector.broadcast %cst : bf16 to vector<1x18x128xbf16>
    %c0_i32 = arith.constant 0 : i32
    %1 = arith.cmpi sgt, %arg1, %c0_i32 : i32
    %c0 = arith.constant 0 : index
    %c0_0 = arith.constant 0 : index
    %c0_1 = arith.constant 0 : index
    %c0_2 = arith.constant 0 : index
    %2 = vector.load %arg3[%c0, %c0_0, %c0_1, %c0_2] : memref<1x1x18x128xbf16, #tpu.memory_space<vmem>>, vector<1x1x18x128xbf16>
    %3 = vector.shape_cast %2 : vector<1x1x18x128xbf16> to vector<1x18x128xbf16>
    %4 = arith.select %1, %3, %0 : vector<1x18x128xbf16>
    %c1_i32 = arith.constant 1 : i32
    %5 = arith.cmpi slt, %arg1, %c1_i32 : i32
    %c0_3 = arith.constant 0 : index
    %c0_4 = arith.constant 0 : index
    %c0_5 = arith.constant 0 : index
    %c0_6 = arith.constant 0 : index
    %6 = vector.load %arg4[%c0_3, %c0_4, %c0_5, %c0_6] : memref<1x1x18x128xbf16, #tpu.memory_space<vmem>>, vector<1x1x18x128xbf16>
    %7 = vector.shape_cast %6 : vector<1x1x18x128xbf16> to vector<1x18x128xbf16>
    %8 = arith.select %5, %7, %0 : vector<1x18x128xbf16>
    %c0_7 = arith.constant 0 : index
    %c0_8 = arith.constant 0 : index
    %c0_9 = arith.constant 0 : index
    %c0_10 = arith.constant 0 : index
    %9 = vector.load %arg2[%c0_7, %c0_8, %c0_9, %c0_10] : memref<1x8x18x128xbf16, #tpu.memory_space<vmem>>, vector<1x8x18x128xbf16>
    %10 = vector.shape_cast %9 : vector<1x8x18x128xbf16> to vector<8x18x128xbf16>
    %11 = tpu.concatenate %4, %10, %8 in 0 : vector<1x18x128xbf16>, vector<8x18x128xbf16>, vector<1x18x128xbf16> -> vector<10x18x128xbf16>
    %cst_11 = arith.constant 0.000000e+00 : f32
    %12 = vector.broadcast %cst_11 : f32 to vector<128x128xf32>
    %13 = vector.extract_strided_slice %11 {offsets = [0, 0, 0], sizes = [8, 18, 128], strides = [1, 1, 1]} : vector<10x18x128xbf16> to vector<8x18x128xbf16>
    %14 = vector.extract_strided_slice %13 {offsets = [0, 0, 0], sizes = [8, 16, 128], strides = [1, 1, 1]} : vector<8x18x128xbf16> to vector<8x16x128xbf16>
    %15 = vector.shape_cast %14 : vector<8x16x128xbf16> to vector<128x128xbf16>
    %c0_12 = arith.constant 0 : index
    %c0_13 = arith.constant 0 : index
    %c0_14 = arith.constant 0 : index
    %16 = vector.load %arg5[%c0_12, %c0_13, %c0_14] : memref<9x128x128xbf16, #tpu.memory_space<vmem>>, vector<1x128x128xbf16>
    %17 = vector.shape_cast %16 : vector<1x128x128xbf16> to vector<128x128xbf16>
    %cst_15 = arith.constant dense<0.000000e+00> : vector<128x128xf32>
    %18 = tpu.matmul %15, %17, %cst_15 {dimension_numbers = #tpu.dot_dimension_numbers<[1], [0], [0], [1], [0, 0, 1, 1], [], []>} : vector<128x128xbf16>, vector<128x128xbf16>, vector<128x128xf32> -> vector<128x128xf32>
    %19 = arith.addf %12, %18 : vector<128x128xf32>
    %20 = vector.extract_strided_slice %13 {offsets = [0, 1, 0], sizes = [8, 16, 128], strides = [1, 1, 1]} : vector<8x18x128xbf16> to vector<8x16x128xbf16>
    %21 = vector.shape_cast %20 : vector<8x16x128xbf16> to vector<128x128xbf16>
    %c1 = arith.constant 1 : index
    %c0_16 = arith.constant 0 : index
    %c0_17 = arith.constant 0 : index
    %22 = vector.load %arg5[%c1, %c0_16, %c0_17] : memref<9x128x128xbf16, #tpu.memory_space<vmem>>, vector<1x128x128xbf16>
    %23 = vector.shape_cast %22 : vector<1x128x128xbf16> to vector<128x128xbf16>
    %cst_18 = arith.constant dense<0.000000e+00> : vector<128x128xf32>
    %24 = tpu.matmul %21, %23, %cst_18 {dimension_numbers = #tpu.dot_dimension_numbers<[1], [0], [0], [1], [0, 0, 1, 1], [], []>} : vector<128x128xbf16>, vector<128x128xbf16>, vector<128x128xf32> -> vector<128x128xf32>
    %25 = arith.addf %19, %24 : vector<128x128xf32>
    %26 = vector.extract_strided_slice %13 {offsets = [0, 2, 0], sizes = [8, 16, 128], strides = [1, 1, 1]} : vector<8x18x128xbf16> to vector<8x16x128xbf16>
    %27 = vector.shape_cast %26 : vector<8x16x128xbf16> to vector<128x128xbf16>
    %c2 = arith.constant 2 : index
    %c0_19 = arith.constant 0 : index
    %c0_20 = arith.constant 0 : index
    %28 = vector.load %arg5[%c2, %c0_19, %c0_20] : memref<9x128x128xbf16, #tpu.memory_space<vmem>>, vector<1x128x128xbf16>
    %29 = vector.shape_cast %28 : vector<1x128x128xbf16> to vector<128x128xbf16>
    %cst_21 = arith.constant dense<0.000000e+00> : vector<128x128xf32>
    %30 = tpu.matmul %27, %29, %cst_21 {dimension_numbers = #tpu.dot_dimension_numbers<[1], [0], [0], [1], [0, 0, 1, 1], [], []>} : vector<128x128xbf16>, vector<128x128xbf16>, vector<128x128xf32> -> vector<128x128xf32>
    %31 = arith.addf %25, %30 : vector<128x128xf32>
    %32 = vector.extract_strided_slice %11 {offsets = [1, 0, 0], sizes = [8, 18, 128], strides = [1, 1, 1]} : vector<10x18x128xbf16> to vector<8x18x128xbf16>
    %33 = vector.extract_strided_slice %32 {offsets = [0, 0, 0], sizes = [8, 16, 128], strides = [1, 1, 1]} : vector<8x18x128xbf16> to vector<8x16x128xbf16>
    %34 = vector.shape_cast %33 : vector<8x16x128xbf16> to vector<128x128xbf16>
    %c3 = arith.constant 3 : index
    %c0_22 = arith.constant 0 : index
    %c0_23 = arith.constant 0 : index
    %35 = vector.load %arg5[%c3, %c0_22, %c0_23] : memref<9x128x128xbf16, #tpu.memory_space<vmem>>, vector<1x128x128xbf16>
    %36 = vector.shape_cast %35 : vector<1x128x128xbf16> to vector<128x128xbf16>
    %cst_24 = arith.constant dense<0.000000e+00> : vector<128x128xf32>
    %37 = tpu.matmul %34, %36, %cst_24 {dimension_numbers = #tpu.dot_dimension_numbers<[1], [0], [0], [1], [0, 0, 1, 1], [], []>} : vector<128x128xbf16>, vector<128x128xbf16>, vector<128x128xf32> -> vector<128x128xf32>
    %38 = arith.addf %31, %37 : vector<128x128xf32>
    %39 = vector.extract_strided_slice %32 {offsets = [0, 1, 0], sizes = [8, 16, 128], strides = [1, 1, 1]} : vector<8x18x128xbf16> to vector<8x16x128xbf16>
    %40 = vector.shape_cast %39 : vector<8x16x128xbf16> to vector<128x128xbf16>
    %c4 = arith.constant 4 : index
    %c0_25 = arith.constant 0 : index
    %c0_26 = arith.constant 0 : index
    %41 = vector.load %arg5[%c4, %c0_25, %c0_26] : memref<9x128x128xbf16, #tpu.memory_space<vmem>>, vector<1x128x128xbf16>
    %42 = vector.shape_cast %41 : vector<1x128x128xbf16> to vector<128x128xbf16>
    %cst_27 = arith.constant dense<0.000000e+00> : vector<128x128xf32>
    %43 = tpu.matmul %40, %42, %cst_27 {dimension_numbers = #tpu.dot_dimension_numbers<[1], [0], [0], [1], [0, 0, 1, 1], [], []>} : vector<128x128xbf16>, vector<128x128xbf16>, vector<128x128xf32> -> vector<128x128xf32>
    %44 = arith.addf %38, %43 : vector<128x128xf32>
    %45 = vector.extract_strided_slice %32 {offsets = [0, 2, 0], sizes = [8, 16, 128], strides = [1, 1, 1]} : vector<8x18x128xbf16> to vector<8x16x128xbf16>
    %46 = vector.shape_cast %45 : vector<8x16x128xbf16> to vector<128x128xbf16>
    %c5 = arith.constant 5 : index
    %c0_28 = arith.constant 0 : index
    %c0_29 = arith.constant 0 : index
    %47 = vector.load %arg5[%c5, %c0_28, %c0_29] : memref<9x128x128xbf16, #tpu.memory_space<vmem>>, vector<1x128x128xbf16>
    %48 = vector.shape_cast %47 : vector<1x128x128xbf16> to vector<128x128xbf16>
    %cst_30 = arith.constant dense<0.000000e+00> : vector<128x128xf32>
    %49 = tpu.matmul %46, %48, %cst_30 {dimension_numbers = #tpu.dot_dimension_numbers<[1], [0], [0], [1], [0, 0, 1, 1], [], []>} : vector<128x128xbf16>, vector<128x128xbf16>, vector<128x128xf32> -> vector<128x128xf32>
    %50 = arith.addf %44, %49 : vector<128x128xf32>
    %51 = vector.extract_strided_slice %11 {offsets = [2, 0, 0], sizes = [8, 18, 128], strides = [1, 1, 1]} : vector<10x18x128xbf16> to vector<8x18x128xbf16>
    %52 = vector.extract_strided_slice %51 {offsets = [0, 0, 0], sizes = [8, 16, 128], strides = [1, 1, 1]} : vector<8x18x128xbf16> to vector<8x16x128xbf16>
    %53 = vector.shape_cast %52 : vector<8x16x128xbf16> to vector<128x128xbf16>
    %c6 = arith.constant 6 : index
    %c0_31 = arith.constant 0 : index
    %c0_32 = arith.constant 0 : index
    %54 = vector.load %arg5[%c6, %c0_31, %c0_32] : memref<9x128x128xbf16, #tpu.memory_space<vmem>>, vector<1x128x128xbf16>
    %55 = vector.shape_cast %54 : vector<1x128x128xbf16> to vector<128x128xbf16>
    %cst_33 = arith.constant dense<0.000000e+00> : vector<128x128xf32>
    %56 = tpu.matmul %53, %55, %cst_33 {dimension_numbers = #tpu.dot_dimension_numbers<[1], [0], [0], [1], [0, 0, 1, 1], [], []>} : vector<128x128xbf16>, vector<128x128xbf16>, vector<128x128xf32> -> vector<128x128xf32>
    %57 = arith.addf %50, %56 : vector<128x128xf32>
    %58 = vector.extract_strided_slice %51 {offsets = [0, 1, 0], sizes = [8, 16, 128], strides = [1, 1, 1]} : vector<8x18x128xbf16> to vector<8x16x128xbf16>
    %59 = vector.shape_cast %58 : vector<8x16x128xbf16> to vector<128x128xbf16>
    %c7 = arith.constant 7 : index
    %c0_34 = arith.constant 0 : index
    %c0_35 = arith.constant 0 : index
    %60 = vector.load %arg5[%c7, %c0_34, %c0_35] : memref<9x128x128xbf16, #tpu.memory_space<vmem>>, vector<1x128x128xbf16>
    %61 = vector.shape_cast %60 : vector<1x128x128xbf16> to vector<128x128xbf16>
    %cst_36 = arith.constant dense<0.000000e+00> : vector<128x128xf32>
    %62 = tpu.matmul %59, %61, %cst_36 {dimension_numbers = #tpu.dot_dimension_numbers<[1], [0], [0], [1], [0, 0, 1, 1], [], []>} : vector<128x128xbf16>, vector<128x128xbf16>, vector<128x128xf32> -> vector<128x128xf32>
    %63 = arith.addf %57, %62 : vector<128x128xf32>
    %64 = vector.extract_strided_slice %51 {offsets = [0, 2, 0], sizes = [8, 16, 128], strides = [1, 1, 1]} : vector<8x18x128xbf16> to vector<8x16x128xbf16>
    %65 = vector.shape_cast %64 : vector<8x16x128xbf16> to vector<128x128xbf16>
    %c8 = arith.constant 8 : index
    %c0_37 = arith.constant 0 : index
    %c0_38 = arith.constant 0 : index
    %66 = vector.load %arg5[%c8, %c0_37, %c0_38] : memref<9x128x128xbf16, #tpu.memory_space<vmem>>, vector<1x128x128xbf16>
    %67 = vector.shape_cast %66 : vector<1x128x128xbf16> to vector<128x128xbf16>
    %cst_39 = arith.constant dense<0.000000e+00> : vector<128x128xf32>
    %68 = tpu.matmul %65, %67, %cst_39 {dimension_numbers = #tpu.dot_dimension_numbers<[1], [0], [0], [1], [0, 0, 1, 1], [], []>} : vector<128x128xbf16>, vector<128x128xbf16>, vector<128x128xf32> -> vector<128x128xf32>
    %69 = arith.addf %63, %68 : vector<128x128xf32>
    %c0_40 = arith.constant 0 : index
    %c0_41 = arith.constant 0 : index
    %70 = vector.load %arg6[%c0_40, %c0_41] : memref<1x128xf32, #tpu.memory_space<vmem>>, vector<1x128xf32>
    %71 = vector.broadcast %70 : vector<1x128xf32> to vector<128x128xf32>
    %72 = arith.addf %69, %71 : vector<128x128xf32>
    %cst_42 = arith.constant 0.000000e+00 : f32
    %73 = vector.broadcast %cst_42 : f32 to vector<128x128xf32>
    %74 = arith.maximumf %72, %73 : vector<128x128xf32>
    %75 = vector.shape_cast %74 : vector<128x128xf32> to vector<8x16x128xf32>
    %76 = arith.truncf %75 : vector<8x16x128xf32> to vector<8x16x128xbf16>
    %c0_43 = arith.constant 0 : index
    %c0_44 = arith.constant 0 : index
    %c0_45 = arith.constant 0 : index
    %c0_46 = arith.constant 0 : index
    %77 = vector.load %arg7[%c0_43, %c0_44, %c0_45, %c0_46] : memref<1x8x16x128xbf16, #tpu.memory_space<vmem>>, vector<1x8x16x128xbf16>
    %78 = vector.shape_cast %77 : vector<1x8x16x128xbf16> to vector<8x16x128xbf16>
    %79 = vector.shape_cast %76 : vector<8x16x128xbf16> to vector<1x8x16x128xbf16>
    tpu.vector_store %arg7[%c0_43, %c0_44, %c0_45, %c0_46], %79 {strides = array<i32>} : memref<1x8x16x128xbf16, #tpu.memory_space<vmem>>, vector<1x8x16x128xbf16>,
    return
  }
  func.func @transform_0(%arg0: i32, %arg1: i32) -> (i32, i32, i32, i32) {
    %c0_i32 = arith.constant 0 : i32
    %c0_i32_0 = arith.constant 0 : i32
    %c0_i32_1 = arith.constant 0 : i32
    return %arg0, %arg1, %c0_i32, %c0_i32_0 : i32, i32, i32, i32
  }
  func.func @transform_1(%arg0: i32, %arg1: i32) -> (i32, i32, i32, i32) {
    %c8_i32 = arith.constant 8 : i32
    %0 = arith.muli %arg1, %c8_i32 : i32
    %c1_i32 = arith.constant 1 : i32
    %1 = arith.subi %0, %c1_i32 : i32
    %c0_i32 = arith.constant 0 : i32
    %2 = arith.maxsi %1, %c0_i32 : i32
    %c0_i32_0 = arith.constant 0 : i32
    %c0_i32_1 = arith.constant 0 : i32
    %c0_i32_2 = arith.constant 0 : i32
    return %arg0, %2, %c0_i32_0, %c0_i32_1 : i32, i32, i32, i32
  }
  func.func @transform_2(%arg0: i32, %arg1: i32) -> (i32, i32, i32, i32) {
    %c1_i32 = arith.constant 1 : i32
    %0 = arith.addi %arg1, %c1_i32 : i32
    %c8_i32 = arith.constant 8 : i32
    %1 = arith.muli %0, %c8_i32 : i32
    %c15_i32 = arith.constant 15 : i32
    %2 = arith.minsi %1, %c15_i32 : i32
    %c0_i32 = arith.constant 0 : i32
    %c0_i32_0 = arith.constant 0 : i32
    %c0_i32_1 = arith.constant 0 : i32
    return %arg0, %2, %c0_i32, %c0_i32_0 : i32, i32, i32, i32
  }
  func.func @transform_3(%arg0: i32, %arg1: i32) -> (i32, i32, i32) {
    %c0_i32 = arith.constant 0 : i32
    %c0_i32_0 = arith.constant 0 : i32
    %c0_i32_1 = arith.constant 0 : i32
    %c0_i32_2 = arith.constant 0 : i32
    return %c0_i32, %c0_i32_0, %c0_i32_1 : i32, i32, i32
  }
  func.func @transform_4(%arg0: i32, %arg1: i32) -> (i32, i32) {
    %c0_i32 = arith.constant 0 : i32
    %c0_i32_0 = arith.constant 0 : i32
    %c0_i32_1 = arith.constant 0 : i32
    return %c0_i32, %c0_i32_0 : i32, i32
  }
  func.func @transform_5(%arg0: i32, %arg1: i32) -> (i32, i32, i32, i32) {
    %c0_i32 = arith.constant 0 : i32
    %c0_i32_0 = arith.constant 0 : i32
    %c0_i32_1 = arith.constant 0 : i32
    return %arg0, %arg1, %c0_i32, %c0_i32_0 : i32, i32, i32, i32
  }
}

module attributes {stable_mosaic.version = 11 : i64} {
  func.func @_dual_branch_kernel(%arg0: i32, %arg1: i32, %arg2: memref<1x8x18x128xbf16, #tpu.memory_space<vmem>>, %arg3: memref<1x1x18x128xbf16, #tpu.memory_space<vmem>>, %arg4: memref<1x1x18x128xbf16, #tpu.memory_space<vmem>>, %arg5: memref<1x8x18x128xbf16, #tpu.memory_space<vmem>>, %arg6: memref<9x128x128xbf16, #tpu.memory_space<vmem>>, %arg7: memref<128x128xbf16, #tpu.memory_space<vmem>>, %arg8: memref<1x128xf32, #tpu.memory_space<vmem>>, %arg9: memref<1x8x18x128xbf16, #tpu.memory_space<vmem>>) attributes {dimension_semantics = [#tpu.dimension_semantics<parallel>, #tpu.dimension_semantics<parallel>], iteration_bounds = array<i64: 2, 2>, scalar_prefetch = 0 : i64, scratch_operands = 0 : i64, tpu.core_type = #tpu.core_type<tc>, window_params = [{transform_indices = @transform_0, window_bounds = array<i64: 1, 8, 18, 128>}, {transform_indices = @transform_1, window_bounds = array<i64: 1, 1, 18, 128>}, {transform_indices = @transform_2, window_bounds = array<i64: 1, 1, 18, 128>}, {transform_indices = @transform_3, window_bounds = array<i64: 1, 8, 18, 128>}, {pipeline_mode = #tpu.pipeline_mode<synchronous>, transform_indices = @transform_4, window_bounds = array<i64: 9, 128, 128>}, {pipeline_mode = #tpu.pipeline_mode<synchronous>, transform_indices = @transform_5, window_bounds = array<i64: 128, 128>}, {pipeline_mode = #tpu.pipeline_mode<synchronous>, transform_indices = @transform_6, window_bounds = array<i64: 1, 128>}, {transform_indices = @transform_7, window_bounds = array<i64: 1, 8, 18, 128>}]} {
    %c0 = arith.constant 0 : index
    %c0_0 = arith.constant 0 : index
    %c1 = arith.constant 1 : index
    %c0_1 = arith.constant 0 : index
    %0 = vector.load %arg5[%c0, %c0_0, %c1, %c0_1] : memref<1x8x18x128xbf16, #tpu.memory_space<vmem>>, vector<1x8x16x128xbf16>
    %1 = vector.shape_cast %0 : vector<1x8x16x128xbf16> to vector<8x16x128xbf16>
    %2 = vector.shape_cast %1 : vector<8x16x128xbf16> to vector<128x128xbf16>
    %c0_2 = arith.constant 0 : index
    %c0_3 = arith.constant 0 : index
    %3 = vector.load %arg7[%c0_2, %c0_3] : memref<128x128xbf16, #tpu.memory_space<vmem>>, vector<128x128xbf16>
    %cst = arith.constant dense<0.000000e+00> : vector<128x128xf32>
    %4 = tpu.matmul %2, %3, %cst {dimension_numbers = #tpu.dot_dimension_numbers<[1], [0], [0], [1], [0, 0, 1, 1], [], []>} : vector<128x128xbf16>, vector<128x128xbf16>, vector<128x128xf32> -> vector<128x128xf32>
    %cst_4 = arith.constant 0.000000e+00 : bf16
    %5 = vector.broadcast %cst_4 : bf16 to vector<1x18x128xbf16>
    %c0_i32 = arith.constant 0 : i32
    %6 = arith.cmpi sgt, %arg1, %c0_i32 : i32
    %c0_5 = arith.constant 0 : index
    %c0_6 = arith.constant 0 : index
    %c0_7 = arith.constant 0 : index
    %c0_8 = arith.constant 0 : index
    %7 = vector.load %arg3[%c0_5, %c0_6, %c0_7, %c0_8] : memref<1x1x18x128xbf16, #tpu.memory_space<vmem>>, vector<1x1x18x128xbf16>
    %8 = vector.shape_cast %7 : vector<1x1x18x128xbf16> to vector<1x18x128xbf16>
    %9 = arith.select %6, %8, %5 : vector<1x18x128xbf16>
    %c1_i32 = arith.constant 1 : i32
    %10 = arith.cmpi slt, %arg1, %c1_i32 : i32
    %c0_9 = arith.constant 0 : index
    %c0_10 = arith.constant 0 : index
    %c0_11 = arith.constant 0 : index
    %c0_12 = arith.constant 0 : index
    %11 = vector.load %arg4[%c0_9, %c0_10, %c0_11, %c0_12] : memref<1x1x18x128xbf16, #tpu.memory_space<vmem>>, vector<1x1x18x128xbf16>
    %12 = vector.shape_cast %11 : vector<1x1x18x128xbf16> to vector<1x18x128xbf16>
    %13 = arith.select %10, %12, %5 : vector<1x18x128xbf16>
    %c0_13 = arith.constant 0 : index
    %c0_14 = arith.constant 0 : index
    %c0_15 = arith.constant 0 : index
    %c0_16 = arith.constant 0 : index
    %14 = vector.load %arg2[%c0_13, %c0_14, %c0_15, %c0_16] : memref<1x8x18x128xbf16, #tpu.memory_space<vmem>>, vector<1x8x18x128xbf16>
    %15 = vector.shape_cast %14 : vector<1x8x18x128xbf16> to vector<8x18x128xbf16>
    %16 = tpu.concatenate %9, %15, %13 in 0 : vector<1x18x128xbf16>, vector<8x18x128xbf16>, vector<1x18x128xbf16> -> vector<10x18x128xbf16>
    %cst_17 = arith.constant 0.000000e+00 : f32
    %17 = vector.broadcast %cst_17 : f32 to vector<128x128xf32>
    %18 = vector.extract_strided_slice %16 {offsets = [0, 0, 0], sizes = [8, 18, 128], strides = [1, 1, 1]} : vector<10x18x128xbf16> to vector<8x18x128xbf16>
    %19 = vector.extract_strided_slice %18 {offsets = [0, 0, 0], sizes = [8, 16, 128], strides = [1, 1, 1]} : vector<8x18x128xbf16> to vector<8x16x128xbf16>
    %20 = vector.shape_cast %19 : vector<8x16x128xbf16> to vector<128x128xbf16>
    %c0_18 = arith.constant 0 : index
    %c0_19 = arith.constant 0 : index
    %c0_20 = arith.constant 0 : index
    %21 = vector.load %arg6[%c0_18, %c0_19, %c0_20] : memref<9x128x128xbf16, #tpu.memory_space<vmem>>, vector<1x128x128xbf16>
    %22 = vector.shape_cast %21 : vector<1x128x128xbf16> to vector<128x128xbf16>
    %cst_21 = arith.constant dense<0.000000e+00> : vector<128x128xf32>
    %23 = tpu.matmul %20, %22, %cst_21 {dimension_numbers = #tpu.dot_dimension_numbers<[1], [0], [0], [1], [0, 0, 1, 1], [], []>} : vector<128x128xbf16>, vector<128x128xbf16>, vector<128x128xf32> -> vector<128x128xf32>
    %24 = arith.addf %17, %23 : vector<128x128xf32>
    %25 = vector.extract_strided_slice %18 {offsets = [0, 1, 0], sizes = [8, 16, 128], strides = [1, 1, 1]} : vector<8x18x128xbf16> to vector<8x16x128xbf16>
    %26 = vector.shape_cast %25 : vector<8x16x128xbf16> to vector<128x128xbf16>
    %c1_22 = arith.constant 1 : index
    %c0_23 = arith.constant 0 : index
    %c0_24 = arith.constant 0 : index
    %27 = vector.load %arg6[%c1_22, %c0_23, %c0_24] : memref<9x128x128xbf16, #tpu.memory_space<vmem>>, vector<1x128x128xbf16>
    %28 = vector.shape_cast %27 : vector<1x128x128xbf16> to vector<128x128xbf16>
    %cst_25 = arith.constant dense<0.000000e+00> : vector<128x128xf32>
    %29 = tpu.matmul %26, %28, %cst_25 {dimension_numbers = #tpu.dot_dimension_numbers<[1], [0], [0], [1], [0, 0, 1, 1], [], []>} : vector<128x128xbf16>, vector<128x128xbf16>, vector<128x128xf32> -> vector<128x128xf32>
    %30 = arith.addf %24, %29 : vector<128x128xf32>
    %31 = vector.extract_strided_slice %18 {offsets = [0, 2, 0], sizes = [8, 16, 128], strides = [1, 1, 1]} : vector<8x18x128xbf16> to vector<8x16x128xbf16>
    %32 = vector.shape_cast %31 : vector<8x16x128xbf16> to vector<128x128xbf16>
    %c2 = arith.constant 2 : index
    %c0_26 = arith.constant 0 : index
    %c0_27 = arith.constant 0 : index
    %33 = vector.load %arg6[%c2, %c0_26, %c0_27] : memref<9x128x128xbf16, #tpu.memory_space<vmem>>, vector<1x128x128xbf16>
    %34 = vector.shape_cast %33 : vector<1x128x128xbf16> to vector<128x128xbf16>
    %cst_28 = arith.constant dense<0.000000e+00> : vector<128x128xf32>
    %35 = tpu.matmul %32, %34, %cst_28 {dimension_numbers = #tpu.dot_dimension_numbers<[1], [0], [0], [1], [0, 0, 1, 1], [], []>} : vector<128x128xbf16>, vector<128x128xbf16>, vector<128x128xf32> -> vector<128x128xf32>
    %36 = arith.addf %30, %35 : vector<128x128xf32>
    %37 = vector.extract_strided_slice %16 {offsets = [1, 0, 0], sizes = [8, 18, 128], strides = [1, 1, 1]} : vector<10x18x128xbf16> to vector<8x18x128xbf16>
    %38 = vector.extract_strided_slice %37 {offsets = [0, 0, 0], sizes = [8, 16, 128], strides = [1, 1, 1]} : vector<8x18x128xbf16> to vector<8x16x128xbf16>
    %39 = vector.shape_cast %38 : vector<8x16x128xbf16> to vector<128x128xbf16>
    %c3 = arith.constant 3 : index
    %c0_29 = arith.constant 0 : index
    %c0_30 = arith.constant 0 : index
    %40 = vector.load %arg6[%c3, %c0_29, %c0_30] : memref<9x128x128xbf16, #tpu.memory_space<vmem>>, vector<1x128x128xbf16>
    %41 = vector.shape_cast %40 : vector<1x128x128xbf16> to vector<128x128xbf16>
    %cst_31 = arith.constant dense<0.000000e+00> : vector<128x128xf32>
    %42 = tpu.matmul %39, %41, %cst_31 {dimension_numbers = #tpu.dot_dimension_numbers<[1], [0], [0], [1], [0, 0, 1, 1], [], []>} : vector<128x128xbf16>, vector<128x128xbf16>, vector<128x128xf32> -> vector<128x128xf32>
    %43 = arith.addf %36, %42 : vector<128x128xf32>
    %44 = vector.extract_strided_slice %37 {offsets = [0, 1, 0], sizes = [8, 16, 128], strides = [1, 1, 1]} : vector<8x18x128xbf16> to vector<8x16x128xbf16>
    %45 = vector.shape_cast %44 : vector<8x16x128xbf16> to vector<128x128xbf16>
    %c4 = arith.constant 4 : index
    %c0_32 = arith.constant 0 : index
    %c0_33 = arith.constant 0 : index
    %46 = vector.load %arg6[%c4, %c0_32, %c0_33] : memref<9x128x128xbf16, #tpu.memory_space<vmem>>, vector<1x128x128xbf16>
    %47 = vector.shape_cast %46 : vector<1x128x128xbf16> to vector<128x128xbf16>
    %cst_34 = arith.constant dense<0.000000e+00> : vector<128x128xf32>
    %48 = tpu.matmul %45, %47, %cst_34 {dimension_numbers = #tpu.dot_dimension_numbers<[1], [0], [0], [1], [0, 0, 1, 1], [], []>} : vector<128x128xbf16>, vector<128x128xbf16>, vector<128x128xf32> -> vector<128x128xf32>
    %49 = arith.addf %43, %48 : vector<128x128xf32>
    %50 = vector.extract_strided_slice %37 {offsets = [0, 2, 0], sizes = [8, 16, 128], strides = [1, 1, 1]} : vector<8x18x128xbf16> to vector<8x16x128xbf16>
    %51 = vector.shape_cast %50 : vector<8x16x128xbf16> to vector<128x128xbf16>
    %c5 = arith.constant 5 : index
    %c0_35 = arith.constant 0 : index
    %c0_36 = arith.constant 0 : index
    %52 = vector.load %arg6[%c5, %c0_35, %c0_36] : memref<9x128x128xbf16, #tpu.memory_space<vmem>>, vector<1x128x128xbf16>
    %53 = vector.shape_cast %52 : vector<1x128x128xbf16> to vector<128x128xbf16>
    %cst_37 = arith.constant dense<0.000000e+00> : vector<128x128xf32>
    %54 = tpu.matmul %51, %53, %cst_37 {dimension_numbers = #tpu.dot_dimension_numbers<[1], [0], [0], [1], [0, 0, 1, 1], [], []>} : vector<128x128xbf16>, vector<128x128xbf16>, vector<128x128xf32> -> vector<128x128xf32>
    %55 = arith.addf %49, %54 : vector<128x128xf32>
    %56 = vector.extract_strided_slice %16 {offsets = [2, 0, 0], sizes = [8, 18, 128], strides = [1, 1, 1]} : vector<10x18x128xbf16> to vector<8x18x128xbf16>
    %57 = vector.extract_strided_slice %56 {offsets = [0, 0, 0], sizes = [8, 16, 128], strides = [1, 1, 1]} : vector<8x18x128xbf16> to vector<8x16x128xbf16>
    %58 = vector.shape_cast %57 : vector<8x16x128xbf16> to vector<128x128xbf16>
    %c6 = arith.constant 6 : index
    %c0_38 = arith.constant 0 : index
    %c0_39 = arith.constant 0 : index
    %59 = vector.load %arg6[%c6, %c0_38, %c0_39] : memref<9x128x128xbf16, #tpu.memory_space<vmem>>, vector<1x128x128xbf16>
    %60 = vector.shape_cast %59 : vector<1x128x128xbf16> to vector<128x128xbf16>
    %cst_40 = arith.constant dense<0.000000e+00> : vector<128x128xf32>
    %61 = tpu.matmul %58, %60, %cst_40 {dimension_numbers = #tpu.dot_dimension_numbers<[1], [0], [0], [1], [0, 0, 1, 1], [], []>} : vector<128x128xbf16>, vector<128x128xbf16>, vector<128x128xf32> -> vector<128x128xf32>
    %62 = arith.addf %55, %61 : vector<128x128xf32>
    %63 = vector.extract_strided_slice %56 {offsets = [0, 1, 0], sizes = [8, 16, 128], strides = [1, 1, 1]} : vector<8x18x128xbf16> to vector<8x16x128xbf16>
    %64 = vector.shape_cast %63 : vector<8x16x128xbf16> to vector<128x128xbf16>
    %c7 = arith.constant 7 : index
    %c0_41 = arith.constant 0 : index
    %c0_42 = arith.constant 0 : index
    %65 = vector.load %arg6[%c7, %c0_41, %c0_42] : memref<9x128x128xbf16, #tpu.memory_space<vmem>>, vector<1x128x128xbf16>
    %66 = vector.shape_cast %65 : vector<1x128x128xbf16> to vector<128x128xbf16>
    %cst_43 = arith.constant dense<0.000000e+00> : vector<128x128xf32>
    %67 = tpu.matmul %64, %66, %cst_43 {dimension_numbers = #tpu.dot_dimension_numbers<[1], [0], [0], [1], [0, 0, 1, 1], [], []>} : vector<128x128xbf16>, vector<128x128xbf16>, vector<128x128xf32> -> vector<128x128xf32>
    %68 = arith.addf %62, %67 : vector<128x128xf32>
    %69 = vector.extract_strided_slice %56 {offsets = [0, 2, 0], sizes = [8, 16, 128], strides = [1, 1, 1]} : vector<8x18x128xbf16> to vector<8x16x128xbf16>
    %70 = vector.shape_cast %69 : vector<8x16x128xbf16> to vector<128x128xbf16>
    %c8 = arith.constant 8 : index
    %c0_44 = arith.constant 0 : index
    %c0_45 = arith.constant 0 : index
    %71 = vector.load %arg6[%c8, %c0_44, %c0_45] : memref<9x128x128xbf16, #tpu.memory_space<vmem>>, vector<1x128x128xbf16>
    %72 = vector.shape_cast %71 : vector<1x128x128xbf16> to vector<128x128xbf16>
    %cst_46 = arith.constant dense<0.000000e+00> : vector<128x128xf32>
    %73 = tpu.matmul %70, %72, %cst_46 {dimension_numbers = #tpu.dot_dimension_numbers<[1], [0], [0], [1], [0, 0, 1, 1], [], []>} : vector<128x128xbf16>, vector<128x128xbf16>, vector<128x128xf32> -> vector<128x128xf32>
    %74 = arith.addf %68, %73 : vector<128x128xf32>
    %75 = arith.addf %4, %74 : vector<128x128xf32>
    %c0_47 = arith.constant 0 : index
    %c0_48 = arith.constant 0 : index
    %76 = vector.load %arg8[%c0_47, %c0_48] : memref<1x128xf32, #tpu.memory_space<vmem>>, vector<1x128xf32>
    %77 = vector.broadcast %76 : vector<1x128xf32> to vector<128x128xf32>
    %78 = arith.addf %75, %77 : vector<128x128xf32>
    %cst_49 = arith.constant 0.000000e+00 : f32
    %79 = vector.broadcast %cst_49 : f32 to vector<128x128xf32>
    %80 = arith.maximumf %78, %79 : vector<128x128xf32>
    %81 = vector.shape_cast %80 : vector<128x128xf32> to vector<8x16x128xf32>
    %cst_50 = arith.constant 0.000000e+00 : f32
    %82 = vector.broadcast %cst_50 : f32 to vector<8x1x128xf32>
    %83 = tpu.concatenate %82, %81, %82 in 1 : vector<8x1x128xf32>, vector<8x16x128xf32>, vector<8x1x128xf32> -> vector<8x18x128xf32>
    %84 = arith.truncf %83 : vector<8x18x128xf32> to vector<8x18x128xbf16>
    %c0_51 = arith.constant 0 : index
    %c0_52 = arith.constant 0 : index
    %c0_53 = arith.constant 0 : index
    %c0_54 = arith.constant 0 : index
    %85 = vector.load %arg9[%c0_51, %c0_52, %c0_53, %c0_54] : memref<1x8x18x128xbf16, #tpu.memory_space<vmem>>, vector<1x8x18x128xbf16>
    %86 = vector.shape_cast %85 : vector<1x8x18x128xbf16> to vector<8x18x128xbf16>
    %87 = vector.shape_cast %84 : vector<8x18x128xbf16> to vector<1x8x18x128xbf16>
    tpu.vector_store %arg9[%c0_51, %c0_52, %c0_53, %c0_54], %87 {strides = array<i32>} : memref<1x8x18x128xbf16, #tpu.memory_space<vmem>>, vector<1x8x18x128xbf16>,
    return
  }
  func.func @transform_0(%arg0: i32, %arg1: i32) -> (i32, i32, i32, i32) {
    %c0_i32 = arith.constant 0 : i32
    %c0_i32_0 = arith.constant 0 : i32
    %c0_i32_1 = arith.constant 0 : i32
    return %arg0, %arg1, %c0_i32, %c0_i32_0 : i32, i32, i32, i32
  }
  func.func @transform_1(%arg0: i32, %arg1: i32) -> (i32, i32, i32, i32) {
    %c8_i32 = arith.constant 8 : i32
    %0 = arith.muli %arg1, %c8_i32 : i32
    %c1_i32 = arith.constant 1 : i32
    %1 = arith.subi %0, %c1_i32 : i32
    %c0_i32 = arith.constant 0 : i32
    %2 = arith.maxsi %1, %c0_i32 : i32
    %c0_i32_0 = arith.constant 0 : i32
    %c0_i32_1 = arith.constant 0 : i32
    %c0_i32_2 = arith.constant 0 : i32
    return %arg0, %2, %c0_i32_0, %c0_i32_1 : i32, i32, i32, i32
  }
  func.func @transform_2(%arg0: i32, %arg1: i32) -> (i32, i32, i32, i32) {
    %c1_i32 = arith.constant 1 : i32
    %0 = arith.addi %arg1, %c1_i32 : i32
    %c8_i32 = arith.constant 8 : i32
    %1 = arith.muli %0, %c8_i32 : i32
    %c15_i32 = arith.constant 15 : i32
    %2 = arith.minsi %1, %c15_i32 : i32
    %c0_i32 = arith.constant 0 : i32
    %c0_i32_0 = arith.constant 0 : i32
    %c0_i32_1 = arith.constant 0 : i32
    return %arg0, %2, %c0_i32, %c0_i32_0 : i32, i32, i32, i32
  }
  func.func @transform_3(%arg0: i32, %arg1: i32) -> (i32, i32, i32, i32) {
    %c0_i32 = arith.constant 0 : i32
    %c0_i32_0 = arith.constant 0 : i32
    %c0_i32_1 = arith.constant 0 : i32
    return %arg0, %arg1, %c0_i32, %c0_i32_0 : i32, i32, i32, i32
  }
  func.func @transform_4(%arg0: i32, %arg1: i32) -> (i32, i32, i32) {
    %c0_i32 = arith.constant 0 : i32
    %c0_i32_0 = arith.constant 0 : i32
    %c0_i32_1 = arith.constant 0 : i32
    %c0_i32_2 = arith.constant 0 : i32
    return %c0_i32, %c0_i32_0, %c0_i32_1 : i32, i32, i32
  }
  func.func @transform_5(%arg0: i32, %arg1: i32) -> (i32, i32) {
    %c0_i32 = arith.constant 0 : i32
    %c0_i32_0 = arith.constant 0 : i32
    %c0_i32_1 = arith.constant 0 : i32
    return %c0_i32, %c0_i32_0 : i32, i32
  }
  func.func @transform_6(%arg0: i32, %arg1: i32) -> (i32, i32) {
    %c0_i32 = arith.constant 0 : i32
    %c0_i32_0 = arith.constant 0 : i32
    %c0_i32_1 = arith.constant 0 : i32
    return %c0_i32, %c0_i32_0 : i32, i32
  }
  func.func @transform_7(%arg0: i32, %arg1: i32) -> (i32, i32, i32, i32) {
    %c0_i32 = arith.constant 0 : i32
    %c0_i32_0 = arith.constant 0 : i32
    %c0_i32_1 = arith.constant 0 : i32
    return %arg0, %arg1, %c0_i32, %c0_i32_0 : i32, i32, i32, i32
  }
}

</mosaic_0001>

<bundles_post_ra>
// kernel: pool_forward.5
= control target key start
LH: loop header
LB: loop body
LE: loop exit
PB: predicated region body
PF: predicated region fallthrough
CT: control target
= control target key end

     0   :  { %s3863_s18 = smov 0   ;;  %s3865_s19 = smov 0   ;;  %s4623_s0 = inlined_call_operand.vmem [shape: bf16[2,16,18,128], index: 0, kind: input, shape index: {}, may-alias: {0,1,2}]   ;;  %s4624_s1 = inlined_call_operand.vmem [shape: bf16[2,16,18,128], index: 1, kind: input, shape index: {}, may-alias: {0,1,2}]   ;;  %s4625_s2 = inlined_call_operand.vmem [shape: bf16[2,16,18,128], index: 2, kind: input, shape index: {}, may-alias: {0,1,2}]   ;;  %s4626_s3 = inlined_call_operand.vmem [shape: bf16[9,128,128], index: 3, kind: input, shape index: {}]   ;;  %s4627_s4 = inlined_call_operand.vmem [shape: f32[1,128], index: 4, kind: input, shape index: {}]   ;;  %s4628_s5 = inlined_call_operand.vmem [shape: bf16[2,16,16,128], index: 5, kind: output, shape index: {}]  }
   0x1   :  { %s3867_s20 = smov 0   ;;  %s3869_s21 = smov 0  }
   0x2   :  { %s3871_s22 = smov 0  }
   0x3 LB: > { %s24_s23 = sadd.s32 1, %s3823_s20  ;;  %s27_s24 = sadd.s32 1, %s3827_s21  ;;  %s3831_s22 = sphi %s3871_s22, %s15_s22   ;;  %s3827_s21 = sphi %s3869_s21, %s4639_s21   ;;  %s3823_s20 = sphi %s3867_s20, %s4638_s20   ;;  %s3819_s19 = sphi %s3865_s19, %s4637_s19   ;;  %s3815_s18 = sphi %s3863_s18, %s4636_s18  }
   0x4   : > { %p25_p0 = scmp.ge.s32.totalorder %s24_s23, 2  ;;  %p2743_p1 = scmp.ge.s32.totalorder %s3831_s22, 1 }
   0x5   : > { %p273_p2 = scmp.lt.s32.totalorder %s3831_s22, 5 }
   0x6   : > { %s4641_s23 = smov (%p25_p0, %s24_s23), 0  ;;  %s4643_s24 = smov (!%p25_p0, %s27_s24), %s3827_s21 }
   0x7   : > { %p274_p3 = pnand %p2743_p1, %p273_p2  ;;  %p29_p4 = scmp.ge.s32.totalorder %s4643_s24, 2 }
   0x8   : > { %v3713_v0 = vld [vmem:[%s4626_s3 + $0x40] sm:$0xff] (!%p274_p3)   ;;  %s3899_s27 = sshll.u32 (!%p274_p3), %s3815_s18, 3  ;;  %p338_p5 = scmp.lt.s32.totalorder (!%p274_p3), %s3819_s19, 1  ;;  %v3715_v2 = vld [vmem:[%s4626_s3 + $0x48] sm:$0xff] (!%p274_p3)   ;;  %v3717_v4 = vld [vmem:[%s4626_s3 + $0x50] sm:$0xff] (!%p274_p3)   ;;  %vm1044_vm4 = vcmask (!%p274_p3), 1042432  }
   0x9   : > { %s4645_s24 = smov (%p29_p4, %s4643_s24), 0  ;;  %277 = sbr.rel (%p274_p3) target bundleno = 410 (0x19a), region = 40 }
   0xa   : > { %v3714_v1 = vld [vmem:[%s4626_s3 + $0x100] sm:$0xff] (!%p274_p3)   ;;  %3237 = vmatprep.subr.bf16.mxu1 (!%p274_p3), %v3713_v0  ;;  %p340_p6 = scmp.lt.s32.totalorder (!%p274_p3), %s3899_s27, 15  ;;  %v3716_v3 = vld [vmem:[%s4626_s3 + $0x108] sm:$0xff] (!%p274_p3)   ;;  %v3718_v5 = vld [vmem:[%s4626_s3 + $0x110] sm:$0xff] (!%p274_p3)   ;;  %s2747_s16 = sadd.s32 (!%p274_p3), 4294967295, %s3899_s27  ;;  %vm1045_vm5 = vcmask (!%p274_p3), 1046532  }
   0xb   : > { %3365 = vmatprep.subr.bf16.mxu0 (!%p274_p3), %v3714_v1  ;;  %3238 = vmatpush3.bf16.msra.mxu1 (!%p274_p3), %v3713_v0  ;;  %v3719_v6 = vld [vmem:[%s4626_s3 + $0x58] sm:$0xff] (!%p274_p3)   ;;  %p350_p7 = scmp.gt.s32.totalorder (!%p274_p3), %s2747_s16, 0  ;;  %p2748_p8 = scmp.lt.s32.totalorder (!%p274_p3), %s2747_s16, 15  ;;  %v3721_v8 = vld [vmem:[%s4626_s3 + $0x60] sm:$0xff] (!%p274_p3)   ;;  %v3723_v10 = vld [vmem:[%s4626_s3 + $0x68] sm:$0xff] (!%p274_p3)  }
   0xc   : > { %3366 = vmatpush3.bf16.msra.mxu0 (!%p274_p3), %v3714_v1  ;;  %3239 = vmatprep.subr.bf16.mxu1 (!%p274_p3), %v3715_v2  ;;  %v3720_v7 = vld [vmem:[%s4626_s3 + $0x118] sm:$0xff] (!%p274_p3)   ;;  %v3722_v9 = vld [vmem:[%s4626_s3 + $0x120] sm:$0xff] (!%p274_p3)   ;;  %v3724_v11 = vld [vmem:[%s4626_s3 + $0x128] sm:$0xff] (!%p274_p3)   ;;  %p394_p9 = scmp.gt.s32.totalorder (!%p274_p3), %s3815_s18, 0  ;;  %vm454_vm0 = vsmask.f32 (!%p274_p3), 3328 }
   0xd   : > { %3367 = vmatprep.subr.bf16.mxu0 (!%p274_p3), %v3716_v3  ;;  %v3725_v14 = vld [vmem:[%s4626_s3 + $0x70] sm:$0xff] (!%p274_p3)   ;;  %vm455_vm1 = vsmask.f32 (!%p274_p3), 7440  ;;  %v3727_v31 = vld [vmem:[%s4626_s3 + $0x78] sm:$0xff] (!%p274_p3)   ;;  %v4022_v53 = vld [vmem:[%s4626_s3] sm:$0xff] (!%p274_p3)   ;;  %s3029_s29 = sadd.s32 (!%p274_p3), 8, %s3899_s27 }
   0xe   : > { %v3726_v19 = vld [vmem:[%s4626_s3 + $0x130] sm:$0xff] (!%p274_p3)   ;;  %v3728_v32 = vld [vmem:[%s4626_s3 + $0x138] sm:$0xff] (!%p274_p3)   ;;  %vm3996_vm3 = vmor (!%p274_p3), %vm454_vm0, %vm455_vm1  ;;  %p4404_p10 = scmp.lt.s32.totalorder (!%p274_p3), %s3029_s29, 15  ;;  %p404_p11 = scmp.lt.s32.totalorder (!%p274_p3), %s3815_s18, 1 }
   0xf   : > { %3240 = vmatpush3.bf16.msra.mxu1 (!%p274_p3), %v3715_v2  ;;  %v4030_v63 = vld [vmem:[%s4626_s3 + $0x140] sm:$0xff] (!%p274_p3)   ;;  %vm4210_vm6 = vmor (!%p274_p3), %vm1044_vm4, %vm1045_vm5 }
  0x10   : > { %s4647_s19 = smov (!%p338_p5, %s3819_s19), 1  ;;  %3368 = vmatpush3.bf16.msra.mxu0 %v3716_v3  ;;  %3241 = vmatprep.subr.bf16.mxu1 %v3717_v4  ;;  %s4649_s16 = smov (!%p350_p7, %s2747_s16), 0 }
  0x11   : > { %s3917_s11 = scalar_select %p340_p6, %s3899_s27, 15  ;;  %3369 = vmatprep.subr.bf16.mxu0 %v3718_v5 }
  0x12   : > { %s3923_s14 = smul.u32 48, %s4647_s19  ;;  %s4651_s16 = smov (!%p2748_p8, %s4649_s16), 15 }
  0x13   : > { %s3669_s15 = smul.u32 3, %s3917_s11  ;;  %3242 = vmatpush3.bf16.msra.mxu1 %v3717_v4  ;;  %s2760_s8 = sshll.u32 %s3917_s11, 1 }
  0x14   : > { %3370 = vmatpush3.bf16.msra.mxu0 %v3718_v5  ;;  %3243 = vmatprep.subr.bf16.mxu1 %v3719_v6  ;;  %s2761_s17 = sshll.u32 %s4647_s19, 5  ;;  %s3671_s25 = smul.u32 3, %s4651_s16 }
  0x15   : > { %s344_s26 = sadd.s32 %s3923_s14, %s3669_s15  ;;  %3371 = vmatprep.subr.bf16.mxu0 %v3720_v7  ;;  %s4653_s29 = smov (!%p4404_p10, %s3029_s29), 15 }
  0x16   : > { %s2745_s30 = sshll.u32 %s344_s26, 2  ;;  %s3947_s26 = sadd.s32 %s2761_s17, %s2760_s8 }
  0x17   : > { %s3944_s15 = scalar_lea.vmem %s4623_s0, %s2745_s30  ;;  %3244 = vmatpush3.bf16.msra.mxu1 %v3719_v6  ;;  %s358_s30 = sadd.s32 %s3671_s25, %s3923_s14 }
  0x18   : > { %3372 = vmatpush3.bf16.msra.mxu0 %v3720_v7  ;;  %3245 = vmatprep.subr.bf16.mxu1 %v3721_v8  ;;  %v3958_v12 = vld [vmem:[%s3944_s15] sm:$0xf]  ;;  %v3961_v13 = vld [vmem:[%s3944_s15 + $0x4] sm:$0xf]  ;;  %s2753_s7 = sshll.u32 %s358_s30, 2  ;;  %s4655_s29 = smov (!%p4404_p10, %s4653_s29), 15 }
  0x19   : > { %3373 = vmatprep.subr.bf16.mxu0 %v3722_v9  ;;  %v3967_v15 = vld [vmem:[%s3944_s15 + $0x8] sm:$0x1]  ;;  %v482_v16 = vshrl.u32 %v3958_v12, 16  ;;  %v485_v17 = vshll.u32 %v3958_v12, 16  ;;  %v491_v18 = vshll.u32 %v3961_v13, 16  ;;  %s360_s13 = scalar_lea.vmem %s4624_s1, %s2753_s7  ;;  %v495_v20 = vshrl.u32 %v3961_v13, 16 }
  0x1a   : > { %v501_v21 = vshll.u32 %v3967_v15, 16  ;;  %v395_v22 = vld [vmem:[%s360_s13] sm:$0xf]  ;;  %v396_v23 = vld [vmem:[%s360_s13 + $0x4] sm:$0xf]  ;;  %s3672_s28 = smul.u32 3, %s4655_s29 }
  0x1b   : > { %3246 = vmatpush3.bf16.msra.mxu1 %v3721_v8  ;;  %s398_s17 = scalar_select %p394_p9, 1, 0  ;;  %v484_v24 = vrot.slane %v482_v16, 4  ;;  %v487_v25 = vrot.slane %v485_v17, 5  ;;  %v493_v26 = vrot.slane %v491_v18, 5  ;;  %v497_v27 = vrot.slane %v495_v20, 4 }
  0x1c   : > { %3374 = vmatpush3.bf16.msra.mxu0 %v3722_v9  ;;  %3247 = vmatprep.subr.bf16.mxu1 %v3723_v10  ;;  %v397_v28 = vld [vmem:[%s360_s13 + $0x8] sm:$0x1]  ;;  %v3983_v29 = vld [vmem:[%s3944_s15 + $0xc] sm:$0xf]  ;;  %v3986_v30 = vld [vmem:[%s3944_s15 + $0x10] sm:$0xf]  ;;  %s375_s19 = sadd.s32 %s3672_s28, %s3923_s14 }
  0x1d   : > { %3375 = vmatprep.subr.bf16.mxu0 %v3724_v11  ;;  %v399_v33 = vstv %s398_s17  ;;  %v488_v34 = vor.u32 %v487_v25, %v484_v24  ;;  %v498_v35 = vor.u32 %v497_v27, %v493_v26  ;;  %v503_v36 = vrot.slane %v501_v21, 5  ;;  %v4014_v49 = vld [vmem:[%s3944_s15 + $0x14] sm:$0x1]  ;;  %v4033_v0 = vld [vmem:[%s3944_s15 + $0x18] sm:$0xf]  ;;  %s2758_s18 = sshll.u32 %s375_s19, 2 }
  0x1e   : > { %vm400_vm2 = vcmp.eq.s32.totalorder %v399_v33, 1  ;;  %v506_v38 = vshrl.u32 %v3983_v29, 16  ;;  %v509_v39 = vshll.u32 %v3983_v29, 16  ;;  %v515_v40 = vshll.u32 %v3986_v30, 16  ;;  %v4036_v5 = vld [vmem:[%s3944_s15 + $0x1c] sm:$0xf] }
  0x1f   : > { %3248 = vmatpush3.bf16.msra.mxu1 %v3723_v10  ;;  %v4003_v41 = vsel %vm400_vm2, %v395_v22, 0  ;;  %v4005_v42 = vsel %vm400_vm2, %v396_v23, 0  ;;  %v4007_v43 = vsel %vm400_vm2, %v397_v28, 0  ;;  %v489_v44 = vrot.slane %v488_v34, 4  ;;  %v4040_v9 = vld [vmem:[%s3944_s15 + $0x20] sm:$0x1] }
  0x20   : > { %3376 = vmatpush3.bf16.msra.mxu0 %v3724_v11  ;;  %3249 = vmatprep.subr.bf16.mxu1 %v3725_v14  ;;  %v458_v45 = vshrl.u32 %v4003_v41, 16  ;;  %v461_v46 = vshll.u32 %v4003_v41, 16  ;;  %v467_v47 = vshll.u32 %v4005_v42, 16  ;;  %v471_v48 = vshrl.u32 %v4005_v42, 16  ;;  %v4048_v21 = vld [vmem:[%s3944_s15 + $0x24] sm:$0xf] }
  0x21   : > { %3377 = vmatprep.subr.bf16.mxu0 %v3726_v19  ;;  %v477_v50 = vshll.u32 %v4007_v43, 16  ;;  %v494_v51 = vsel %vm3996_vm3, %v489_v44, %v493_v26  ;;  %v499_v52 = vrot.slane %v498_v35, 4  ;;  %v519_v54 = vshrl.u32 %v3986_v30, 16  ;;  %v4055_v26 = vld [vmem:[%s3944_s15 + $0x28] sm:$0xf]  ;;  %s2762_s7 = sshll.u32 %s3947_s26, 2 }
  0x22   : > { %v460_v55 = vrot.slane %v458_v45, 4  ;;  %v463_v56 = vrot.slane %v461_v46, 5  ;;  %v469_v57 = vrot.slane %v467_v47, 5  ;;  %v473_v58 = vrot.slane %v471_v48, 4  ;;  %v4060_v33 = vld [vmem:[%s3944_s15 + $0x2c] sm:$0x1]  ;;  %s4582_s9 = scalar_lea.vmem %s4628_s5, %s2762_s7 }
  0x23   : > { %3250 = vmatpush3.bf16.msra.mxu1 %v3725_v14  ;;  %v479_v59 = vrot.slane %v477_v50, 5  ;;  %v504_v60 = vsel %vm3996_vm3, %v499_v52, %v503_v36  ;;  %v508_v61 = vrot.slane %v506_v38, 4  ;;  %v511_v62 = vrot.slane %v509_v39, 5  ;;  %v3731_v34 = vld [vmem:[%s4626_s3 + $0x8] sm:$0xff]   ;;  %v3733_v52 = vld [vmem:[%s4626_s3 + $0x10] sm:$0xff]  }
  0x24   : > { %3378 = vmatpush3.bf16.msra.mxu0 %v3726_v19  ;;  %3251 = vmatprep.subr.bf16.mxu1 %v3727_v31  ;;  %v464_v1 = vor.u32 %v463_v56, %v460_v55  ;;  %v474_v2 = vor.u32 %v473_v58, %v469_v57  ;;  %v2780_v3 = vcombine.low %v494_v51, %v504_v60  ;;  %v517_v4 = vrot.slane %v515_v40, 5  ;;  %v3732_v48 = vld [vmem:[%s4626_s3 + $0x148] sm:$0xff]   ;;  %s408_s8 = scalar_select %p404_p11, 1, 0 }
  0x25   : > { %3379 = vmatprep.subr.bf16.mxu0 %v3728_v32  ;;  %v512_v6 = vor.u32 %v511_v62, %v508_v61  ;;  %v521_v7 = vrot.slane %v519_v54, 4  ;;  %v525_v8 = vshll.u32 %v4014_v49, 16  ;;  %v530_v14 = vshrl.u32 %v4033_v0, 16  ;;  %v3734_v62 = vld [vmem:[%s4626_s3 + $0x150] sm:$0xff]  }
  0x26   : > { %v465_v10 = vrot.slane %v464_v1, 4  ;;  %v475_v11 = vrot.slane %v474_v2, 4  ;;  %3381 = vmatprep.mubr.bf16.mxu0 %v2780_v3  ;;  %v533_v16 = vshll.u32 %v4033_v0, 16  ;;  %v539_v20 = vshll.u32 %v4036_v5, 16  ;;  %v4093_v1 = vld [vmem:[%s3944_s15 + $0x34] sm:$0xf] }
  0x27   : > { %3252 = vmatpush3.bf16.msra.mxu1 %v3727_v31  ;;  %v513_v17 = vrot.slane %v512_v6, 4  ;;  %v522_v18 = vor.u32 %v521_v7, %v517_v4  ;;  %v527_v19 = vrot.slane %v525_v8, 5  ;;  %v532_v24 = vrot.slane %v530_v14, 4 }
  0x28   : > { %3380 = vmatpush3.bf16.msra.mxu0 %v3728_v32  ;;  %3269 = vmatprep.subr.bf16.mxu1 %v4022_v53  ;;  %v470_v22 = vsel %vm3996_vm3, %v465_v10, %v469_v57  ;;  %v480_v23 = vsel %vm3996_vm3, %v475_v11, %v479_v59  ;;  %v535_v25 = vrot.slane %v533_v16, 5  ;;  %v541_v32 = vrot.slane %v539_v20, 5  ;;  %v4108_v20 = vld [vmem:[%s3944_s15 + $0x3c] sm:$0xf] }
  0x29   : > { %3397 = vmatprep.subr.bf16.mxu0 %v4030_v63  ;;  %v2779_v27 = vcombine.low %v470_v22, %v480_v23  ;;  %v518_v28 = vsel %vm3996_vm3, %v513_v17, %v517_v4  ;;  %v523_v31 = vrot.slane %v522_v18, 4  ;;  %v543_v36 = vshrl.u32 %v4036_v5, 16  ;;  %v4098_v4 = vld [vmem:[%s3944_s15 + $0x38] sm:$0x1] }
  0x2a   : > { %v536_v35 = vor.u32 %v535_v25, %v532_v24  ;;  %v549_v38 = vshll.u32 %v4040_v9, 16  ;;  %v554_v39 = vshrl.u32 %v4048_v21, 16  ;;  %v557_v44 = vshll.u32 %v4048_v21, 16  ;;  %v3735_v17 = vld [vmem:[%s4626_s3 + $0x18] sm:$0xff]  }
  0x2b   : > { %3253 = vmatprep.mubr.bf16.mxu1 %v2779_v27  ;;  %v528_v40 = vsel %vm3996_vm3, %v523_v31, %v527_v19  ;;  %v563_v45 = vshll.u32 %v4055_v26, 16  ;;  %v567_v46 = vshrl.u32 %v4055_v26, 16  ;;  %v545_v51 = vrot.slane %v543_v36, 4  ;;  %v3736_v23 = vld [vmem:[%s4626_s3 + $0x158] sm:$0xff]   ;;  %v4126_v36 = vld [vmem:[%s3944_s15 + $0x44] sm:$0x1] }
  0x2c   : > { %3254 = vmatmul.mubr.bf16.vlgmr.msra.gmra.mrb[0].mxu1 %v2780_v3  ;;  %v4073_v47 = vcombine.low %v518_v28, %v528_v40  ;;  %v537_v50 = vrot.slane %v536_v35, 4  ;;  %v556_v54 = vrot.slane %v554_v39, 4  ;;  %v559_v55 = vrot.slane %v557_v44, 5  ;;  %v4117_v28 = vld [vmem:[%s3944_s15 + $0x40] sm:$0xf] }
  0x2d   : > { %3270 = vmatpush3.bf16.msra.mxu1 %v4022_v53  ;;  %v565_v56 = vrot.slane %v563_v45, 5  ;;  %v569_v57 = vrot.slane %v567_v46, 4  ;;  %v546_v59 = vor.u32 %v545_v51, %v541_v32  ;;  %v551_v60 = vrot.slane %v549_v38, 5  ;;  %v4090_v53 = vld [vmem:[%s3944_s15 + $0x30] sm:$0xf] }
  0x2e   : > { %3382 = vmatmul.mubr.bf16.vlgmr.msra.gmra.mrb[0].mxu0 %v4073_v47  ;;  %3271 = vmatprep.subr.bf16.mxu1 %v3731_v34  ;;  %v542_v58 = vsel %vm3996_vm3, %v537_v50, %v541_v32  ;;  %v573_v61 = vshll.u32 %v4060_v33, 16  ;;  %v560_v2 = vor.u32 %v559_v55, %v556_v54  ;;  %v578_v6 = vshrl.u32 %v4090_v53, 16  ;;  %v3737_v54 = vld [vmem:[%s4626_s3 + $0x20] sm:$0xff]  }
  0x2f   : > { %3398 = vmatpush3.bf16.msra.mxu0 %v4030_v63  ;;  %3257 = vmatprep.mubr.bf16.mxu1 %v4073_v47  ;;  %v570_v3 = vor.u32 %v569_v57, %v565_v56  ;;  %v581_v7 = vshll.u32 %v4090_v53, 16  ;;  %v547_v8 = vrot.slane %v546_v59, 4  ;;  %v587_v11 = vshll.u32 %v4093_v1, 16 }
  0x30   : > { %3399 = vmatprep.subr.bf16.mxu0 %v3732_v48  ;;  %v575_v10 = vrot.slane %v573_v61, 5  ;;  %v591_v14 = vshrl.u32 %v4093_v1, 16  ;;  %v561_v63 = vrot.slane %v560_v2, 4  ;;  %v580_v18 = vrot.slane %v578_v6, 4  ;;  %v4147_v61 = vld [vmem:[%s3944_s15 + $0x48] sm:$0xf] }
  0x31   : > { %3272 = vmatpush3.bf16.msra.mxu1 %v3731_v34  ;;  %v571_v16 = vrot.slane %v570_v3, 4  ;;  %v583_v19 = vrot.slane %v581_v7, 5  ;;  %v552_v22 = vsel %vm3996_vm3, %v547_v8, %v551_v60  ;;  %v589_v24 = vrot.slane %v587_v11, 5  ;;  %v3738_v60 = vld [vmem:[%s4626_s3 + $0x160] sm:$0xff]   ;;  %v4153_v3 = vld [vmem:[%s3944_s15 + $0x4c] sm:$0xf] }
  0x32   : > { %3273 = vmatprep.subr.bf16.mxu1 %v3733_v52  ;;  %v593_v25 = vrot.slane %v591_v14, 4  ;;  %v597_v27 = vshll.u32 %v4098_v4, 16  ;;  %v4119_v31 = vcombine.low %v542_v58, %v552_v22  ;;  %v566_v32 = vsel %vm3996_vm3, %v561_v63, %v565_v56  ;;  %v4156_v6 = vld [vmem:[%s3944_s15 + $0x50] sm:$0x1]  ;;  %v3739_v14 = vld [vmem:[%s4626_s3 + $0x28] sm:$0xff]  }
  0x33   : > { %3400 = vmatpush3.bf16.msra.mxu0 %v3732_v48  ;;  %v576_v34 = vsel %vm3996_vm3, %v571_v16, %v575_v10  ;;  %v584_v35 = vor.u32 %v583_v19, %v580_v18  ;;  %v602_v44 = vshrl.u32 %v4108_v20, 16  ;;  %v605_v46 = vshll.u32 %v4108_v20, 16  ;;  %v3740_v16 = vld [vmem:[%s4626_s3 + $0x168] sm:$0xff]  }
  0x34   : > { %v4128_v38 = vcombine.low %v566_v32, %v576_v34  ;;  %3401 = vmatprep.subr.bf16.mxu0 %v3734_v62  ;;  %v594_v39 = vor.u32 %v593_v25, %v589_v24  ;;  %v599_v40 = vrot.slane %v597_v27, 5  ;;  %3385 = vmatprep.mubr.bf16.mxu0 %v4119_v31  ;;  %v611_v48 = vshll.u32 %v4117_v28, 16  ;;  %v4172_v25 = vld [vmem:[%s3944_s15 + $0x54] sm:$0xf]  ;;  %v4176_v34 = vld [vmem:[%s3944_s15 + $0x58] sm:$0xf] }
  0x35   : > { %3258 = vmatmul.mubr.bf16.gmra.mrb[4].mxu1 %v4119_v31  ;;  %v585_v45 = vrot.slane %v584_v35, 4  ;;  %v615_v50 = vshrl.u32 %v4117_v28, 16  ;;  %v604_v55 = vrot.slane %v602_v44, 4  ;;  %v621_v56 = vshll.u32 %v4126_v36, 16 }
  0x36   : > { %3386 = vmatmul.mubr.bf16.gmra.mrb[4].mxu0 %v4128_v38  ;;  %3274 = vmatpush3.bf16.msra.mxu1 %v3733_v52  ;;  %v595_v51 = vrot.slane %v594_v39, 4  ;;  %v607_v58 = vrot.slane %v605_v46, 5  ;;  %v613_v59 = vrot.slane %v611_v48, 5  ;;  %v626_v7 = vshrl.u32 %v4147_v61, 16 }
  0x37   : > { %3402 = vmatpush3.bf16.msra.mxu0 %v3734_v62  ;;  %3275 = vmatprep.subr.bf16.mxu1 %v3735_v17  ;;  %v590_v57 = vsel %vm3996_vm3, %v585_v45, %v589_v24  ;;  %v617_v52 = vrot.slane %v615_v50, 4  ;;  %v623_v62 = vrot.slane %v621_v56, 5  ;;  %v629_v63 = vshll.u32 %v4147_v61, 16  ;;  %v4180_v45 = vld [vmem:[%s3944_s15 + $0x5c] sm:$0x1]  ;;  %s4461_s15 = scalar_lea.vmem %s4625_s2, %s2758_s18 }
  0x38   : > { %3403 = vmatprep.subr.bf16.mxu0 %v3736_v23  ;;  %3261 = vmatprep.mubr.bf16.mxu1 %v4128_v38  ;;  %v600_v2 = vsel %vm3996_vm3, %v595_v51, %v599_v40  ;;  %v608_v10 = vor.u32 %v607_v58, %v604_v55  ;;  %v628_v18 = vrot.slane %v626_v7, 4  ;;  %v635_v19 = vshll.u32 %v4153_v3, 16  ;;  %v3741_v51 = vld [vmem:[%s4626_s3 + $0x30] sm:$0xff]  }
  0x39   : > { %v4159_v8 = vcombine.low %v590_v57, %v600_v2  ;;  %v618_v11 = vor.u32 %v617_v52, %v613_v59  ;;  %v639_v22 = vshrl.u32 %v4153_v3, 16  ;;  %v645_v24 = vshll.u32 %v4156_v6, 16 }
  0x3a   : > { %3276 = vmatpush3.bf16.msra.mxu1 %v3735_v17  ;;  %v609_v27 = vrot.slane %v608_v10, 4  ;;  %v631_v17 = vrot.slane %v629_v63, 5  ;;  %v1498_v35 = vshrl.u32 %v4172_v25, 16  ;;  %v637_v39 = vrot.slane %v635_v19, 5 }
  0x3b   : > { %3404 = vmatpush3.bf16.msra.mxu0 %v3736_v23  ;;  %3389 = vmatprep.mubr.bf16.mxu0 %v4159_v8  ;;  %v619_v32 = vrot.slane %v618_v11, 4  ;;  %v641_v40 = vrot.slane %v639_v22, 4  ;;  %v647_v44 = vrot.slane %v645_v24, 5  ;;  %v1501_v46 = vshll.u32 %v4172_v25, 16  ;;  %v3743_v22 = vld [vmem:[%s4626_s3 + $0x38] sm:$0xff]  }
  0x3c   : > { %3277 = vmatprep.subr.bf16.mxu1 %v3737_v54  ;;  %3405 = vmatprep.subr.bf16.mxu0 %v3738_v60  ;;  %v614_v23 = vsel %vm3996_vm3, %v609_v27, %v613_v59  ;;  %v632_v50 = vor.u32 %v631_v17, %v628_v18  ;;  %v1500_v55 = vrot.slane %v1498_v35, 4  ;;  %v1507_v52 = vshll.u32 %v4176_v34, 16 }
  0x3d   : > { %3262 = vmatmul.mubr.bf16.gmra.mrb[8].mxu1 %v4159_v8  ;;  %v624_v48 = vsel %vm3996_vm3, %v619_v32, %v623_v62  ;;  %v642_v57 = vor.u32 %v641_v40, %v637_v39  ;;  %v1503_v58 = vrot.slane %v1501_v46, 5  ;;  %v1511_v59 = vshrl.u32 %v4176_v34, 16 }
  0x3e   : > { %v4191_v56 = vcombine.low %v614_v23, %v624_v48  ;;  %3278 = vmatpush3.bf16.msra.mxu1 %v3737_v54  ;;  %v633_v2 = vrot.slane %v632_v50, 4  ;;  %v1517_v62 = vshll.u32 %v4180_v45, 16  ;;  %v2812_v7 = vrot.slane %v3958_v12, 9  ;;  %v3742_v54 = vld [vmem:[%s4626_s3 + $0x170] sm:$0xff]  }
  0x3f   : > { %3406 = vmatpush3.bf16.msra.mxu0 %v3738_v60  ;;  %3279 = vmatprep.subr.bf16.mxu1 %v3739_v14  ;;  %v643_v10 = vrot.slane %v642_v57, 4  ;;  %v1504_v11 = vor.u32 %v1503_v58, %v1500_v55  ;;  %v1509_v63 = vrot.slane %v1507_v52, 5  ;;  %v1056_v60 = vrot.slane %v3961_v13, 5  ;;  %v3746_v57 = vld [vmem:[%s4626_s3 + $0x80] sm:$0xff]  }
  0x40   : > { %3390 = vmatmul.mubr.bf16.gmra.mrb[8].mxu0 %v4191_v56  ;;  %3407 = vmatprep.subr.bf16.mxu0 %v3740_v16  ;;  %v638_v18 = vsel %vm3996_vm3, %v633_v2, %v637_v39  ;;  %v1513_v19 = vrot.slane %v1511_v59, 4  ;;  %v1059_v27 = vrot.slane %v3967_v15, 5  ;;  %v2795_v35 = vcombine.low %v4003_v41, %v4005_v42  ;;  %v3744_v15 = vld [vmem:[%s4626_s3 + $0x178] sm:$0xff]  }
  0x41   : > { %3265 = vmatprep.mubr.bf16.mxu1 %v4191_v56  ;;  %v648_v32 = vsel %vm3996_vm3, %v643_v10, %v647_v44  ;;  %v1505_v17 = vrot.slane %v1504_v11, 4  ;;  %v1058_v39 = vrot.slane %v1056_v60, 4  ;;  %v1519_v23 = vrot.slane %v1517_v62, 5 }
  0x42   : > { %3280 = vmatpush3.bf16.msra.mxu1 %v3739_v14  ;;  %v4219_v40 = vcombine.low %v638_v18, %v648_v32  ;;  %v1514_v46 = vor.u32 %v1513_v19, %v1509_v63  ;;  %v1063_v48 = vrot.slane %v3986_v30, 5  ;;  %v1057_v14 = vsel %vm4210_vm6, %v2812_v7, %v1056_v60 }
  0x43   : > { %3408 = vmatpush3.bf16.msra.mxu0 %v3740_v16  ;;  %3281 = vmatprep.subr.bf16.mxu1 %v3741_v51  ;;  %v1060_v44 = vsel %vm4210_vm6, %v1058_v39, %v1059_v27  ;;  %v1066_v16 = vrot.slane %v4014_v49, 5  ;;  %v1510_v50 = vsel %vm3996_vm3, %v1505_v17, %v1509_v63  ;;  %v2813_v58 = vrot.slane %v3983_v29, 9  ;;  %v3747_v49 = vld [vmem:[%s4626_s3 + $0x180] sm:$0xff]   ;;  %v3749_v27 = vld [vmem:[%s4626_s3 + $0x188] sm:$0xff]  }
  0x44   : > { %3409 = vmatprep.subr.bf16.mxu0 %v3742_v54  ;;  %3393 = vmatprep.mubr.bf16.mxu0 %v4219_v40  ;;  %v1515_v55 = vrot.slane %v1514_v46, 4  ;;  %v1070_v52 = vrot.slane %v4036_v5, 5  ;;  %v4244_v59 = vcombine.low %v1057_v14, %v1060_v44  ;;  %v2814_v62 = vrot.slane %v4033_v0, 9  ;;  %v3752_v46 = vld [vmem:[%s4626_s3 + $0x90] sm:$0xff]  }
  0x45   : > { %3266 = vmatmul.mubr.bf16.gmra.mrb[12].mxu1 %v4219_v40  ;;  %v1073_v11 = vrot.slane %v4040_v9, 5  ;;  %v4252_v63 = vcombine.low %v3958_v12, %v3961_v13  ;;  %v1064_v60 = vsel %vm4210_vm6, %v2813_v58, %v1063_v48  ;;  %v3748_v12 = vld [vmem:[%s4626_s3 + $0x88] sm:$0xff]   ;;  %v1077_v13 = vrot.slane %v4055_v26, 5  ;;  %v3755_v58 = vld [vmem:[%s4626_s3 + $0x198] sm:$0xff]  }
  0x46   : > { %3282 = vmatpush3.bf16.msra.mxu1 %v3741_v51  ;;  %3285 = vmatprep.mubr.bf16.mxu1 %v2795_v35  ;;  %v1520_v2 = vsel %vm3996_vm3, %v1515_v55, %v1519_v23  ;;  %v1065_v51 = vrot.slane %v1063_v48, 4  ;;  %v1072_v10 = vrot.slane %v1070_v52, 4  ;;  %v1084_v18 = vrot.slane %v4093_v1, 5 }
  0x47   : > { %3410 = vmatpush3.bf16.msra.mxu0 %v3742_v54  ;;  %3283 = vmatprep.subr.bf16.mxu1 %v3743_v22  ;;  %v4247_v7 = vcombine.low %v1510_v50, %v1520_v2  ;;  %v4257_v54 = vcombine.low %v3983_v29, %v3986_v30  ;;  %v1071_v29 = vsel %vm4210_vm6, %v2814_v62, %v1070_v52  ;;  %v2815_v17 = vrot.slane %v4048_v21, 9 }
  0x48   : > { %3411 = vmatprep.subr.bf16.mxu0 %v3744_v15  ;;  %v1067_v9 = vsel %vm4210_vm6, %v1065_v51, %v1066_v16  ;;  %v1074_v30 = vsel %vm4210_vm6, %v1072_v10, %v1073_v11  ;;  %v4276_v19 = vcombine.low %v4172_v25, %v4176_v34  ;;  %v1079_v35 = vrot.slane %v1077_v13, 4 }
  0x49   : > { %3394 = vmatmul.mubr.bf16.gmra.mrb[12].mxu0 %v4247_v7  ;;  %v4284_v32 = vcombine.low %v1071_v29, %v1074_v30  ;;  %v1080_v39 = vrot.slane %v4060_v33, 5  ;;  %v2816_v23 = vrot.slane %v4090_v53, 9  ;;  %v1086_v48 = vrot.slane %v1084_v18, 4 }
  0x4a   : > { %3284 = vmatpush3.bf16.msra.mxu1 %v3743_v22  ;;  %3413 = vmatprep.mubr.bf16.mxu0 %v4244_v59  ;;  %v4278_v22 = vcombine.low %v1064_v60, %v1067_v9  ;;  %v4295_v14 = vcombine.low %v4033_v0, %v4036_v5  ;;  %v4300_v44 = vcombine.low %v4048_v21, %v4055_v26  ;;  %v1091_v33 = vrot.slane %v4117_v28, 5  ;;  %v3754_v0 = vld [vmem:[%s4626_s3 + $0x98] sm:$0xff]   ;;  %v3753_v5 = vld [vmem:[%s4626_s3 + $0x190] sm:$0xff]  }
  0x4b   : > { %3412 = vmatpush3.bf16.msra.mxu0 %v3744_v15  ;;  %3301 = vmatprep.subr.bf16.mxu1 %v3746_v57  ;;  %v1087_v15 = vrot.slane %v4098_v4, 5  ;;  %v1078_v16 = vsel %vm4210_vm6, %v2815_v17, %v1077_v13  ;;  %v1081_v4 = vsel %vm4210_vm6, %v1079_v35, %v1080_v39  ;;  %v1085_v21 = vsel %vm4210_vm6, %v2816_v23, %v1084_v18  ;;  %v3761_v18 = vld [vmem:[%s4626_s3 + $0x1a8] sm:$0xff]  }
  0x4c   : > { %3429 = vmatprep.subr.bf16.mxu0 %v3747_v49  ;;  %v1098_v50 = vrot.slane %v4153_v3, 5  ;;  %v2817_v55 = vrot.slane %v4108_v20, 9  ;;  %v1093_v52 = vrot.slane %v1091_v33, 4  ;;  %v1094_v2 = vrot.slane %v4126_v36, 5  ;;  %v3760_v36 = vld [vmem:[%s4626_s3 + $0xa8] sm:$0xff]  }
  0x4d   : > { %3286 = vmatmul.mubr.bf16.vlgmr.msra.gmra.mrb[0].mxu1 %v4252_v63  ;;  %v1088_v26 = vsel %vm4210_vm6, %v1086_v48, %v1087_v15  ;;  %v2818_v62 = vrot.slane %v4147_v61, 9  ;;  %v1049_v10 = vrot.slane %v4005_v42, 5  ;;  %v1101_v60 = vrot.slane %v4156_v6, 5  ;;  %v3766_v15 = vld [vmem:[%s4626_s3 + $0xb8] sm:$0xff]  }
  0x4e   : > { %3302 = vmatpush3.bf16.msra.mxu1 %v3746_v57  ;;  %3289 = vmatprep.mubr.bf16.mxu1 %v4257_v54  ;;  %v4321_v57 = vcombine.low %v1078_v16, %v1081_v4  ;;  %v4331_v51 = vcombine.low %v1085_v21, %v1088_v26  ;;  %v1100_v11 = vrot.slane %v1098_v50, 4  ;;  %v1052_v9 = vrot.slane %v4007_v43, 5  ;;  %v3768_v16 = vld [vmem:[%s4626_s3 + $0xc0] sm:$0xff]   ;;  %v3770_v4 = vld [vmem:[%s4626_s3 + $0xc8] sm:$0xff]   ;;  %v3772_v21 = vld [vmem:[%s4626_s3 + $0xd0] sm:$0xff]  }
  0x4f   : > { %3303 = vmatprep.subr.bf16.mxu1 %v3748_v12  ;;  %v4347_v42 = vcombine.low %v4108_v20, %v4117_v28  ;;  %v1706_v13 = vrot.slane %v4176_v34, 5  ;;  %v1092_v43 = vsel %vm4210_vm6, %v2817_v55, %v1091_v33  ;;  %v1051_v6 = vrot.slane %v1049_v10, 4  ;;  %v3759_v20 = vld [vmem:[%s4626_s3 + $0x1a0] sm:$0xff]   ;;  %v3767_v33 = vld [vmem:[%s4626_s3 + $0x1b8] sm:$0xff]   ;;  %v3773_v26 = vld [vmem:[%s4626_s3 + $0x1d0] sm:$0xff]  }
  0x50   : > { %v1099_v28 = vsel %vm4210_vm6, %v2818_v62, %v1098_v50  ;;  %v1102_v34 = vsel %vm4210_vm6, %v1100_v11, %v1101_v60  ;;  %v1709_v30 = vrot.slane %v4180_v45, 5  ;;  %v4383_v45 = vcombine.low %v4147_v61, %v4153_v3  ;;  %v3765_v61 = vld [vmem:[%s4626_s3 + $0x1b0] sm:$0xff]   ;;  %v3775_v50 = vld [vmem:[%s4626_s3 + $0x1d8] sm:$0xff]   ;;  %v3776_v55 = vld [vmem:[%s4626_s3 + $0xe0] sm:$0xff]  }
  0x51   : > { %3414 = vmatmul.mubr.bf16.vlgmr.msra.gmra.mrb[0].mxu0 %v4278_v22  ;;  %v1708_v17 = vrot.slane %v1706_v13, 4  ;;  %v1053_v39 = vsel %vm4210_vm6, %v1051_v6, %v1052_v9  ;;  %v3781_v62 = vld [vmem:[%s4626_s3 + $0xf0] sm:$0xff]   ;;  %v406_v11 = vld [vmem:[%s4461_s15 + $0x4] sm:$0xf] }
  0x52   : > { %3304 = vmatpush3.bf16.msra.mxu1 %v3748_v12  ;;  %3430 = vmatpush3.bf16.msra.mxu0 %v3747_v49  ;;  %v3758_v49 = vld [vmem:[%s4626_s3 + $0xa0] sm:$0xff]   ;;  %v4339_v12 = vcombine.low %v4090_v53, %v4093_v1  ;;  %v1095_v53 = vsel %vm4210_vm6, %v1093_v52, %v1094_v2  ;;  %v2811_v1 = vrot.slane %v4003_v41, 9  ;;  %v2901_v41 = vrot.slane %v4172_v25, 9  ;;  %v3764_v25 = vld [vmem:[%s4626_s3 + $0xb0] sm:$0xff]   ;;  %v3779_v2 = vld [vmem:[%s4626_s3 + $0x1e8] sm:$0xff]  }
  0x53   : > { %3417 = vmatprep.mubr.bf16.mxu0 %v4284_v32  ;;  %3431 = vmatprep.subr.bf16.mxu0 %v3749_v27  ;;  %v4364_v29 = vcombine.low %v1092_v43, %v1095_v53  ;;  %v1710_v48 = vsel %vm4210_vm6, %v1708_v17, %v1709_v30  ;;  %v409_v52 = vstv %s408_s8  ;;  %v3782_v43 = vld [vmem:[%s4626_s3 + $0x1f0] sm:$0xff]   ;;  %v3785_v6 = vld [vmem:[%s4626_s3 + $0x200] sm:$0xff]  }
  0x54   : > { %3305 = vmatprep.subr.bf16.mxu1 %v3752_v46  ;;  %v1050_v35 = vsel %vm4210_vm6, %v2811_v1, %v1049_v10  ;;  %v1707_v23 = vsel %vm4210_vm6, %v2901_v41, %v1706_v13  ;;  %v405_v10 = vld [vmem:[%s4461_s15] sm:$0xf]  ;;  %vm4472_vm7 = vcmp.eq.s32.totalorder %v409_v52, 1  ;;  %v3783_v13 = vld [vmem:[%s4626_s3 + $0xf8] sm:$0xff]  }
  0x55   : > { %3290 = vmatmul.mubr.bf16.gmra.mrb[4].mxu1 %v4295_v14  ;;  %v4399_v3 = vcombine.low %v1707_v23, %v1710_v48  ;;  %v4480_v9 = vsel %vm4472_vm7, %v405_v10, 0  ;;  %v3784_v1 = vld [vmem:[%s4626_s3 + $0x1f8] sm:$0xff]   ;;  %v3789_v17 = vld [vmem:[%s4626_s3 + $0x220] sm:$0xff]  }
  0x56   : > { %3306 = vmatpush3.bf16.msra.mxu1 %v3752_v46  ;;  %3293 = vmatprep.mubr.bf16.mxu1 %v4300_v44  ;;  %v2835_v46 = vcombine.low %v1050_v35, %v1053_v39  ;;  %v3792_v48 = vld [vmem:[%s4626_s3 + $0x238] sm:$0xff]   ;;  %v2977_v37 = vrot.slane %v4480_v9, 9 }
  0x57   : > { %3432 = vmatpush3.bf16.msra.mxu0 %v3749_v27  ;;  %3307 = vmatprep.subr.bf16.mxu1 %v3754_v0  ;;  %v4372_v27 = vcombine.low %v1099_v28, %v1102_v34  ;;  %v2081_v28 = vshll.u32 %v4480_v9, 16 }
  0x58   : > { %3433 = vmatprep.subr.bf16.mxu0 %v3753_v5 }
  0x59   : > { %3418 = vmatmul.mubr.bf16.gmra.mrb[4].mxu0 %v4321_v57  ;;  %v2083_v30 = vrot.slane %v2081_v28, 5 }
  0x5a   : > { %3308 = vmatpush3.bf16.msra.mxu1 %v3754_v0  ;;  %3421 = vmatprep.mubr.bf16.mxu0 %v4331_v51  ;;  %v3769_v0 = vld [vmem:[%s4626_s3 + $0x1c0] sm:$0xff]  }
  0x5b   : > { %3434 = vmatpush3.bf16.msra.mxu0 %v3753_v5  ;;  %3309 = vmatprep.subr.bf16.mxu1 %v3758_v49  ;;  %v3771_v5 = vld [vmem:[%s4626_s3 + $0x1c8] sm:$0xff]  }
  0x5c   : > { %3435 = vmatprep.subr.bf16.mxu0 %v3755_v58 }
  0x5d   : > { %3294 = vmatmul.mubr.bf16.gmra.mrb[8].mxu1 %v4339_v12 }
  0x5e   : > { %3310 = vmatpush3.bf16.msra.mxu1 %v3758_v49  ;;  %3297 = vmatprep.mubr.bf16.mxu1 %v4347_v42  ;;  %v3777_v49 = vld [vmem:[%s4626_s3 + $0x1e0] sm:$0xff]  }
  0x5f   : > { %3436 = vmatpush3.bf16.msra.mxu0 %v3755_v58  ;;  %3311 = vmatprep.subr.bf16.mxu1 %v3760_v36  ;;  %v3778_v58 = vld [vmem:[%s4626_s3 + $0xe8] sm:$0xff]  }
  0x60   : > { %3437 = vmatprep.subr.bf16.mxu0 %v3759_v20 }
  0x61   : > { %3422 = vmatmul.mubr.bf16.gmra.mrb[8].mxu0 %v4364_v29 }
  0x62   : > { %3312 = vmatpush3.bf16.msra.mxu1 %v3760_v36  ;;  %3425 = vmatprep.mubr.bf16.mxu0 %v4372_v27  ;;  %v4484_v36 = vsel %vm4472_vm7, %v406_v11, 0 }
  0x63   : > { %3438 = vmatpush3.bf16.msra.mxu0 %v3759_v20  ;;  %3313 = vmatprep.subr.bf16.mxu1 %v3764_v25  ;;  %v2943_v53 = vcombine.low %v4480_v9, %v4484_v36  ;;  %v3787_v20 = vld [vmem:[%s4626_s3 + $0x210] sm:$0xff]   ;;  %v2087_v34 = vshll.u32 %v4484_v36, 16 }
  0x64   : > { %3439 = vmatprep.subr.bf16.mxu0 %v3761_v18 }
  0x65   : > { %3298 = vmatmul.mubr.bf16.gmra.mrb[12].mxu1 %v4383_v45 }
  0x66   : > { %3314 = vmatpush3.bf16.msra.mxu1 %v3764_v25  ;;  %3317 = vmatprep.mubr.bf16.mxu1 %v2835_v46 }
  0x67   : > { %3440 = vmatpush3.bf16.msra.mxu0 %v3761_v18  ;;  %3315 = vmatprep.subr.bf16.mxu1 %v3766_v15  ;;  %v2089_v18 = vrot.slane %v2087_v34, 5 }
  0x68   : > { %3441 = vmatprep.subr.bf16.mxu0 %v3765_v61 }
  0x69   : > { %3426 = vmatmul.mubr.bf16.gmra.mrb[12].mxu0 %v4399_v3 }
  0x6a   : > { %3316 = vmatpush3.bf16.msra.mxu1 %v3766_v15  ;;  %3445 = vmatprep.mubr.bf16.mxu0 %v4257_v54 }
  0x6b   : > { %3442 = vmatpush3.bf16.msra.mxu0 %v3765_v61  ;;  %3333 = vmatprep.subr.bf16.mxu1 %v3768_v16 }
  0x6c   : > { %3443 = vmatprep.subr.bf16.mxu0 %v3767_v33 }
  0x6d   : > { %3318 = vmatmul.mubr.bf16.vlgmr.msra.gmra.mrb[0].mxu1 %v4244_v59  ;;  %v3774_v59 = vld [vmem:[%s4626_s3 + $0xd8] sm:$0xff]  }
  0x6e   : > { %3334 = vmatpush3.bf16.msra.mxu1 %v3768_v16  ;;  %3321 = vmatprep.mubr.bf16.mxu1 %v4278_v22 }
  0x6f   : > { %3444 = vmatpush3.bf16.msra.mxu0 %v3767_v33  ;;  %3335 = vmatprep.subr.bf16.mxu1 %v3770_v4 }
  0x70   : > { %3461 = vmatprep.subr.bf16.mxu0 %v3769_v0 }
  0x72   : > { %3446 = vmatmul.mubr.bf16.vlgmr.msra.gmra.mrb[0].mxu0 %v4295_v14  ;;  %3336 = vmatpush3.bf16.msra.mxu1 %v3770_v4 }
  0x73   : > { %3462 = vmatpush3.bf16.msra.mxu0 %v3769_v0  ;;  %3449 = vmatprep.mubr.bf16.mxu0 %v4300_v44 }
  0x74   : > { %3463 = vmatprep.subr.bf16.mxu0 %v3771_v5  ;;  %3337 = vmatprep.subr.bf16.mxu1 %v3772_v21 }
  0x75   : > { %3322 = vmatmul.mubr.bf16.gmra.mrb[4].mxu1 %v4284_v32 }
  0x76   : > { %3338 = vmatpush3.bf16.msra.mxu1 %v3772_v21  ;;  %3325 = vmatprep.mubr.bf16.mxu1 %v4321_v57 }
  0x77   : > { %3464 = vmatpush3.bf16.msra.mxu0 %v3771_v5  ;;  %3339 = vmatprep.subr.bf16.mxu1 %v3774_v59 }
  0x78   : > { %3465 = vmatprep.subr.bf16.mxu0 %v3773_v26 }
  0x7a   : > { %3450 = vmatmul.mubr.bf16.gmra.mrb[4].mxu0 %v4339_v12  ;;  %3340 = vmatpush3.bf16.msra.mxu1 %v3774_v59 }
  0x7b   : > { %3466 = vmatpush3.bf16.msra.mxu0 %v3773_v26  ;;  %3453 = vmatprep.mubr.bf16.mxu0 %v4347_v42 }
  0x7c   : > { %3467 = vmatprep.subr.bf16.mxu0 %v3775_v50  ;;  %3341 = vmatprep.subr.bf16.mxu1 %v3776_v55 }
  0x7d   : > { %3326 = vmatmul.mubr.bf16.gmra.mrb[8].mxu1 %v4331_v51 }
  0x7e   : > { %3342 = vmatpush3.bf16.msra.mxu1 %v3776_v55  ;;  %3329 = vmatprep.mubr.bf16.mxu1 %v4364_v29 }
  0x7f   : > { %3468 = vmatpush3.bf16.msra.mxu0 %v3775_v50  ;;  %3343 = vmatprep.subr.bf16.mxu1 %v3778_v58 }
  0x80   : > { %3469 = vmatprep.subr.bf16.mxu0 %v3777_v49 }
  0x82   : > { %3454 = vmatmul.mubr.bf16.gmra.mrb[8].mxu0 %v4383_v45  ;;  %3344 = vmatpush3.bf16.msra.mxu1 %v3778_v58 }
  0x83   : > { %3470 = vmatpush3.bf16.msra.mxu0 %v3777_v49  ;;  %3457 = vmatprep.mubr.bf16.mxu0 %v4276_v19 }
  0x84   : > { %3471 = vmatprep.subr.bf16.mxu0 %v3779_v2  ;;  %3345 = vmatprep.subr.bf16.mxu1 %v3781_v62 }
  0x85   : > { %3330 = vmatmul.mubr.bf16.gmra.mrb[12].mxu1 %v4372_v27 }
  0x86   : > { %3346 = vmatpush3.bf16.msra.mxu1 %v3781_v62  ;;  %3349 = vmatprep.mubr.bf16.mxu1 %v4252_v63  ;;  %v3786_v63 = vld [vmem:[%s4626_s3 + $0x208] sm:$0xff]  }
  0x87   : > { %3472 = vmatpush3.bf16.msra.mxu0 %v3779_v2  ;;  %3347 = vmatprep.subr.bf16.mxu1 %v3783_v13 }
  0x88   : > { %3473 = vmatprep.subr.bf16.mxu0 %v3782_v43 }
  0x8a   : > { %3458 = vmatmul.mubr.bf16.gmra.mrb[12].mxu0 %v2943_v53  ;;  %3348 = vmatpush3.bf16.msra.mxu1 %v3783_v13 }
  0x8b   : > { %3474 = vmatpush3.bf16.msra.mxu0 %v3782_v43  ;;  %3477 = vmatprep.mubr.bf16.mxu0 %v4073_v47  ;;  %v2078_v47 = vshrl.u32 %v4480_v9, 16 }
  0x8c   : > { %3475 = vmatprep.subr.bf16.mxu0 %v3784_v1  ;;  %3525 = vmatprep.subr.bf16.mxu1 %v3785_v6 }
  0x8d   : > { %3350 = vmatmul.mubr.bf16.vlgmr.msra.gmra.mrb[0].mxu1 %v4257_v54  ;;  %v2091_v54 = vshrl.u32 %v4484_v36, 16  ;;  %v2080_v41 = vrot.slane %v2078_v47, 4 }
  0x8e   : > { %3533 = vmatpush3.bf16.msra.mxu1 %v3785_v6  ;;  %3353 = vmatprep.mubr.bf16.mxu1 %v4295_v14  ;;  %v3788_v14 = vld [vmem:[%s4626_s3 + $0x218] sm:$0xff]  }
  0x8f   : > { %3476 = vmatpush3.bf16.msra.mxu0 %v3784_v1  ;;  %3526 = vmatprep.subr.bf16.mxu1 %v3786_v63 }
  0x90   : > { %3493 = vmatprep.subr.bf16.mxu0 %v3785_v6 }
  0x92   : > { %3478 = vmatmul.mubr.bf16.vlgmr.msra.gmra.mrb[0].mxu0 %v4119_v31  ;;  %3534 = vmatpush3.bf16.msra.mxu1 %v3786_v63  ;;  %v407_v31 = vld [vmem:[%s4461_s15 + $0x8] sm:$0x1] }
  0x93   : > { %3494 = vmatpush3.bf16.msra.mxu0 %v3785_v6  ;;  %3481 = vmatprep.mubr.bf16.mxu0 %v4128_v38  ;;  %v2093_v38 = vrot.slane %v2091_v54, 4  ;;  %v413_v35 = vsel %vm4472_vm7, %v407_v31, 0 }
  0x94   : > { %3495 = vmatprep.subr.bf16.mxu0 %v3786_v63  ;;  %3527 = vmatprep.subr.bf16.mxu1 %v3787_v20  ;;  %v2097_v25 = vshll.u32 %v413_v35, 16  ;;  %v2289_v61 = vrot.slane %v413_v35, 5 }
  0x95   : > { %3354 = vmatmul.mubr.bf16.gmra.mrb[4].mxu1 %v4300_v44  ;;  %v3790_v44 = vld [vmem:[%s4626_s3 + $0x228] sm:$0xff]   ;;  %v2094_v39 = vor.u32 %v2093_v38, %v2089_v18 }
  0x96   : > { %3535 = vmatpush3.bf16.msra.mxu1 %v3787_v20  ;;  %3357 = vmatprep.mubr.bf16.mxu1 %v4339_v12  ;;  %v2084_v12 = vor.u32 %v2083_v30, %v2080_v41  ;;  %v2099_v23 = vrot.slane %v2097_v25, 5 }
  0x97   : > { %3496 = vmatpush3.bf16.msra.mxu0 %v3786_v63  ;;  %3528 = vmatprep.subr.bf16.mxu1 %v3788_v14  ;;  %v2095_v46 = vrot.slane %v2094_v39, 4  ;;  %v4572_v63 = vld [vmem:[%s4627_s4] ss:$0 sm:$0xff] }
  0x98   : > { %3497 = vmatprep.subr.bf16.mxu0 %v3787_v20 }
  0x9a   : > { %3482 = vmatmul.mubr.bf16.gmra.mrb[4].mxu0 %v4159_v8  ;;  %3536 = vmatpush3.bf16.msra.mxu1 %v3788_v14  ;;  %v2085_v8 = vrot.slane %v2084_v12, 4 }
  0x9b   : > { %3498 = vmatpush3.bf16.msra.mxu0 %v3787_v20  ;;  %3485 = vmatprep.mubr.bf16.mxu0 %v4191_v56  ;;  %v3791_v56 = vld [vmem:[%s4626_s3 + $0x230] sm:$0xff]  }
  0x9c   : > { %3499 = vmatprep.subr.bf16.mxu0 %v3788_v14  ;;  %3529 = vmatprep.subr.bf16.mxu1 %v3789_v17 }
  0x9d   : > { %3358 = vmatmul.mubr.bf16.gmra.mrb[8].mxu1 %v4347_v42  ;;  %v2090_v42 = vsel %vm3996_vm3, %v2085_v8, %v2089_v18 }
  0x9e   : > { %3537 = vmatpush3.bf16.msra.mxu1 %v3789_v17  ;;  %3361 = vmatprep.mubr.bf16.mxu1 %v4383_v45  ;;  %v2100_v45 = vsel %vm3996_vm3, %v2095_v46, %v2099_v23 }
  0x9f   : > { %3500 = vmatpush3.bf16.msra.mxu0 %v3788_v14  ;;  %3530 = vmatprep.subr.bf16.mxu1 %v3790_v44  ;;  %v2968_v15 = vcombine.low %v2090_v42, %v2100_v45 }
  0xa0   : > { %3501 = vmatprep.subr.bf16.mxu0 %v3789_v17 }
  0xa2   : > { %3486 = vmatmul.mubr.bf16.gmra.mrb[8].mxu0 %v4219_v40  ;;  %3538 = vmatpush3.bf16.msra.mxu1 %v3790_v44  ;;  %v2286_v40 = vrot.slane %v4484_v36, 5 }
  0xa3   : > { %3502 = vmatpush3.bf16.msra.mxu0 %v3789_v17  ;;  %3489 = vmatprep.mubr.bf16.mxu0 %v4247_v7 }
  0xa4   : > { %3503 = vmatprep.subr.bf16.mxu0 %v3790_v44  ;;  %3531 = vmatprep.subr.bf16.mxu1 %v3791_v56  ;;  %v2288_v7 = vrot.slane %v2286_v40, 4 }
  0xa5   : > { %3362 = vmatmul.mubr.bf16.gmra.mrb[12].mxu1 %v4276_v19  ;;  %v2287_v19 = vsel %vm4210_vm6, %v2977_v37, %v2286_v40 }
  0xa6   : > { %3539 = vmatpush3.bf16.msra.mxu1 %v3791_v56  ;;  %3517 = vmatprep.mubr.bf16.mxu1 %v4364_v29  ;;  %v2290_v29 = vsel %vm4210_vm6, %v2288_v7, %v2289_v61 }
  0xa7   : > { %3504 = vmatpush3.bf16.msra.mxu0 %v3790_v44  ;;  %3532 = vmatprep.subr.bf16.mxu1 %v3792_v48  ;;  %v2994_v33 = vcombine.low %v2287_v19, %v2290_v29 }
  0xa8   : > { %3505 = vmatprep.subr.bf16.mxu0 %v3791_v56 }
  0xaa   : > { %3490 = vmatmul.mubr.bf16.gmra.mrb[12].mxu0 %v2968_v15  ;;  %3540 = vmatpush3.bf16.msra.mxu1 %v3792_v48 }
  0xab   : > { %3506 = vmatpush3.bf16.msra.mxu0 %v3791_v56  ;;  %3509 = vmatprep.mubr.bf16.mxu0 %v4278_v22 }
  0xac   : > { %3507 = vmatprep.subr.bf16.mxu0 %v3792_v48 }
  0xad   : > { %3518 = vmatmul.mubr.bf16.vlgmr.msra.gmra.mrb[16].mxu1 %v4372_v27 }
  0xae   : > { %3521 = vmatprep.mubr.bf16.mxu1 %v4399_v3 }
  0xaf   : > { %3508 = vmatpush3.bf16.msra.mxu0 %v3792_v48 }
  0xb2   : > { %3510 = vmatmul.mubr.bf16.vlgmr.msra.gmra.mrb[0].mxu0 %v4284_v32 }
  0xb3   : > { %3513 = vmatprep.mubr.bf16.mxu0 %v4321_v57 }
  0xb5   : > { %3522 = vmatmul.mubr.bf16.gmra.mrb[20].mxu1 %v2994_v33 }
  0xba   : > { %3514 = vmatmul.mubr.bf16.gmra.mrb[4].mxu0 %v4331_v51 }
 0x160   : > { %v3351_v22 = vpop.f32.mrb[0].mxu1 }
 0x161   : > { %v1418_v16 = vpop.f32.mrb[1].mxu1 }
 0x162   : > { %v3352_v27 = vpop.f32.mrb[2].mxu1 }
 0x163   : > { %v1421_v4 = vpop.f32.mrb[3].mxu1 }
 0x168   : > { %v4561_v3 = vpop.f32.mrb[4].mxu1 }
 0x169   : > { %v4563_v0 = vpop.f32.mrb[5].mxu1 }
 0x16a   : > { %v4565_v5 = vpop.f32.mrb[6].mxu1 }
 0x16b   : > { %v4567_v24 = vpop.f32.mrb[7].mxu1 }
 0x170   : > { %v3359_v21 = vpop.f32.mrb[8].mxu1 }
 0x171   : > { %v1450_v59 = vpop.f32.mrb[9].mxu1 }
 0x172   : > { %v3360_v32 = vpop.f32.mrb[10].mxu1 }
 0x173   : > { %v1453_v26 = vpop.f32.mrb[11].mxu1 }
 0x175   : > { %v3487_v57 = vpop.f32.mrb[8].mxu0 }
 0x176   : > { %v3549_v50 = vadd.f32 %v3487_v57, %v3359_v21  ;;  %v2236_v55 = vpop.f32.mrb[9].mxu0 }
 0x177   : > { %v3551_v51 = vadd.f32 %v2236_v55, %v1450_v59  ;;  %v3488_v58 = vpop.f32.mrb[10].mxu0 }
 0x178   : > { %v3553_v49 = vadd.f32 %v3488_v58, %v3360_v32  ;;  %v2239_v52 = vpop.f32.mrb[11].mxu0  ;;  %v3363_v2 = vpop.f32.mrb[12].mxu1 }
 0x179   : > { %v3555_v62 = vadd.f32 %v2239_v52, %v1453_v26  ;;  %v1466_v10 = vpop.f32.mrb[13].mxu1 }
 0x17a   : > { %v3364_v11 = vpop.f32.mrb[14].mxu1 }
 0x17b   : > { %v1469_v60 = vpop.f32.mrb[15].mxu1 }
 0x17d   : > { %v3491_v9 = vpop.f32.mrb[12].mxu0 }
 0x17e   : > { %v3557_v36 = vadd.f32 %v3491_v9, %v3363_v2  ;;  %v2252_v13 = vpop.f32.mrb[13].mxu0 }
 0x17f   : > { %v3559_v43 = vadd.f32 %v2252_v13, %v1466_v10  ;;  %v3492_v53 = vpop.f32.mrb[14].mxu0 }
 0x180   : > { %v3561_v1 = vadd.f32 %v3492_v53, %v3364_v11  ;;  %v2255_v6 = vpop.f32.mrb[15].mxu0  ;;  %v3519_v20 = vpop.f32.mrb[16].mxu1 }
 0x181   : > { %v3563_v47 = vadd.f32 %v2255_v6, %v1469_v60  ;;  %v3550_v28 = vadd.f32 %v3549_v50, %v3519_v20  ;;  %v2426_v54 = vpop.f32.mrb[17].mxu1 }
 0x182   : > { %v3552_v14 = vadd.f32 %v3551_v51, %v2426_v54  ;;  %v3520_v34 = vpop.f32.mrb[18].mxu1 }
 0x183   : > { %v2490_v31 = vadd.f32 %v3550_v28, %v4572_v63  ;;  %v3554_v41 = vadd.f32 %v3553_v49, %v3520_v34  ;;  %v2429_v30 = vpop.f32.mrb[19].mxu1 }
 0x184   : > { %v2488_v18 = vadd.f32 %v3552_v14, %v4572_v63  ;;  %v3556_v38 = vadd.f32 %v3555_v62, %v2429_v30 }
 0x185   : > { %v3511_v17 = vpop.f32.mrb[0].mxu0  ;;  %v2491_v35 = vadd.f32 %v3554_v41, %v4572_v63  ;;  %v2506_v25 = vmax.f32 %v2490_v31, 0.0 }
 0x186   : > { %v3541_v44 = vadd.f32 %v3511_v17, %v3351_v22  ;;  %v2394_v12 = vpop.f32.mrb[1].mxu0  ;;  %v2489_v39 = vadd.f32 %v3556_v38, %v4572_v63  ;;  %v2504_v42 = vmax.f32 %v2488_v18, 0.0 }
 0x187   : > { %v3542_v8 = vadd.f32 %v2394_v12, %v1418_v16  ;;  %v3512_v46 = vpop.f32.mrb[2].mxu0  ;;  %v2507_v23 = vmax.f32 %v2491_v35, 0.0 }
 0x188   : > { %v2482_v56 = vadd.f32 %v3541_v44, %v4572_v63  ;;  %v3543_v45 = vadd.f32 %v3512_v46, %v3352_v27  ;;  %v2397_v48 = vpop.f32.mrb[3].mxu0  ;;  %v2505_v15 = vmax.f32 %v2489_v39, 0.0  ;;  %v3523_v40 = vpop.f32.mrb[20].mxu1 }
 0x189   : > { %v2480_v37 = vadd.f32 %v3542_v8, %v4572_v63  ;;  %v3074_v7 = vpack.c.bf16 %v2507_v23, %v2506_v25  ;;  %v3544_v61 = vadd.f32 %v2397_v48, %v1421_v4  ;;  %v3558_v19 = vadd.f32 %v3557_v36, %v3523_v40  ;;  %v2442_v29 = vpop.f32.mrb[21].mxu1 }
 0x18a   : > { %v2483_v33 = vadd.f32 %v3543_v45, %v4572_v63  ;;  %v3069_v22 = vpack.c.bf16 %v2505_v15, %v2504_v42  ;;  %v3560_v16 = vadd.f32 %v3559_v43, %v2442_v29  ;;  %v3524_v21 = vpop.f32.mrb[22].mxu1  ;;  %v2498_v57 = vmax.f32 %v2482_v56, 0.0 }
 0x18b   : > { %3090 = vst [vmem:[%s4582_s9 + $0x28] sm:$0xff] %v3074_v7   ;;  %v2481_v59 = vadd.f32 %v3544_v61, %v4572_v63  ;;  %v2494_v27 = vadd.f32 %v3558_v19, %v4572_v63  ;;  %v3562_v32 = vadd.f32 %v3561_v1, %v3524_v21  ;;  %v2445_v26 = vpop.f32.mrb[23].mxu1  ;;  %v2496_v51 = vmax.f32 %v2480_v37, 0.0 }
 0x18c   : > { %v2499_v50 = vmax.f32 %v2483_v33, 0.0  ;;  %3089 = vst [vmem:[%s4582_s9 + $0x20] sm:$0xff] %v3069_v22   ;;  %v2492_v4 = vadd.f32 %v3560_v16, %v4572_v63  ;;  %v3564_v55 = vadd.f32 %v3563_v47, %v2445_v26 }
 0x18d   : > { %v2497_v58 = vmax.f32 %v2481_v59, 0.0  ;;  %v3515_v49 = vpop.f32.mrb[4].mxu0  ;;  %v2495_v52 = vadd.f32 %v3562_v32, %v4572_v63  ;;  %v2510_v9 = vmax.f32 %v2494_v27, 0.0 }
 0x18e   : > { %v3054_v2 = vpack.c.bf16 %v2499_v50, %v2498_v57  ;;  %v3545_v62 = vadd.f32 %v3515_v49, %v4561_v3  ;;  %v2410_v10 = vpop.f32.mrb[5].mxu0  ;;  %v2493_v11 = vadd.f32 %v3564_v55, %v4572_v63  ;;  %v2508_v1 = vmax.f32 %v2492_v4, 0.0 }
 0x18f   : > { %v3049_v60 = vpack.c.bf16 %v2497_v58, %v2496_v51  ;;  %v3546_v36 = vadd.f32 %v2410_v10, %v4563_v0  ;;  %v3516_v13 = vpop.f32.mrb[6].mxu0  ;;  %v2511_v43 = vmax.f32 %v2495_v52, 0.0 }
 0x190   : > { %3086 = vst [vmem:[%s4582_s9 + $0x8] sm:$0xff] %v3054_v2   ;;  %v2486_v53 = vadd.f32 %v3545_v62, %v4572_v63  ;;  %v3547_v6 = vadd.f32 %v3516_v13, %v4565_v5  ;;  %v2413_v20 = vpop.f32.mrb[7].mxu0  ;;  %v2509_v47 = vmax.f32 %v2493_v11, 0.0 }
 0x191   : > { %3050 = vst [vmem:[%s4582_s9] sm:$0xff] %v3049_v60   ;;  %v2484_v3 = vadd.f32 %v3546_v36, %v4572_v63  ;;  %v3084_v28 = vpack.c.bf16 %v2511_v43, %v2510_v9  ;;  %v3548_v54 = vadd.f32 %v2413_v20, %v4567_v24 }
 0x192   : > { %v2487_v0 = vadd.f32 %v3547_v6, %v4572_v63  ;;  %v3079_v14 = vpack.c.bf16 %v2509_v47, %v2508_v1  ;;  %v2502_v31 = vmax.f32 %v2486_v53, 0.0 }
 0x193   : > { %3092 = vst [vmem:[%s4582_s9 + $0x38] sm:$0xff] %v3084_v28   ;;  %v2485_v34 = vadd.f32 %v3548_v54, %v4572_v63  ;;  %v2500_v5 = vmax.f32 %v2484_v3, 0.0 }
 0x194   : > { %v2503_v41 = vmax.f32 %v2487_v0, 0.0  ;;  %3091 = vst [vmem:[%s4582_s9 + $0x30] sm:$0xff] %v3079_v14  }
 0x195   : > { %v2501_v30 = vmax.f32 %v2485_v34, 0.0 }
 0x196   : > { %v3064_v18 = vpack.c.bf16 %v2503_v41, %v2502_v31 }
 0x197   : > { %v3059_v38 = vpack.c.bf16 %v2501_v30, %v2500_v5 }
 0x198   : > { %3088 = vst [vmem:[%s4582_s9 + $0x18] sm:$0xff] %v3064_v18  }
 0x199   : > { %3087 = vst [vmem:[%s4582_s9 + $0x10] sm:$0xff] %v3059_v38  }
 0x19a PF: > { %s15_s22 = sadd.s32 1, %s3831_s22   ;;  %s4636_s18 = smov %s3823_s20 }
 0x19b   : > { %p12_p12 = scmp.ge.s32.totalorder %s15_s22, 6   ;;  %s4637_s19 = smov %s3827_s21 }
 0x19c   : > { %s4638_s20 = smov %s4641_s23  ;;  %s4639_s21 = smov %s4645_s24 }
 0x19d   :  { %14 = sbr.rel (!%p12_p12) target bundleno = 3 (0x3), region = 84 }

// kernel: pool_forward.4
= control target key start
LH: loop header
LB: loop body
LE: loop exit
PB: predicated region body
PF: predicated region fallthrough
CT: control target
= control target key end

     0   :  { %s4589_s24 = smov 0   ;;  %s4591_s25 = smov 0   ;;  %s5477_s0 = inlined_call_operand.vmem [shape: bf16[2,16,18,128], index: 0, kind: input, shape index: {}, may-alias: {0,1,2}]   ;;  %s5478_s1 = inlined_call_operand.vmem [shape: bf16[2,16,18,128], index: 1, kind: input, shape index: {}, may-alias: {0,1,2}]   ;;  %s5479_s2 = inlined_call_operand.vmem [shape: bf16[2,16,18,128], index: 2, kind: input, shape index: {}, may-alias: {0,1,2}]   ;;  %s5480_s3 = inlined_call_operand.vmem [shape: bf16[2,16,18,128], index: 3, kind: input, shape index: {}]   ;;  %s5481_s4 = inlined_call_operand.vmem [shape: bf16[9,128,128], index: 4, kind: input, shape index: {}]   ;;  %s5482_s5 = inlined_call_operand.vmem [shape: bf16[128,128], index: 5, kind: input, shape index: {}]   ;;  %s5483_s6 = inlined_call_operand.vmem [shape: f32[1,128], index: 6, kind: input, shape index: {}]   ;;  %s5484_s7 = inlined_call_operand.vmem [shape: bf16[2,16,18,128], index: 7, kind: output, shape index: {}]  }
   0x1   :  { %s4593_s26 = smov 0   ;;  %s4595_s27 = smov 0  }
   0x2   :  { %s4597_s28 = smov 0  }
   0x3 LB: > { %s26_s29 = sadd.s32 1, %s4539_s26  ;;  %s29_s30 = sadd.s32 1, %s4543_s27  ;;  %s4547_s28 = sphi %s4597_s28, %s17_s28   ;;  %s4543_s27 = sphi %s4595_s27, %s5495_s27   ;;  %s4539_s26 = sphi %s4593_s26, %s5494_s26   ;;  %s4535_s25 = sphi %s4591_s25, %s5493_s25   ;;  %s4531_s24 = sphi %s4589_s24, %s5492_s24  }
   0x4   : > { %p27_p0 = scmp.ge.s32.totalorder %s26_s29, 2  ;;  %p3395_p1 = scmp.ge.s32.totalorder %s4547_s28, 1 }
   0x5   : > { %p341_p2 = scmp.lt.s32.totalorder %s4547_s28, 5 }
   0x6   : > { %s5497_s29 = smov (%p27_p0, %s26_s29), 0  ;;  %s5499_s30 = smov (!%p27_p0, %s29_s30), %s4543_s27 }
   0x7   : > { %p342_p3 = pnand %p3395_p1, %p341_p2  ;;  %p31_p4 = scmp.ge.s32.totalorder %s5499_s30, 2 }
   0x8   : > { %v4421_v0 = vld [vmem:[%s5481_s4 + $0x40] sm:$0xff] (!%p342_p3)   ;;  %s4625_s10 = sshll.u32 (!%p342_p3), %s4531_s24, 3  ;;  %p420_p5 = scmp.lt.s32.totalorder (!%p342_p3), %s4535_s25, 1  ;;  %v4423_v2 = vld [vmem:[%s5481_s4 + $0x48] sm:$0xff] (!%p342_p3)   ;;  %v4425_v4 = vld [vmem:[%s5481_s4 + $0x50] sm:$0xff] (!%p342_p3)   ;;  %vm1369_vm0 = vcmask (!%p342_p3), 1042432  }
   0x9   : > { %s5501_s30 = smov (%p31_p4, %s5499_s30), 0  ;;  %345 = sbr.rel (%p342_p3) target bundleno = 436 (0x1b4), region = 48 }
   0xa   : > { %v4422_v1 = vld [vmem:[%s5481_s4 + $0x140] sm:$0xff] (!%p342_p3)   ;;  %3913 = vmatprep.subr.bf16.mxu1 (!%p342_p3), %v4421_v0  ;;  %p422_p6 = scmp.lt.s32.totalorder (!%p342_p3), %s4625_s10, 15  ;;  %v4424_v3 = vld [vmem:[%s5481_s4 + $0x148] sm:$0xff] (!%p342_p3)   ;;  %v4426_v5 = vld [vmem:[%s5481_s4 + $0x150] sm:$0xff] (!%p342_p3)   ;;  %s3399_s8 = sadd.s32 (!%p342_p3), 4294967295, %s4625_s10  ;;  %vm1370_vm2 = vcmask (!%p342_p3), 1046532  }
   0xb   : > { %4073 = vmatprep.subr.bf16.mxu0 (!%p342_p3), %v4422_v1  ;;  %3914 = vmatpush3.bf16.msra.mxu1 (!%p342_p3), %v4421_v0  ;;  %v4427_v6 = vld [vmem:[%s5481_s4 + $0x58] sm:$0xff] (!%p342_p3)   ;;  %p432_p7 = scmp.gt.s32.totalorder (!%p342_p3), %s3399_s8, 0  ;;  %p3400_p8 = scmp.lt.s32.totalorder (!%p342_p3), %s3399_s8, 15  ;;  %v4429_v8 = vld [vmem:[%s5481_s4 + $0x60] sm:$0xff] (!%p342_p3)   ;;  %v4431_v10 = vld [vmem:[%s5481_s4 + $0x68] sm:$0xff] (!%p342_p3)   ;;  %vm3030_vm8 = vcmask (!%p342_p3), 1040384  }
   0xc   : > { %4074 = vmatpush3.bf16.msra.mxu0 (!%p342_p3), %v4422_v1  ;;  %3915 = vmatprep.subr.bf16.mxu1 (!%p342_p3), %v4423_v2  ;;  %v4428_v7 = vld [vmem:[%s5481_s4 + $0x158] sm:$0xff] (!%p342_p3)   ;;  %v4430_v9 = vld [vmem:[%s5481_s4 + $0x160] sm:$0xff] (!%p342_p3)   ;;  %p722_p9 = scmp.gt.s32.totalorder (!%p342_p3), %s4531_s24, 0  ;;  %vm511_vm1 = vsmask.f32 (!%p342_p3), 3328  ;;  %v4432_v11 = vld [vmem:[%s5481_s4 + $0x168] sm:$0xff] (!%p342_p3)  }
   0xd   : > { %4075 = vmatprep.subr.bf16.mxu0 (!%p342_p3), %v4424_v3  ;;  %v4433_v14 = vld [vmem:[%s5481_s4 + $0x70] sm:$0xff] (!%p342_p3)   ;;  %vm4687_vm3 = vmor (!%p342_p3), %vm1369_vm0, %vm1370_vm2  ;;  %v4435_v33 = vld [vmem:[%s5481_s4 + $0x78] sm:$0xff] (!%p342_p3)   ;;  %vm512_vm5 = vsmask.f32 (!%p342_p3), 7440  ;;  %s3705_s16 = sadd.s32 (!%p342_p3), 8, %s4625_s10  ;;  %p732_p11 = scmp.lt.s32.totalorder (!%p342_p3), %s4531_s24, 1 }
   0xe   : > { %v4434_v21 = vld [vmem:[%s5481_s4 + $0x170] sm:$0xff] (!%p342_p3)   ;;  %v4436_v47 = vld [vmem:[%s5481_s4 + $0x178] sm:$0xff] (!%p342_p3)   ;;  %v4736_v57 = vld [vmem:[%s5481_s4] sm:$0xff] (!%p342_p3)   ;;  %p4960_p10 = scmp.lt.s32.totalorder (!%p342_p3), %s3705_s16, 15 }
   0xf   : > { %3916 = vmatpush3.bf16.msra.mxu1 (!%p342_p3), %v4423_v2  ;;  %vm4740_vm6 = vmor (!%p342_p3), %vm511_vm1, %vm512_vm5  ;;  %v4438_v63 = vld [vmem:[%s5481_s4 + $0x180] sm:$0xff] (!%p342_p3)  }
  0x10   : > { %s5503_s25 = smov (!%p420_p5, %s4535_s25), 1  ;;  %4076 = vmatpush3.bf16.msra.mxu0 %v4424_v3  ;;  %3917 = vmatprep.subr.bf16.mxu1 %v4425_v4  ;;  %s5505_s8 = smov (!%p432_p7, %s3399_s8), 0 }
  0x11   : > { %s423_s19 = scalar_select %p422_p6, %s4625_s10, 15  ;;  %4077 = vmatprep.subr.bf16.mxu0 %v4426_v5 }
  0x12   : > { %s4644_s22 = smul.u32 48, %s5503_s25  ;;  %s5507_s8 = smov (!%p3400_p8, %s5505_s8), 15 }
  0x13   : > { %s4377_s23 = smul.u32 3, %s423_s19  ;;  %3918 = vmatpush3.bf16.msra.mxu1 %v4425_v4  ;;  %s5509_s16 = smov (!%p4960_p10, %s3705_s16), 15 }
  0x14   : > { %4078 = vmatpush3.bf16.msra.mxu0 %v4426_v5  ;;  %3919 = vmatprep.subr.bf16.mxu1 %v4427_v6  ;;  %s5511_s16 = smov (!%p4960_p10, %s5509_s16), 15 }
  0x15   : > { %s426_s12 = sadd.s32 %s4644_s22, %s4377_s23  ;;  %4079 = vmatprep.subr.bf16.mxu0 %v4428_v7  ;;  %s4379_s23 = smul.u32 3, %s5507_s8 }
  0x16   : > { %s4654_s25 = sshll.u32 %s426_s12, 2  ;;  %s4380_s8 = smul.u32 3, %s5511_s16 }
  0x17   : > { %s4666_s21 = scalar_lea.vmem %s5477_s0, %s4654_s25  ;;  %3920 = vmatpush3.bf16.msra.mxu1 %v4427_v6  ;;  %s440_s15 = sadd.s32 %s4379_s23, %s4644_s22 }
  0x18   : > { %4080 = vmatpush3.bf16.msra.mxu0 %v4428_v7  ;;  %3921 = vmatprep.subr.bf16.mxu1 %v4429_v8  ;;  %s726_s12 = scalar_select %p722_p9, 1, 0  ;;  %v4677_v12 = vld [vmem:[%s4666_s21] sm:$0xf]  ;;  %v4680_v13 = vld [vmem:[%s4666_s21 + $0x4] sm:$0xf] }
  0x19   : > { %4081 = vmatprep.subr.bf16.mxu0 %v4430_v9  ;;  %s3405_s17 = sshll.u32 %s440_s15, 2  ;;  %v744_v16 = vld [vmem:[%s4666_s21 + $0x8] sm:$0x1]  ;;  %v3464_v18 = vrot.slane %v4677_v12, 9  ;;  %v1381_v19 = vrot.slane %v4680_v13, 5  ;;  %v807_v20 = vshrl.u32 %v4677_v12, 16  ;;  %s457_s23 = sadd.s32 %s4380_s8, %s4644_s22 }
  0x1a   : > { %v727_v15 = vstv %s726_s12  ;;  %s442_s9 = scalar_lea.vmem %s5478_s1, %s3405_s17  ;;  %v826_v22 = vshll.u32 %v744_v16, 16  ;;  %v1384_v23 = vrot.slane %v744_v16, 5  ;;  %v810_v24 = vshll.u32 %v4677_v12, 16  ;;  %v4720_v41 = vld [vmem:[%s4666_s21 + $0xc] sm:$0xf]  ;;  %s3410_s12 = sshll.u32 %s457_s23, 2 }
  0x1b   : > { %3922 = vmatpush3.bf16.msra.mxu1 %v4429_v8  ;;  %vm728_vm4 = vcmp.eq.s32.totalorder %v727_v15, 1  ;;  %v723_v25 = vld [vmem:[%s442_s9] sm:$0xf]  ;;  %v724_v26 = vld [vmem:[%s442_s9 + $0x4] sm:$0xf]  ;;  %v1382_v28 = vsel %vm4687_vm3, %v3464_v18, %v1381_v19  ;;  %v1383_v32 = vrot.slane %v1381_v19, 4  ;;  %s5078_s17 = scalar_lea.vmem %s5479_s2, %s3410_s12  ;;  %s5223_s13 = scalar_lea.vmem %s5480_s3, %s4654_s25 }
  0x1c   : > { %4082 = vmatpush3.bf16.msra.mxu0 %v4430_v9  ;;  %3923 = vmatprep.subr.bf16.mxu1 %v4431_v10  ;;  %v725_v27 = vld [vmem:[%s442_s9 + $0x8] sm:$0x1]  ;;  %v4703_v29 = vsel %vm728_vm4, %v723_v25, 0  ;;  %v4705_v30 = vsel %vm728_vm4, %v724_v26, 0  ;;  %v809_v40 = vrot.slane %v807_v20, 4  ;;  %v812_v50 = vrot.slane %v810_v24, 5  ;;  %s5404_s18 = scalar_lea.vmem %s5484_s7, %s4654_s25 }
  0x1d   : > { %4083 = vmatprep.subr.bf16.mxu0 %v4432_v11  ;;  %v4707_v31 = vsel %vm728_vm4, %v725_v27, 0  ;;  %v783_v34 = vshrl.u32 %v4703_v29, 16  ;;  %v786_v35 = vshll.u32 %v4703_v29, 16  ;;  %v792_v36 = vshll.u32 %v4705_v30, 16  ;;  %v4723_v46 = vld [vmem:[%s4666_s21 + $0x10] sm:$0xf] }
  0x1e   : > { %v796_v37 = vshrl.u32 %v4705_v30, 16  ;;  %v802_v38 = vshll.u32 %v4707_v31, 16  ;;  %v1385_v39 = vsel %vm4687_vm3, %v1383_v32, %v1384_v23  ;;  %v816_v51 = vshll.u32 %v4680_v13, 16  ;;  %v747_v52 = vld [vmem:[%s4666_s21 + $0x14] sm:$0x1] }
  0x1f   : > { %3924 = vmatpush3.bf16.msra.mxu1 %v4431_v10  ;;  %v785_v42 = vrot.slane %v783_v34, 4  ;;  %v788_v43 = vrot.slane %v786_v35, 5  ;;  %v794_v44 = vrot.slane %v792_v36, 5  ;;  %v4728_v49 = vcombine.low %v1382_v28, %v1385_v39  ;;  %v750_v19 = vld [vmem:[%s4666_s21 + $0x20] sm:$0x1]  ;;  %v4439_v34 = vld [vmem:[%s5481_s4 + $0x8] sm:$0xff]  }
  0x20   : > { %4084 = vmatpush3.bf16.msra.mxu0 %v4432_v11  ;;  %3925 = vmatprep.subr.bf16.mxu1 %v4433_v14  ;;  %v798_v45 = vrot.slane %v796_v37, 4  ;;  %v804_v48 = vrot.slane %v802_v38, 5  ;;  %v820_v55 = vshrl.u32 %v4680_v13, 16  ;;  %v828_v56 = vrot.slane %v826_v22, 5  ;;  %v4758_v11 = vld [vmem:[%s4666_s21 + $0x18] sm:$0xf] }
  0x21   : > { %4085 = vmatprep.subr.bf16.mxu0 %v4434_v21  ;;  %v789_v53 = vor.u32 %v788_v43, %v785_v42  ;;  %4089 = vmatprep.mubr.bf16.mxu0 %v4728_v49  ;;  %v813_v59 = vor.u32 %v812_v50, %v809_v40  ;;  %v818_v60 = vrot.slane %v816_v51, 5  ;;  %v3465_v61 = vrot.slane %v4720_v41, 9  ;;  %v4440_v22 = vld [vmem:[%s5481_s4 + $0x188] sm:$0xff]   ;;  %v4775_v28 = vld [vmem:[%s4666_s21 + $0x1c] sm:$0xf] }
  0x22   : > { %v799_v54 = vor.u32 %v798_v45, %v794_v44  ;;  %v1388_v62 = vrot.slane %v4723_v46, 5  ;;  %v822_v2 = vrot.slane %v820_v55, 4  ;;  %v1391_v3 = vrot.slane %v747_v52, 5  ;;  %v4788_v43 = vld [vmem:[%s4666_s21 + $0x24] sm:$0xf] }
  0x23   : > { %3926 = vmatpush3.bf16.msra.mxu1 %v4433_v14  ;;  %v790_v0 = vrot.slane %v789_v53, 4  ;;  %v814_v4 = vrot.slane %v813_v59, 4  ;;  %v831_v10 = vshrl.u32 %v4720_v41, 16  ;;  %v834_v18 = vshll.u32 %v4720_v41, 16  ;;  %v4795_v50 = vld [vmem:[%s4666_s21 + $0x28] sm:$0xf] }
  0x24   : > { %4086 = vmatpush3.bf16.msra.mxu0 %v4434_v21  ;;  %3927 = vmatprep.subr.bf16.mxu1 %v4435_v33  ;;  %v800_v1 = vrot.slane %v799_v54, 4  ;;  %v1389_v5 = vsel %vm4687_vm3, %v3465_v61, %v1388_v62  ;;  %v1390_v6 = vrot.slane %v1388_v62, 4  ;;  %v823_v9 = vor.u32 %v822_v2, %v818_v60  ;;  %v4798_v51 = vld [vmem:[%s4666_s21 + $0x2c] sm:$0x1]  ;;  %s736_s9 = scalar_select %p732_p11, 1, 0 }
  0x25   : > { %4087 = vmatprep.subr.bf16.mxu0 %v4436_v47  ;;  %v795_v7 = vsel %vm4740_vm6, %v790_v0, %v794_v44  ;;  %v819_v15 = vsel %vm4740_vm6, %v814_v4, %v818_v60  ;;  %v833_v23 = vrot.slane %v831_v10, 4  ;;  %v840_v24 = vshll.u32 %v4723_v46, 16  ;;  %v4444_v10 = vld [vmem:[%s5481_s4 + $0x198] sm:$0xff]   ;;  %v499_v17 = vld [vmem:[%s5223_s13 + $0x30] sm:$0xf] }
  0x26   : > { %v805_v8 = vsel %vm4740_vm6, %v800_v1, %v804_v48  ;;  %v1392_v16 = vsel %vm4687_vm3, %v1390_v6, %v1391_v3  ;;  %v824_v20 = vrot.slane %v823_v9, 4  ;;  %v836_v25 = vrot.slane %v834_v18, 5 }
  0x27   : > { %3928 = vmatpush3.bf16.msra.mxu1 %v4435_v33  ;;  %v3431_v14 = vcombine.low %v795_v7, %v805_v8  ;;  %v4767_v21 = vcombine.low %v1389_v5, %v1392_v16  ;;  %v844_v26 = vshrl.u32 %v4723_v46, 16  ;;  %v850_v27 = vshll.u32 %v747_v52, 16 }
  0x28   : > { %4088 = vmatpush3.bf16.msra.mxu0 %v4436_v47  ;;  %3945 = vmatprep.subr.bf16.mxu1 %v4736_v57  ;;  %v3466_v32 = vrot.slane %v4758_v11, 9  ;;  %v829_v33 = vsel %vm4740_vm6, %v824_v20, %v828_v56  ;;  %v842_v35 = vrot.slane %v840_v24, 5  ;;  %v1395_v36 = vrot.slane %v4775_v28, 5  ;;  %v4442_v56 = vld [vmem:[%s5481_s4 + $0x190] sm:$0xff]   ;;  %v4443_v24 = vld [vmem:[%s5481_s4 + $0x18] sm:$0xff]  }
  0x29   : > { %3929 = vmatprep.mubr.bf16.mxu1 %v3431_v14  ;;  %4105 = vmatprep.subr.bf16.mxu0 %v4438_v63  ;;  %v1398_v37 = vrot.slane %v750_v19, 5  ;;  %v4784_v38 = vcombine.low %v819_v15, %v829_v33  ;;  %v837_v39 = vor.u32 %v836_v25, %v833_v23  ;;  %v846_v40 = vrot.slane %v844_v26, 4  ;;  %v4830_v20 = vld [vmem:[%s4666_s21 + $0x30] sm:$0xf] }
  0x2a   : > { %v852_v42 = vrot.slane %v850_v27, 5  ;;  %v1396_v44 = vsel %vm4687_vm3, %v3466_v32, %v1395_v36  ;;  %v1397_v45 = vrot.slane %v1395_v36, 4  ;;  %v855_v47 = vshrl.u32 %v4758_v11, 16 }
  0x2b   : > { %4090 = vmatmul.mubr.bf16.vlgmr.msra.gmra.mrb[0].mxu0 %v4767_v21  ;;  %v858_v48 = vshll.u32 %v4758_v11, 16  ;;  %3930 = vmatmul.mubr.bf16.vlgmr.msra.gmra.mrb[0].mxu1 %v4784_v38  ;;  %v838_v52 = vrot.slane %v837_v39, 4  ;;  %v847_v53 = vor.u32 %v846_v40, %v842_v35  ;;  %v864_v54 = vshll.u32 %v4775_v28, 16 }
  0x2c   : > { %4106 = vmatpush3.bf16.msra.mxu0 %v4438_v63  ;;  %v868_v55 = vshrl.u32 %v4775_v28, 16  ;;  %3946 = vmatpush3.bf16.msra.mxu1 %v4736_v57  ;;  %v1399_v59 = vsel %vm4687_vm3, %v1397_v45, %v1398_v37  ;;  %v857_v60 = vrot.slane %v855_v47, 4  ;;  %v874_v62 = vshll.u32 %v750_v19, 16  ;;  %v4441_v63 = vld [vmem:[%s5481_s4 + $0x10] sm:$0xff]  }
  0x2d   : > { %4107 = vmatprep.subr.bf16.mxu0 %v4440_v22  ;;  %v860_v61 = vrot.slane %v858_v48, 5  ;;  %3947 = vmatprep.subr.bf16.mxu1 %v4439_v34  ;;  %v843_v0 = vsel %vm4740_vm6, %v838_v52, %v842_v35  ;;  %v848_v1 = vrot.slane %v847_v53, 4  ;;  %v4814_v2 = vcombine.low %v1396_v44, %v1399_v59  ;;  %v756_v35 = vld [vmem:[%s4666_s21 + $0x38] sm:$0x1]  ;;  %v4852_v48 = vld [vmem:[%s4666_s21 + $0x34] sm:$0xf] }
  0x2e   : > { %v866_v3 = vrot.slane %v864_v54, 5  ;;  %v870_v4 = vrot.slane %v868_v55, 4  ;;  %v876_v5 = vrot.slane %v874_v62, 5  ;;  %v3467_v6 = vrot.slane %v4788_v43, 9  ;;  %v4446_v52 = vld [vmem:[%s5481_s4 + $0x1a0] sm:$0xff]  }
  0x2f   : > { %v861_v57 = vor.u32 %v860_v61, %v857_v60  ;;  %v853_v7 = vsel %vm4740_vm6, %v848_v1, %v852_v42  ;;  %4093 = vmatprep.mubr.bf16.mxu0 %v4814_v2  ;;  %v1402_v8 = vrot.slane %v4795_v50, 5  ;;  %v1405_v9 = vrot.slane %v4798_v51, 5  ;;  %v4864_v59 = vld [vmem:[%s4666_s21 + $0x3c] sm:$0xf] }
  0x30   : > { %4108 = vmatpush3.bf16.msra.mxu0 %v4440_v22  ;;  %v879_v14 = vshrl.u32 %v4788_v43, 16  ;;  %3948 = vmatpush3.bf16.msra.mxu1 %v4439_v34  ;;  %v4826_v15 = vcombine.low %v843_v0, %v853_v7  ;;  %v871_v18 = vor.u32 %v870_v4, %v866_v3  ;;  %v882_v19 = vshll.u32 %v4788_v43, 16  ;;  %v4870_v0 = vld [vmem:[%s4666_s21 + $0x40] sm:$0xf] }
  0x31   : > { %4109 = vmatprep.subr.bf16.mxu0 %v4442_v56  ;;  %v862_v16 = vrot.slane %v861_v57, 4  ;;  %3949 = vmatprep.subr.bf16.mxu1 %v4441_v63  ;;  %v1403_v22 = vsel %vm4687_vm3, %v3467_v6, %v1402_v8  ;;  %v1404_v23 = vrot.slane %v1402_v8, 4  ;;  %v888_v26 = vshll.u32 %v4795_v50, 16 }
  0x32   : > { %v881_v25 = vrot.slane %v879_v14, 4  ;;  %3933 = vmatprep.mubr.bf16.mxu1 %v4826_v15  ;;  %v872_v32 = vrot.slane %v871_v18, 4  ;;  %v884_v33 = vrot.slane %v882_v19, 5  ;;  %v892_v34 = vshrl.u32 %v4795_v50, 16  ;;  %v4447_v19 = vld [vmem:[%s5481_s4 + $0x28] sm:$0xff]  }
  0x33   : > { %v867_v27 = vsel %vm4740_vm6, %v862_v16, %v866_v3  ;;  %v1406_v36 = vsel %vm4687_vm3, %v1404_v23, %v1405_v9  ;;  %v890_v37 = vrot.slane %v888_v26, 5  ;;  %v898_v39 = vshll.u32 %v4798_v51, 16  ;;  %v4448_v26 = vld [vmem:[%s5481_s4 + $0x1a8] sm:$0xff]  }
  0x34   : > { %4110 = vmatpush3.bf16.msra.mxu0 %v4442_v56  ;;  %v3468_v40 = vrot.slane %v4830_v20, 9  ;;  %v877_v42 = vsel %vm4740_vm6, %v872_v32, %v876_v5  ;;  %v4849_v44 = vcombine.low %v1403_v22, %v1406_v36  ;;  %3950 = vmatpush3.bf16.msra.mxu1 %v4441_v63  ;;  %v885_v45 = vor.u32 %v884_v33, %v881_v25  ;;  %v4445_v56 = vld [vmem:[%s5481_s4 + $0x20] sm:$0xff]  }
  0x35   : > { %4111 = vmatprep.subr.bf16.mxu0 %v4444_v10  ;;  %v894_v47 = vrot.slane %v892_v34, 4  ;;  %v4857_v53 = vcombine.low %v867_v27, %v877_v42  ;;  %3951 = vmatprep.subr.bf16.mxu1 %v4443_v24  ;;  %v900_v51 = vrot.slane %v898_v39, 5  ;;  %v1409_v54 = vrot.slane %v4852_v48, 5  ;;  %v759_v5 = vld [vmem:[%s4666_s21 + $0x44] sm:$0x1] }
  0x36   : > { %v1412_v55 = vrot.slane %v756_v35, 5  ;;  %4094 = vmatmul.mubr.bf16.gmra.mrb[4].mxu0 %v4849_v44  ;;  %v886_v60 = vrot.slane %v885_v45, 4  ;;  %v903_v62 = vshrl.u32 %v4830_v20, 16  ;;  %v906_v63 = vshll.u32 %v4830_v20, 16 }
  0x37   : > { %v895_v61 = vor.u32 %v894_v47, %v890_v37  ;;  %3934 = vmatmul.mubr.bf16.gmra.mrb[4].mxu1 %v4857_v53  ;;  %v1410_v1 = vsel %vm4687_vm3, %v3468_v40, %v1409_v54  ;;  %v1411_v3 = vrot.slane %v1409_v54, 4  ;;  %v912_v57 = vshll.u32 %v4852_v48, 16  ;;  %v4449_v54 = vld [vmem:[%s5481_s4 + $0x30] sm:$0xff]  }
  0x38   : > { %4112 = vmatpush3.bf16.msra.mxu0 %v4444_v10  ;;  %v916_v4 = vshrl.u32 %v4852_v48, 16  ;;  %3952 = vmatpush3.bf16.msra.mxu1 %v4443_v24  ;;  %v891_v6 = vsel %vm4740_vm6, %v886_v60, %v890_v37  ;;  %v905_v8 = vrot.slane %v903_v62, 4  ;;  %v908_v9 = vrot.slane %v906_v63, 5  ;;  %v762_v62 = vld [vmem:[%s4666_s21 + $0x50] sm:$0x1] }
  0x39   : > { %v896_v7 = vrot.slane %v895_v61, 4  ;;  %4113 = vmatprep.subr.bf16.mxu0 %v4446_v52  ;;  %v1413_v10 = vsel %vm4687_vm3, %v1411_v3, %v1412_v55  ;;  %v914_v14 = vrot.slane %v912_v57, 5  ;;  %v922_v18 = vshll.u32 %v756_v35, 16  ;;  %3953 = vmatprep.subr.bf16.mxu1 %v4445_v56  ;;  %v4450_v35 = vld [vmem:[%s5481_s4 + $0x1b0] sm:$0xff]  }
  0x3a   : > { %v918_v16 = vrot.slane %v916_v4, 4  ;;  %v4887_v23 = vcombine.low %v1410_v1, %v1413_v10  ;;  %v909_v24 = vor.u32 %v908_v9, %v905_v8  ;;  %v3469_v25 = vrot.slane %v4864_v59, 9  ;;  %v4922_v4 = vld [vmem:[%s4666_s21 + $0x4c] sm:$0xf] }
  0x3b   : > { %v901_v22 = vsel %vm4740_vm6, %v896_v7, %v900_v51  ;;  %v924_v33 = vrot.slane %v922_v18, 5  ;;  %v1416_v34 = vrot.slane %v4870_v0, 5  ;;  %v1419_v37 = vrot.slane %v759_v5, 5  ;;  %v4907_v51 = vld [vmem:[%s4666_s21 + $0x48] sm:$0xf] }
  0x3c   : > { %v4893_v27 = vcombine.low %v891_v6, %v901_v22  ;;  %v919_v32 = vor.u32 %v918_v16, %v914_v14  ;;  %4114 = vmatpush3.bf16.msra.mxu0 %v4446_v52  ;;  %4097 = vmatprep.mubr.bf16.mxu0 %v4887_v23  ;;  %v910_v36 = vrot.slane %v909_v24, 4  ;;  %v927_v39 = vshrl.u32 %v4864_v59, 16  ;;  %v4451_v6 = vld [vmem:[%s5481_s4 + $0x38] sm:$0xff]   ;;  %v4937_v24 = vld [vmem:[%s4666_s21 + $0x54] sm:$0xf] }
  0x3d   : > { %3954 = vmatpush3.bf16.msra.mxu1 %v4445_v56  ;;  %v930_v40 = vshll.u32 %v4864_v59, 16  ;;  %v1417_v45 = vsel %vm4687_vm3, %v3469_v25, %v1416_v34  ;;  %v1418_v47 = vrot.slane %v1416_v34, 4  ;;  %v936_v52 = vshll.u32 %v4870_v0, 16  ;;  %4115 = vmatprep.subr.bf16.mxu0 %v4448_v26 }
  0x3e   : > { %3937 = vmatprep.mubr.bf16.mxu1 %v4893_v27  ;;  %v920_v42 = vrot.slane %v919_v32, 4  ;;  %3955 = vmatprep.subr.bf16.mxu1 %v4447_v19  ;;  %v915_v55 = vsel %vm4740_vm6, %v910_v36, %v914_v14  ;;  %v929_v56 = vrot.slane %v927_v39, 4  ;;  %v940_v61 = vshrl.u32 %v4870_v0, 16  ;;  %v4452_v14 = vld [vmem:[%s5481_s4 + $0x1b8] sm:$0xff]  }
  0x3f   : > { %v932_v60 = vrot.slane %v930_v40, 5  ;;  %v1420_v1 = vsel %vm4687_vm3, %v1418_v47, %v1419_v37  ;;  %v938_v3 = vrot.slane %v936_v52, 5  ;;  %v946_v57 = vshll.u32 %v759_v5, 16  ;;  %v4951_v40 = vld [vmem:[%s4666_s21 + $0x5c] sm:$0x1] }
  0x40   : > { %v925_v63 = vsel %vm4740_vm6, %v920_v42, %v924_v33  ;;  %4116 = vmatpush3.bf16.msra.mxu0 %v4448_v26  ;;  %v4929_v8 = vcombine.low %v1417_v45, %v1420_v1  ;;  %v942_v10 = vrot.slane %v940_v61, 4  ;;  %v3470_v16 = vrot.slane %v4907_v51, 9  ;;  %v4944_v33 = vld [vmem:[%s4666_s21 + $0x58] sm:$0xf]  ;;  %v4455_v42 = vld [vmem:[%s5481_s4 + $0x80] sm:$0xff]  }
  0x41   : > { %v4927_v7 = vcombine.low %v915_v55, %v925_v63  ;;  %3956 = vmatpush3.bf16.msra.mxu1 %v4447_v19  ;;  %v933_v9 = vor.u32 %v932_v60, %v929_v56  ;;  %4117 = vmatprep.subr.bf16.mxu0 %v4450_v35  ;;  %v948_v5 = vrot.slane %v946_v57, 5  ;;  %v1423_v18 = vrot.slane %v4922_v4, 5  ;;  %v4457_v63 = vld [vmem:[%s5481_s4 + $0x1c0] sm:$0xff]  }
  0x42   : > { %v1426_v22 = vrot.slane %v762_v62, 5  ;;  %3957 = vmatprep.subr.bf16.mxu1 %v4449_v54  ;;  %4098 = vmatmul.mubr.bf16.gmra.mrb[8].mxu0 %v4929_v8  ;;  %v943_v25 = vor.u32 %v942_v10, %v938_v3  ;;  %v951_v26 = vshrl.u32 %v4907_v51, 16  ;;  %v954_v32 = vshll.u32 %v4907_v51, 16 }
  0x43   : > { %3938 = vmatmul.mubr.bf16.gmra.mrb[8].mxu1 %v4927_v7  ;;  %v934_v19 = vrot.slane %v933_v9, 4  ;;  %v1424_v34 = vsel %vm4687_vm3, %v3470_v16, %v1423_v18  ;;  %v1425_v36 = vrot.slane %v1423_v18, 4  ;;  %v960_v37 = vshll.u32 %v4922_v4, 16 }
  0x44   : > { %v964_v39 = vshrl.u32 %v4922_v4, 16  ;;  %4118 = vmatpush3.bf16.msra.mxu0 %v4450_v35  ;;  %v944_v47 = vrot.slane %v943_v25, 4  ;;  %v953_v52 = vrot.slane %v951_v26, 4  ;;  %v956_v55 = vrot.slane %v954_v32, 5 }
  0x45   : > { %v939_v45 = vsel %vm4740_vm6, %v934_v19, %v938_v3  ;;  %3958 = vmatpush3.bf16.msra.mxu1 %v4449_v54  ;;  %4119 = vmatprep.subr.bf16.mxu0 %v4452_v14  ;;  %v1427_v35 = vsel %vm4687_vm3, %v1425_v36, %v1426_v22  ;;  %v962_v56 = vrot.slane %v960_v37, 5  ;;  %v970_v61 = vshll.u32 %v762_v62, 16 }
  0x46   : > { %v966_v60 = vrot.slane %v964_v39, 4  ;;  %3959 = vmatprep.subr.bf16.mxu1 %v4451_v6  ;;  %v949_v54 = vsel %vm4740_vm6, %v944_v47, %v948_v5  ;;  %v4971_v1 = vcombine.low %v1424_v34, %v1427_v35  ;;  %v957_v3 = vor.u32 %v956_v55, %v953_v52  ;;  %v4458_v52 = vld [vmem:[%s5481_s4 + $0x88] sm:$0xff]   ;;  %v4465_v55 = vld [vmem:[%s5481_s4 + $0x1d8] sm:$0xff]  }
  0x47   : > { %v3553_v57 = vrot.slane %v4937_v24, 9  ;;  %v4980_v9 = vcombine.low %v939_v45, %v949_v54  ;;  %v972_v10 = vrot.slane %v970_v61, 5  ;;  %v2031_v16 = vrot.slane %v4944_v33, 5  ;;  %v734_v54 = vld [vmem:[%s5078_s17 + $0x4] sm:$0xf] }
  0x48   : > { %v967_v62 = vor.u32 %v966_v60, %v962_v56  ;;  %4120 = vmatpush3.bf16.msra.mxu0 %v4452_v14  ;;  %4101 = vmatprep.mubr.bf16.mxu0 %v4971_v1  ;;  %v958_v18 = vrot.slane %v957_v3, 4  ;;  %v2034_v5 = vrot.slane %v4951_v40, 5  ;;  %v3447_v32 = vcombine.low %v4703_v29, %v4705_v30  ;;  %v4471_v60 = vld [vmem:[%s5481_s4 + $0x1e8] sm:$0xff]   ;;  %v4485_v61 = vld [vmem:[%s5481_s4 + $0xe0] sm:$0xff]  }
  0x49   : > { %3960 = vmatpush3.bf16.msra.mxu1 %v4451_v6  ;;  %3941 = vmatprep.mubr.bf16.mxu1 %v4980_v9  ;;  %v2032_v19 = vsel %vm4687_vm3, %v3553_v57, %v2031_v16  ;;  %v2033_v25 = vrot.slane %v2031_v16, 4  ;;  %v4998_v34 = vcombine.low %v4720_v41, %v4723_v46  ;;  %v5009_v39 = vcombine.low %v4677_v12, %v4680_v13  ;;  %v4459_v12 = vld [vmem:[%s5481_s4 + $0x1c8] sm:$0xff]   ;;  %v4475_v16 = vld [vmem:[%s5481_s4 + $0xb8] sm:$0xff]  }
  0x4a   : > { %v968_v22 = vrot.slane %v967_v62, 4  ;;  %3977 = vmatprep.subr.bf16.mxu1 %v4455_v42  ;;  %v963_v26 = vsel %vm4740_vm6, %v958_v18, %v962_v56  ;;  %4137 = vmatprep.subr.bf16.mxu0 %v4457_v63  ;;  %v1377_v45 = vrot.slane %v4707_v31, 5  ;;  %v5014_v41 = vcombine.low %v4758_v11, %v4775_v28  ;;  %v4461_v28 = vld [vmem:[%s5481_s4 + $0x90] sm:$0xff]   ;;  %v4469_v56 = vld [vmem:[%s5481_s4 + $0x1e0] sm:$0xff]   ;;  %v4476_v18 = vld [vmem:[%s5481_s4 + $0x1f8] sm:$0xff]  }
  0x4b   : > { %v2035_v6 = vsel %vm4687_vm3, %v2033_v25, %v2034_v5  ;;  %v3463_v46 = vrot.slane %v4703_v29, 9  ;;  %v1374_v47 = vrot.slane %v4705_v30, 5  ;;  %v5033_v11 = vcombine.low %v4788_v43, %v4795_v50  ;;  %v4463_v43 = vld [vmem:[%s5481_s4 + $0x1d0] sm:$0xff]   ;;  %v4477_v5 = vld [vmem:[%s5481_s4 + $0xc0] sm:$0xff]  }
  0x4c   : > { %v973_v14 = vsel %vm4740_vm6, %v968_v22, %v972_v10  ;;  %v5002_v37 = vcombine.low %v2032_v19, %v2035_v6  ;;  %v5054_v50 = vcombine.low %v4830_v20, %v4852_v48  ;;  %v5065_v35 = vcombine.low %v4864_v59, %v4870_v0  ;;  %v4467_v20 = vld [vmem:[%s5481_s4 + $0xa0] sm:$0xff]   ;;  %v4470_v0 = vld [vmem:[%s5481_s4 + $0xa8] sm:$0xff]   ;;  %v4474_v62 = vld [vmem:[%s5481_s4 + $0x1f0] sm:$0xff]  }
  0x4d   : > { %v5000_v36 = vcombine.low %v963_v26, %v973_v14  ;;  %v5029_v13 = vsel %vm4687_vm3, %v3463_v46, %v1374_v47  ;;  %v1376_v31 = vrot.slane %v1374_v47, 4  ;;  %v737_v48 = vstv %s736_s9  ;;  %v4478_v22 = vld [vmem:[%s5481_s4 + $0x200] sm:$0xff]   ;;  %v4479_v6 = vld [vmem:[%s5481_s4 + $0xc8] sm:$0xff]  }
  0x4e   : > { %4102 = vmatmul.mubr.bf16.gmra.mrb[12].mxu0 %v5002_v37  ;;  %v5084_v59 = vcombine.low %v4907_v51, %v4922_v4  ;;  %vm5092_vm7 = vcmp.eq.s32.totalorder %v737_v48, 1  ;;  %v5100_v51 = vcombine.low %v4937_v24, %v4944_v33  ;;  %v4473_v4 = vld [vmem:[%s5481_s4 + $0xb0] sm:$0xff]   ;;  %v1823_v19 = vshrl.u32 %v4937_v24, 16 }
  0x4f   : > { %3942 = vmatmul.mubr.bf16.gmra.mrb[12].mxu1 %v5000_v36  ;;  %4121 = vmatprep.mubr.bf16.mxu0 %v4998_v34  ;;  %v5039_v29 = vsel %vm4687_vm3, %v1376_v31, %v1377_v45  ;;  %v5113_v57 = vsel %vm5092_vm7, %v734_v54, 0  ;;  %v1826_v25 = vshll.u32 %v4937_v24, 16  ;;  %v1832_v26 = vshll.u32 %v4944_v33, 16  ;;  %v4482_v31 = vld [vmem:[%s5481_s4 + $0x210] sm:$0xff]  }
  0x50   : > { %3961 = vmatprep.mubr.bf16.mxu1 %v3447_v32  ;;  %v3487_v30 = vcombine.low %v5029_v13, %v5039_v29  ;;  %v1836_v14 = vshrl.u32 %v4944_v33, 16  ;;  %v4480_v32 = vld [vmem:[%s5481_s4 + $0x208] sm:$0xff]   ;;  %v1825_v24 = vrot.slane %v1823_v19, 4  ;;  %v2412_v13 = vshll.u32 %v5113_v57, 16 }
  0x51   : > { %v1828_v45 = vrot.slane %v1826_v25, 5  ;;  %v1834_v33 = vrot.slane %v1832_v26, 5  ;;  %v735_v29 = vld [vmem:[%s5078_s17 + $0x8] sm:$0x1] }
  0x52   : > { %v1838_v46 = vrot.slane %v1836_v14, 4  ;;  %v4487_v26 = vld [vmem:[%s5481_s4 + $0xe8] sm:$0xff]  }
  0x53   : > { %v4488_v14 = vld [vmem:[%s5481_s4 + $0x228] sm:$0xff]  }
  0x56   : > { %4122 = vmatmul.mubr.bf16.vlgmr.msra.gmra.mrb[0].mxu0 %v5014_v41 }
  0x57   : > { %3962 = vmatmul.mubr.bf16.vlgmr.msra.gmra.mrb[0].mxu1 %v5009_v39  ;;  %4138 = vmatpush3.bf16.msra.mxu0 %v4457_v63  ;;  %v733_v63 = vld [vmem:[%s5078_s17] sm:$0xf] }
  0x58   : > { %3978 = vmatpush3.bf16.msra.mxu1 %v4455_v42  ;;  %4139 = vmatprep.subr.bf16.mxu0 %v4459_v12  ;;  %v4464_v42 = vld [vmem:[%s5481_s4 + $0x98] sm:$0xff]   ;;  %v5109_v3 = vsel %vm5092_vm7, %v733_v63, 0 }
  0x59   : > { %3979 = vmatprep.subr.bf16.mxu1 %v4458_v52  ;;  %3965 = vmatprep.mubr.bf16.mxu1 %v4998_v34  ;;  %v3595_v10 = vcombine.low %v5109_v3, %v5113_v57  ;;  %v2403_v47 = vshrl.u32 %v5109_v3, 16 }
  0x5a   : > { %4125 = vmatprep.mubr.bf16.mxu0 %v5033_v11 }
  0x5b   : > { %4140 = vmatpush3.bf16.msra.mxu0 %v4459_v12  ;;  %v2416_v12 = vshrl.u32 %v5113_v57, 16 }
  0x5c   : > { %3980 = vmatpush3.bf16.msra.mxu1 %v4458_v52  ;;  %4141 = vmatprep.subr.bf16.mxu0 %v4463_v43  ;;  %v2406_v52 = vshll.u32 %v5109_v3, 16 }
  0x5d   : > { %3981 = vmatprep.subr.bf16.mxu1 %v4461_v28  ;;  %v2418_v48 = vrot.slane %v2416_v12, 4  ;;  %v4493_v12 = vld [vmem:[%s5481_s4 + $0x100] sm:$0xff]  }
  0x5e   : > { %4126 = vmatmul.mubr.bf16.gmra.mrb[4].mxu0 %v5054_v50 }
  0x5f   : > { %3966 = vmatmul.mubr.bf16.gmra.mrb[4].mxu1 %v5014_v41  ;;  %4142 = vmatpush3.bf16.msra.mxu0 %v4463_v43  ;;  %v1842_v43 = vshll.u32 %v4951_v40, 16 }
  0x60   : > { %3982 = vmatpush3.bf16.msra.mxu1 %v4461_v28  ;;  %4143 = vmatprep.subr.bf16.mxu0 %v4465_v55  ;;  %v1839_v28 = vor.u32 %v1838_v46, %v1834_v33 }
  0x61   : > { %3983 = vmatprep.subr.bf16.mxu1 %v4464_v42  ;;  %3969 = vmatprep.mubr.bf16.mxu1 %v5033_v11  ;;  %v1844_v54 = vrot.slane %v1842_v43, 5  ;;  %v491_v43 = vld [vmem:[%s5223_s13 + $0x10] sm:$0xf] }
  0x62   : > { %4129 = vmatprep.mubr.bf16.mxu0 %v5065_v35  ;;  %v1840_v63 = vrot.slane %v1839_v28, 4  ;;  %v490_v28 = vld [vmem:[%s5223_s13 + $0xc] sm:$0xf] }
  0x63   : > { %4144 = vmatpush3.bf16.msra.mxu0 %v4465_v55  ;;  %v2408_v55 = vrot.slane %v2406_v52, 5  ;;  %v4492_v52 = vld [vmem:[%s5481_s4 + $0x238] sm:$0xff]  }
  0x64   : > { %3984 = vmatpush3.bf16.msra.mxu1 %v4464_v42  ;;  %4145 = vmatprep.subr.bf16.mxu0 %v4469_v56  ;;  %v2405_v42 = vrot.slane %v2403_v47, 4  ;;  %v4491_v47 = vld [vmem:[%s5481_s4 + $0xf8] sm:$0xff]  }
  0x65   : > { %3985 = vmatprep.subr.bf16.mxu1 %v4467_v20 }
  0x66   : > { %4130 = vmatmul.mubr.bf16.gmra.mrb[8].mxu0 %v5084_v59 }
  0x67   : > { %3970 = vmatmul.mubr.bf16.gmra.mrb[8].mxu1 %v5054_v50  ;;  %4146 = vmatpush3.bf16.msra.mxu0 %v4469_v56  ;;  %v4483_v56 = vld [vmem:[%s5481_s4 + $0xd8] sm:$0xff]  }
  0x68   : > { %3986 = vmatpush3.bf16.msra.mxu1 %v4467_v20  ;;  %4147 = vmatprep.subr.bf16.mxu0 %v4471_v60  ;;  %v2414_v20 = vrot.slane %v2412_v13, 5  ;;  %v4494_v13 = vld [vmem:[%s5482_s5] sm:$0xff]  }
  0x69   : > { %3987 = vmatprep.subr.bf16.mxu1 %v4470_v0  ;;  %3973 = vmatprep.mubr.bf16.mxu1 %v5065_v35 }
  0x6a   : > { %4133 = vmatprep.mubr.bf16.mxu0 %v5100_v51 }
  0x6b   : > { %4148 = vmatpush3.bf16.msra.mxu0 %v4471_v60  ;;  %v5173_v60 = vsel %vm5092_vm7, %v735_v29, 0  ;;  %v4496_v29 = vld [vmem:[%s5482_s5 + $0x8] sm:$0xff]  }
  0x6c   : > { %3988 = vmatpush3.bf16.msra.mxu1 %v4470_v0  ;;  %4149 = vmatprep.subr.bf16.mxu0 %v4474_v62  ;;  %v4484_v0 = vld [vmem:[%s5481_s4 + $0x218] sm:$0xff]  }
  0x6d   : > { %3989 = vmatprep.subr.bf16.mxu1 %v4473_v4 }
  0x6e   : > { %4134 = vmatmul.mubr.bf16.gmra.mrb[12].mxu0 %v3595_v10  ;;  %v2422_v10 = vshll.u32 %v5173_v60, 16 }
  0x6f   : > { %3974 = vmatmul.mubr.bf16.gmra.mrb[12].mxu1 %v5084_v59  ;;  %4150 = vmatpush3.bf16.msra.mxu0 %v4474_v62  ;;  %v2419_v62 = vor.u32 %v2418_v48, %v2414_v20  ;;  %v4498_v48 = vld [vmem:[%s5482_s5 + $0x10] sm:$0xff]  }
  0x70   : > { %3990 = vmatpush3.bf16.msra.mxu1 %v4473_v4  ;;  %4151 = vmatprep.subr.bf16.mxu0 %v4476_v18  ;;  %v2409_v4 = vor.u32 %v2408_v55, %v2405_v42  ;;  %v2424_v25 = vrot.slane %v2422_v10, 5  ;;  %v489_v10 = vld [vmem:[%s5223_s13 + $0x8] sm:$0x1] }
  0x71   : > { %3991 = vmatprep.subr.bf16.mxu1 %v4475_v16  ;;  %3993 = vmatprep.mubr.bf16.mxu1 %v3487_v30  ;;  %v1829_v30 = vor.u32 %v1828_v45, %v1825_v24  ;;  %v2420_v19 = vrot.slane %v2419_v62, 4  ;;  %v4489_v45 = vld [vmem:[%s5481_s4 + $0xf0] sm:$0xff]  }
  0x72   : > { %4153 = vmatprep.mubr.bf16.mxu0 %v4826_v15 }
  0x73   : > { %4152 = vmatpush3.bf16.msra.mxu0 %v4476_v18  ;;  %v1830_v40 = vrot.slane %v1829_v30, 4  ;;  %v2425_v24 = vsel %vm4740_vm6, %v2420_v19, %v2424_v25  ;;  %v488_v30 = vld [vmem:[%s5223_s13 + $0x4] sm:$0xf]  ;;  %v3629_v19 = vrot.slane %v5109_v3, 9 }
  0x74   : > { %3992 = vmatpush3.bf16.msra.mxu1 %v4475_v16  ;;  %4169 = vmatprep.subr.bf16.mxu0 %v4478_v22  ;;  %v4486_v16 = vld [vmem:[%s5481_s4 + $0x220] sm:$0xff]   ;;  %v524_v42 = vshll.u32 %v488_v30, 16  ;;  %v528_v55 = vshrl.u32 %v488_v30, 16  ;;  %v4503_v30 = vld [vmem:[%s5481_s4 + $0x128] sm:$0xff]  }
  0x75   : > { %4009 = vmatprep.subr.bf16.mxu1 %v4477_v5  ;;  %v1835_v18 = vsel %vm4740_vm6, %v1830_v40, %v1834_v33  ;;  %v4490_v33 = vld [vmem:[%s5481_s4 + $0x230] sm:$0xff]   ;;  %v2611_v40 = vrot.slane %v5113_v57, 5  ;;  %v4501_v3 = vld [vmem:[%s5481_s4 + $0x120] sm:$0xff]  }
  0x76   : > { %4154 = vmatmul.mubr.bf16.vlgmr.msra.gmra.mrb[0].mxu0 %v4857_v53 }
  0x77   : > { %3994 = vmatmul.mubr.bf16.vlgmr.msra.gmra.mrb[0].mxu1 %v4728_v49  ;;  %4170 = vmatpush3.bf16.msra.mxu0 %v4478_v22  ;;  %v4481_v49 = vld [vmem:[%s5481_s4 + $0xd0] sm:$0xff]   ;;  %v2410_v22 = vrot.slane %v2409_v4, 4  ;;  %v2613_v25 = vrot.slane %v2611_v40, 4 }
  0x78   : > { %4010 = vmatpush3.bf16.msra.mxu1 %v4477_v5  ;;  %4171 = vmatprep.subr.bf16.mxu0 %v4480_v32  ;;  %v1845_v5 = vsel %vm4740_vm6, %v1840_v63, %v1844_v54  ;;  %v4499_v63 = vld [vmem:[%s5481_s4 + $0x118] sm:$0xff]  }
  0x79   : > { %4011 = vmatprep.subr.bf16.mxu1 %v4479_v6  ;;  %3997 = vmatprep.mubr.bf16.mxu1 %v4767_v21  ;;  %v4500_v54 = vld [vmem:[%s5482_s5 + $0x18] sm:$0xff]  }
  0x7a   : > { %4157 = vmatprep.mubr.bf16.mxu0 %v4893_v27 }
  0x7b   : > { %4172 = vmatpush3.bf16.msra.mxu0 %v4480_v32  ;;  %v2415_v32 = vsel %vm4740_vm6, %v2410_v22, %v2414_v20  ;;  %v4497_v20 = vld [vmem:[%s5481_s4 + $0x110] sm:$0xff]   ;;  %v494_v22 = vld [vmem:[%s5223_s13 + $0x1c] sm:$0xf] }
  0x7c   : > { %4012 = vmatpush3.bf16.msra.mxu1 %v4479_v6  ;;  %4173 = vmatprep.subr.bf16.mxu0 %v4482_v31  ;;  %v5196_v6 = vcombine.low %v1835_v18, %v1845_v5  ;;  %v3620_v46 = vcombine.low %v2415_v32, %v2425_v24  ;;  %v534_v24 = vshll.u32 %v489_v10, 16  ;;  %v611_v10 = vshrl.u32 %v499_v17, 16 }
  0x7d   : > { %4013 = vmatprep.subr.bf16.mxu1 %v4481_v49 }
  0x7e   : > { %4158 = vmatmul.mubr.bf16.gmra.mrb[4].mxu0 %v4927_v7 }
  0x7f   : > { %3998 = vmatmul.mubr.bf16.gmra.mrb[4].mxu1 %v4814_v2  ;;  %4174 = vmatpush3.bf16.msra.mxu0 %v4482_v31  ;;  %v4495_v31 = vld [vmem:[%s5481_s4 + $0x108] sm:$0xff]  }
  0x80   : > { %4014 = vmatpush3.bf16.msra.mxu1 %v4481_v49  ;;  %4175 = vmatprep.subr.bf16.mxu0 %v4484_v0  ;;  %v487_v49 = vld [vmem:[%s5223_s13] sm:$0xf] }
  0x81   : > { %4015 = vmatprep.subr.bf16.mxu1 %v4483_v56  ;;  %4001 = vmatprep.mubr.bf16.mxu1 %v4849_v44 }
  0x82   : > { %4161 = vmatprep.mubr.bf16.mxu0 %v4980_v9 }
  0x83   : > { %4176 = vmatpush3.bf16.msra.mxu0 %v4484_v0  ;;  %v552_v0 = vshrl.u32 %v491_v43, 16 }
  0x84   : > { %4016 = vmatpush3.bf16.msra.mxu1 %v4483_v56  ;;  %4177 = vmatprep.subr.bf16.mxu0 %v4486_v16  ;;  %v548_v56 = vshll.u32 %v491_v43, 16 }
  0x85   : > { %4017 = vmatprep.subr.bf16.mxu1 %v4485_v61  ;;  %v554_v5 = vrot.slane %v552_v0, 4 }
  0x86   : > { %4162 = vmatmul.mubr.bf16.gmra.mrb[8].mxu0 %v5000_v36  ;;  %v5264_v18 = vrot.slane %v548_v56, 5 }
  0x87   : > { %4002 = vmatmul.mubr.bf16.gmra.mrb[8].mxu1 %v4887_v23  ;;  %4178 = vmatpush3.bf16.msra.mxu0 %v4486_v16 }
  0x88   : > { %4018 = vmatpush3.bf16.msra.mxu1 %v4485_v61  ;;  %4179 = vmatprep.subr.bf16.mxu0 %v4488_v14  ;;  %v493_v61 = vld [vmem:[%s5223_s13 + $0x18] sm:$0xf] }
  0x89   : > { %4019 = vmatprep.subr.bf16.mxu1 %v4487_v26  ;;  %4005 = vmatprep.mubr.bf16.mxu1 %v4929_v8 }
  0x8a   : > { %4165 = vmatprep.mubr.bf16.mxu0 %v5196_v6 }
  0x8b   : > { %4180 = vmatpush3.bf16.msra.mxu0 %v4488_v14  ;;  %v492_v14 = vld [vmem:[%s5223_s13 + $0x14] sm:$0x1] }
  0x8c   : > { %4020 = vmatpush3.bf16.msra.mxu1 %v4487_v26  ;;  %4181 = vmatprep.subr.bf16.mxu0 %v4490_v33  ;;  %v2614_v26 = vrot.slane %v5173_v60, 5 }
  0x8d   : > { %4021 = vmatprep.subr.bf16.mxu1 %v4489_v45 }
  0x8e   : > { %4166 = vmatmul.mubr.bf16.gmra.mrb[12].mxu0 %v3620_v46  ;;  %v572_v46 = vshll.u32 %v494_v22, 16 }
  0x8f   : > { %4006 = vmatmul.mubr.bf16.gmra.mrb[12].mxu1 %v4971_v1  ;;  %4182 = vmatpush3.bf16.msra.mxu0 %v4490_v33  ;;  %v566_v33 = vshll.u32 %v493_v61, 16 }
  0x90   : > { %4022 = vmatpush3.bf16.msra.mxu1 %v4489_v45  ;;  %4183 = vmatprep.subr.bf16.mxu0 %v4492_v52  ;;  %v563_v45 = vshrl.u32 %v493_v61, 16 }
  0x91   : > { %4023 = vmatprep.subr.bf16.mxu1 %v4491_v47  ;;  %4025 = vmatprep.mubr.bf16.mxu1 %v5009_v39  ;;  %v518_v39 = vshll.u32 %v487_v49, 16 }
  0x92   : > { %4185 = vmatprep.mubr.bf16.mxu0 %v4767_v21  ;;  %v515_v21 = vshrl.u32 %v487_v49, 16  ;;  %v5285_v49 = vsel %vm4687_vm3, %v3629_v19, %v2611_v40  ;;  %v565_v43 = vrot.slane %v563_v45, 4  ;;  %v495_v40 = vld [vmem:[%s5223_s13 + $0x20] sm:$0x1]  ;;  %v501_v45 = vld [vmem:[%s5223_s13 + $0x38] sm:$0x1] }
  0x93   : > { %4184 = vmatpush3.bf16.msra.mxu0 %v4492_v52  ;;  %v520_v62 = vrot.slane %v518_v39, 5  ;;  %v555_v52 = vor.u32 %v554_v5, %v5264_v18  ;;  %v5303_v39 = vrot.slane %v572_v46, 5  ;;  %v582_v5 = vshll.u32 %v495_v40, 16 }
  0x94   : > { %4024 = vmatpush3.bf16.msra.mxu1 %v4491_v47  ;;  %4201 = vmatprep.subr.bf16.mxu0 %v4494_v13  ;;  %v517_v4 = vrot.slane %v515_v21, 4  ;;  %v576_v47 = vshrl.u32 %v494_v22, 16  ;;  %v568_v21 = vrot.slane %v566_v33, 5  ;;  %v613_v33 = vrot.slane %v611_v10, 4 }
  0x95   : > { %4041 = vmatprep.subr.bf16.mxu1 %v4493_v12  ;;  %v556_v56 = vrot.slane %v555_v52, 4 }
  0x96   : > { %4186 = vmatmul.mubr.bf16.vlgmr.msra.gmra.mrb[0].mxu0 %v4814_v2  ;;  %v542_v2 = vshll.u32 %v490_v28, 16  ;;  %v521_v32 = vor.u32 %v520_v62, %v517_v4 }
  0x97   : > { %4026 = vmatmul.mubr.bf16.vlgmr.msra.gmra.mrb[0].mxu1 %v4998_v34  ;;  %4202 = vmatpush3.bf16.msra.mxu0 %v4494_v13  ;;  %v539_v34 = vshrl.u32 %v490_v28, 16  ;;  %v496_v13 = vld [vmem:[%s5223_s13 + $0x24] sm:$0xf] }
  0x98   : > { %4042 = vmatpush3.bf16.msra.mxu1 %v4493_v12  ;;  %4203 = vmatprep.subr.bf16.mxu0 %v4496_v29  ;;  %v544_v16 = vrot.slane %v542_v2, 5  ;;  %v558_v12 = vshll.u32 %v492_v14, 16  ;;  %v5298_v28 = vrot.slane %v521_v32, 4  ;;  %v498_v14 = vld [vmem:[%s5223_s13 + $0x2c] sm:$0x1] }
  0x99   : > { %4043 = vmatprep.subr.bf16.mxu1 %v4495_v31  ;;  %4029 = vmatprep.mubr.bf16.mxu1 %v5014_v41  ;;  %v5261_v41 = vrot.slane %v524_v42, 5  ;;  %v541_v57 = vrot.slane %v539_v34, 4  ;;  %v578_v42 = vrot.slane %v576_v47, 4  ;;  %v606_v52 = vshll.u32 %v498_v14, 16 }
  0x9a   : > { %4189 = vmatprep.mubr.bf16.mxu0 %v4849_v44  ;;  %v530_v44 = vrot.slane %v528_v55, 4  ;;  %v587_v55 = vshrl.u32 %v496_v13, 16  ;;  %v560_v0 = vrot.slane %v558_v12, 5  ;;  %v503_v12 = vld [vmem:[%s5223_s13 + $0x40] sm:$0xf] }
  0x9b   : > { %4204 = vmatpush3.bf16.msra.mxu0 %v4496_v29  ;;  %v545_v60 = vor.u32 %v544_v16, %v541_v57  ;;  %v497_v29 = vld [vmem:[%s5223_s13 + $0x28] sm:$0xf]  ;;  %v579_v16 = vor.u32 %v578_v42, %v5303_v39 }
  0x9c   : > { %4044 = vmatpush3.bf16.msra.mxu1 %v4495_v31  ;;  %4205 = vmatprep.subr.bf16.mxu0 %v4498_v48  ;;  %v5289_v31 = vsel %vm4687_vm3, %v2613_v25, %v2614_v26  ;;  %v596_v4 = vshll.u32 %v497_v29, 16  ;;  %v600_v62 = vshrl.u32 %v497_v29, 16  ;;  %v589_v22 = vrot.slane %v587_v55, 4 }
  0x9d   : > { %4045 = vmatprep.subr.bf16.mxu1 %v4497_v20  ;;  %v546_v2 = vrot.slane %v545_v60, 4  ;;  %v561_v26 = vsel %vm4740_vm6, %v556_v56, %v560_v0  ;;  %v3646_v47 = vcombine.low %v5285_v49, %v5289_v31  ;;  %v4508_v49 = vld [vmem:[%s5482_s5 + $0x38] sm:$0xff]   ;;  %v644_v55 = vshll.u32 %v503_v12, 16 }
  0x9e   : > { %4190 = vmatmul.mubr.bf16.gmra.mrb[4].mxu0 %v4887_v23  ;;  %v4502_v23 = vld [vmem:[%s5482_s5 + $0x20] sm:$0xff]   ;;  %v5331_v32 = vrot.slane %v596_v4, 5  ;;  %v608_v56 = vrot.slane %v606_v52, 5 }
  0x9f   : > { %4030 = vmatmul.mubr.bf16.gmra.mrb[4].mxu1 %v5033_v11  ;;  %4206 = vmatpush3.bf16.msra.mxu0 %v4498_v48  ;;  %v531_v11 = vor.u32 %v530_v44, %v5261_v41  ;;  %v500_v48 = vld [vmem:[%s5223_s13 + $0x34] sm:$0xf]  ;;  %v614_v44 = vshll.u32 %v499_v17, 16  ;;  %v551_v25 = vsel %vm4740_vm6, %v546_v2, %v5264_v18 }
  0xa0   : > { %4046 = vmatpush3.bf16.msra.mxu1 %v4497_v20  ;;  %4207 = vmatprep.subr.bf16.mxu0 %v4500_v54  ;;  %v590_v20 = vshll.u32 %v496_v13, 16  ;;  %v620_v61 = vshll.u32 %v500_v48, 16  ;;  %v624_v57 = vshrl.u32 %v500_v48, 16  ;;  %v4507_v13 = vld [vmem:[%s5481_s4 + $0x138] sm:$0xff]   ;;  %v3656_v29 = vcombine.low %v551_v25, %v561_v26 }
  0xa1   : > { %4047 = vmatprep.subr.bf16.mxu1 %v4499_v63  ;;  %4033 = vmatprep.mubr.bf16.mxu1 %v5054_v50  ;;  %v4504_v50 = vld [vmem:[%s5482_s5 + $0x28] sm:$0xff]   ;;  %v532_v34 = vrot.slane %v531_v11, 4  ;;  %v616_v46 = vrot.slane %v614_v44, 5  ;;  %v502_v11 = vld [vmem:[%s5223_s13 + $0x3c] sm:$0xf] }
  0xa2   : > { %4193 = vmatprep.mubr.bf16.mxu0 %v4929_v8  ;;  %v5300_v8 = vrot.slane %v534_v24, 5  ;;  %v592_v19 = vrot.slane %v590_v20, 5  ;;  %v602_v24 = vrot.slane %v600_v62, 4  ;;  %v5336_v18 = vrot.slane %v620_v61, 5 }
  0xa3   : > { %4208 = vmatpush3.bf16.msra.mxu0 %v4500_v54  ;;  %v569_v54 = vor.u32 %v568_v21, %v565_v43  ;;  %v505_v43 = vld [vmem:[%s5223_s13 + $0x48] sm:$0xf]  ;;  %v506_v21 = vld [vmem:[%s5223_s13 + $0x4c] sm:$0xf]  ;;  %v638_v42 = vshll.u32 %v502_v11, 16  ;;  %v648_v20 = vshrl.u32 %v503_v12, 16 }
  0xa4   : > { %4048 = vmatpush3.bf16.msra.mxu1 %v4499_v63  ;;  %4209 = vmatprep.subr.bf16.mxu0 %v4502_v23  ;;  %v527_v63 = vsel %vm4740_vm6, %v5298_v28, %v5261_v41  ;;  %v537_v41 = vsel %vm4740_vm6, %v532_v34, %v5300_v8  ;;  %v593_v60 = vor.u32 %v592_v19, %v589_v22  ;;  %v630_v28 = vshll.u32 %v501_v45, 16  ;;  %v508_v22 = vld [vmem:[%s5223_s13 + $0x54] sm:$0xf] }
  0xa5   : > { %4049 = vmatprep.subr.bf16.mxu1 %v4501_v3  ;;  %v3655_v31 = vcombine.low %v527_v63, %v537_v41  ;;  %v635_v8 = vshrl.u32 %v502_v11, 16  ;;  %v662_v0 = vshll.u32 %v505_v43, 16  ;;  %v668_v40 = vshll.u32 %v506_v21, 16  ;;  %v509_v41 = vld [vmem:[%s5223_s13 + $0x58] sm:$0xf] }
  0xa6   : > { %4194 = vmatmul.mubr.bf16.gmra.mrb[8].mxu0 %v4971_v1  ;;  %v4505_v1 = vld [vmem:[%s5481_s4 + $0x130] sm:$0xff]   ;;  %v594_v2 = vrot.slane %v593_v60, 4  ;;  %v672_v4 = vshrl.u32 %v506_v21, 16  ;;  %v646_v61 = vrot.slane %v644_v55, 5  ;;  %v696_v11 = vshrl.u32 %v509_v41, 16 }
  0xa7   : > { %4034 = vmatmul.mubr.bf16.gmra.mrb[8].mxu1 %v5065_v35  ;;  %4210 = vmatpush3.bf16.msra.mxu0 %v4502_v23  ;;  %v4506_v35 = vld [vmem:[%s5482_s5 + $0x30] sm:$0xff]   ;;  %v626_v23 = vrot.slane %v624_v57, 4  ;;  %v637_v44 = vrot.slane %v635_v8, 4  ;;  %v650_v57 = vrot.slane %v648_v20, 4  ;;  %v510_v8 = vld [vmem:[%s5223_s13 + $0x5c] sm:$0x1] }
  0xa8   : > { %4050 = vmatpush3.bf16.msra.mxu1 %v4501_v3  ;;  %4211 = vmatprep.subr.bf16.mxu0 %v4504_v50  ;;  %v570_v3 = vrot.slane %v569_v54, 4  ;;  %v640_v54 = vrot.slane %v638_v42, 5  ;;  %v599_v25 = vsel %vm4740_vm6, %v594_v2, %v5331_v32  ;;  %v702_v55 = vshll.u32 %v510_v8, 16 }
  0xa9   : > { %4051 = vmatprep.subr.bf16.mxu1 %v4503_v30  ;;  %4037 = vmatprep.mubr.bf16.mxu1 %v5084_v59  ;;  %v580_v59 = vrot.slane %v579_v16, 4  ;;  %v627_v17 = vor.u32 %v626_v23, %v5336_v18  ;;  %v692_v23 = vshll.u32 %v509_v41, 16 }
  0xaa   : > { %4197 = vmatprep.mubr.bf16.mxu0 %v5002_v37  ;;  %v584_v37 = vrot.slane %v582_v5, 5  ;;  %v575_v48 = vsel %vm4740_vm6, %v570_v3, %v5303_v39  ;;  %v632_v39 = vrot.slane %v630_v28, 5  ;;  %v504_v5 = vld [vmem:[%s5223_s13 + $0x44] sm:$0x1]  ;;  %v686_v3 = vshll.u32 %v508_v22, 16 }
  0xab   : > { %4212 = vmatpush3.bf16.msra.mxu0 %v4504_v50  ;;  %v617_v50 = vor.u32 %v616_v46, %v613_v33  ;;  %v628_v63 = vrot.slane %v627_v17, 4  ;;  %v641_v33 = vor.u32 %v640_v54, %v637_v44  ;;  %v651_v46 = vor.u32 %v650_v57, %v646_v61 }
  0xac   : > { %4052 = vmatpush3.bf16.msra.mxu1 %v4503_v30  ;;  %4213 = vmatprep.subr.bf16.mxu0 %v4506_v35  ;;  %v603_v30 = vor.u32 %v602_v24, %v5331_v32  ;;  %v585_v34 = vsel %vm4740_vm6, %v580_v59, %v584_v37  ;;  %v507_v24 = vld [vmem:[%s5223_s13 + $0x50] sm:$0x1]  ;;  %v683_v32 = vshrl.u32 %v508_v22, 16 }
  0xad   : > { %4053 = vmatprep.subr.bf16.mxu1 %v4505_v1  ;;  %v618_v10 = vrot.slane %v617_v50, 4  ;;  %v3657_v16 = vcombine.low %v575_v48, %v585_v34  ;;  %v633_v45 = vsel %vm4740_vm6, %v628_v63, %v632_v39  ;;  %v678_v37 = vshll.u32 %v507_v24, 16 }
  0xae   : > { %4198 = vmatmul.mubr.bf16.gmra.mrb[12].mxu0 %v3646_v47  ;;  %v604_v62 = vrot.slane %v603_v30, 4  ;;  %v654_v47 = vshll.u32 %v504_v5, 16  ;;  %v642_v52 = vrot.slane %v641_v33, 4  ;;  %v652_v12 = vrot.slane %v651_v46, 4 }
  0xaf   : > { %4038 = vmatmul.mubr.bf16.gmra.mrb[12].mxu1 %v5100_v51  ;;  %4214 = vmatpush3.bf16.msra.mxu0 %v4506_v35  ;;  %v659_v51 = vshrl.u32 %v505_v43, 16  ;;  %v670_v35 = vrot.slane %v668_v40, 5  ;;  %v623_v14 = vsel %vm4740_vm6, %v618_v10, %v5336_v18  ;;  %v698_v30 = vrot.slane %v696_v11, 4 }
  0xb0   : > { %4054 = vmatpush3.bf16.msra.mxu1 %v4505_v1  ;;  %4215 = vmatprep.subr.bf16.mxu0 %v4508_v49  ;;  %v664_v1 = vrot.slane %v662_v0, 5  ;;  %v609_v26 = vsel %vm4740_vm6, %v604_v62, %v608_v56  ;;  %v680_v28 = vrot.slane %v678_v37, 5  ;;  %v647_v43 = vsel %vm4740_vm6, %v642_v52, %v646_v61 }
  0xb1   : > { %4055 = vmatprep.subr.bf16.mxu1 %v4507_v13  ;;  %4057 = vmatprep.mubr.bf16.mxu1 %v4784_v38  ;;  %v661_v19 = vrot.slane %v659_v51, 4  ;;  %v674_v38 = vrot.slane %v672_v4, 4  ;;  %v3658_v60 = vcombine.low %v599_v25, %v609_v26  ;;  %v704_v51 = vrot.slane %v702_v55, 5 }
  0xb2   : > { %4217 = vmatprep.mubr.bf16.mxu0 %v3655_v31  ;;  %v688_v31 = vrot.slane %v686_v3, 5 }
  0xb3   : > { %4216 = vmatpush3.bf16.msra.mxu0 %v4508_v49  ;;  %v665_v59 = vor.u32 %v664_v1, %v661_v19  ;;  %v675_v18 = vor.u32 %v674_v38, %v670_v35  ;;  %v685_v49 = vrot.slane %v683_v32, 4 }
  0xb4   : > { %4056 = vmatpush3.bf16.msra.mxu1 %v4507_v13  ;;  %v656_v13 = vrot.slane %v654_v47, 5 }
  0xb5   : > { %v666_v50 = vrot.slane %v665_v59, 4  ;;  %v689_v17 = vor.u32 %v688_v31, %v685_v49 }
  0xb6   : > { %4218 = vmatmul.mubr.bf16.vlgmr.msra.gmra.mrb[0].mxu0 %v3656_v29  ;;  %v694_v29 = vrot.slane %v692_v23, 5  ;;  %v657_v21 = vsel %vm4740_vm6, %v652_v12, %v656_v13 }
  0xb7   : > { %4058 = vmatmul.mubr.bf16.vlgmr.msra.gmra.mrb[0].mxu1 %v4826_v15  ;;  %4221 = vmatprep.mubr.bf16.mxu0 %v3657_v16  ;;  %v3659_v15 = vcombine.low %v623_v14, %v633_v45  ;;  %v671_v20 = vsel %vm4740_vm6, %v666_v50, %v670_v35  ;;  %v690_v2 = vrot.slane %v689_v17, 4 }
  0xb8   : > { %4061 = vmatprep.mubr.bf16.mxu1 %v4857_v53  ;;  %v676_v53 = vrot.slane %v675_v18, 4  ;;  %v699_v42 = vor.u32 %v698_v30, %v694_v29 }
  0xba   : > { %v681_v48 = vsel %vm4740_vm6, %v676_v53, %v680_v28  ;;  %v700_v56 = vrot.slane %v699_v42, 4 }
  0xbb   : > { %v3661_v34 = vcombine.low %v671_v20, %v681_v48 }
  0xbc   : > { %v705_v0 = vsel %vm4740_vm6, %v700_v56, %v704_v51 }
  0xbe   : > { %4222 = vmatmul.mubr.bf16.gmra.mrb[4].mxu0 %v3658_v60 }
  0xbf   : > { %4062 = vmatmul.mubr.bf16.gmra.mrb[4].mxu1 %v4893_v27  ;;  %4225 = vmatprep.mubr.bf16.mxu0 %v3659_v15  ;;  %v3660_v27 = vcombine.low %v647_v43, %v657_v21 }
  0xc0   : > { %4065 = vmatprep.mubr.bf16.mxu1 %v4927_v7  ;;  %v695_v7 = vsel %vm4740_vm6, %v690_v2, %v694_v29 }
  0xc1   : > { %v3662_v40 = vcombine.low %v695_v7, %v705_v0 }
  0xc6   : > { %4226 = vmatmul.mubr.bf16.gmra.mrb[8].mxu0 %v3660_v27 }
  0xc7   : > { %4066 = vmatmul.mubr.bf16.gmra.mrb[8].mxu1 %v4980_v9  ;;  %4229 = vmatprep.mubr.bf16.mxu0 %v3661_v34  ;;  %v5394_v9 = vld [vmem:[%s5483_s6] ss:$0 sm:$0xff] }
  0xc8   : > { %4069 = vmatprep.mubr.bf16.mxu1 %v5000_v36 }
  0xce   : > { %4230 = vmatmul.mubr.bf16.gmra.mrb[12].mxu0 %v3662_v40 }
  0xcf   : > { %4070 = vmatmul.mubr.bf16.gmra.mrb[12].mxu1 %v5196_v6 }
 0x189   : > { %v4219_v62 = vpop.f32.mrb[0].mxu0 }
 0x18a   : > { %v4059_v4 = vpop.f32.mrb[0].mxu1  ;;  %v2912_v39 = vpop.f32.mrb[1].mxu0 }
 0x18b   : > { %v4233_v10 = vadd.f32 %v4219_v62, %v4059_v4  ;;  %v1949_v36 = vpop.f32.mrb[1].mxu1  ;;  %v4220_v54 = vpop.f32.mrb[2].mxu0 }
 0x18c   : > { %v4234_v44 = vadd.f32 %v2912_v39, %v1949_v36  ;;  %v4060_v63 = vpop.f32.mrb[2].mxu1  ;;  %v2915_v6 = vpop.f32.mrb[3].mxu0 }
 0x18d   : > { %v2984_v58 = vadd.f32 %v4233_v10, %v5394_v9  ;;  %v4235_v61 = vadd.f32 %v4220_v54, %v4060_v63  ;;  %v1952_v57 = vpop.f32.mrb[3].mxu1 }
 0x18e   : > { %v2982_v16 = vadd.f32 %v4234_v44, %v5394_v9  ;;  %v4236_v5 = vadd.f32 %v2915_v6, %v1952_v57 }
 0x18f   : > { %v3000_v22 = vmax.f32 %v2984_v58, 0.0  ;;  %v2985_v19 = vadd.f32 %v4235_v61, %v5394_v9 }
 0x190   : > { %v2998_v1 = vmax.f32 %v2982_v16, 0.0  ;;  %v2983_v35 = vadd.f32 %v4236_v5, %v5394_v9 }
 0x191   : > { %v3034_v38 = vrot.slane %v3000_v22, 7  ;;  %v3001_v41 = vmax.f32 %v2985_v19, 0.0  ;;  %v4223_v24 = vpop.f32.mrb[4].mxu0 }
 0x192   : > { %v3031_v25 = vrot.slane %v2998_v1, 7  ;;  %v2999_v26 = vmax.f32 %v2983_v35, 0.0  ;;  %v4063_v14 = vpop.f32.mrb[4].mxu1  ;;  %v2928_v32 = vpop.f32.mrb[5].mxu0 }
 0x193   : > { %v3080_v45 = vsel %vm3030_vm8, 0.0, %v3034_v38  ;;  %v3035_v33 = vrot.slane %v3001_v41, 7  ;;  %v4237_v46 = vadd.f32 %v4223_v24, %v4063_v14  ;;  %v1965_v47 = vpop.f32.mrb[5].mxu1  ;;  %v4224_v37 = vpop.f32.mrb[6].mxu0 }
 0x194   : > { %v3709_v3 = vpack.c.bf16 %v3080_v45, %v3080_v45  ;;  %v3079_v23 = vsel %vm3030_vm8, 0.0, %v3031_v25  ;;  %v3032_v11 = vrot.slane %v2999_v26, 7  ;;  %v4238_v59 = vadd.f32 %v2928_v32, %v1965_v47  ;;  %v4064_v18 = vpop.f32.mrb[6].mxu1  ;;  %v2931_v49 = vpop.f32.mrb[7].mxu0 }
 0x195   : > { %v3036_v60 = vsel %vm3030_vm8, %v3034_v38, %v3035_v33  ;;  %v3088_v15 = vsel %vm3030_vm8, %v3035_v33, 0.0  ;;  %v2988_v52 = vadd.f32 %v4237_v46, %v5394_v9  ;;  %v4239_v12 = vadd.f32 %v4224_v37, %v4064_v18  ;;  %v1968_v13 = vpop.f32.mrb[7].mxu1 }
 0x196   : > { %3202 = vst [vmem:[%s5404_s18 + $0xc] sm:$0xf] %v3709_v3  ;;  %v3710_v31 = vpack.c.bf16 %v3036_v60, %v3036_v60  ;;  %v3711_v29 = vpack.c.bf16 %v3088_v15, %v3088_v15  ;;  %v3033_v30 = vsel %vm3030_vm8, %v3031_v25, %v3032_v11  ;;  %v3087_v50 = vsel %vm3030_vm8, %v3032_v11, 0.0 }
 0x197   : > { %v3708_v53 = vpack.c.bf16 %v3087_v50, %v3087_v50  ;;  %v3733_v28 = vpack.c.bf16 %v3033_v30, %v3079_v23  ;;  %v3004_v8 = vmax.f32 %v2988_v52, 0.0  ;;  %v2986_v43 = vadd.f32 %v4238_v59, %v5394_v9 }
 0x198   : > { %3203 = vst [vmem:[%s5404_s18 + $0x10] sm:$0xf] %v3710_v31  ;;  %3204 = vst [vmem:[%s5404_s18 + $0x14] sm:$0x1] %v3711_v29  ;;  %v2989_v21 = vadd.f32 %v4239_v12, %v5394_v9  ;;  %v4240_v17 = vadd.f32 %v2931_v49, %v1968_v13 }
 0x199   : > { %3734 = vst [vmem:[%s5404_s18] sm:$0xff] %v3733_v28   ;;  %3201 = vst [vmem:[%s5404_s18 + $0x8] sm:$0x1] %v3708_v53  ;;  %v3040_v42 = vrot.slane %v3004_v8, 7  ;;  %v3002_v55 = vmax.f32 %v2986_v43, 0.0  ;;  %v4227_v34 = vpop.f32.mrb[8].mxu0 }
 0x19a   : > { %v3005_v20 = vmax.f32 %v2989_v21, 0.0  ;;  %v2987_v48 = vadd.f32 %v4240_v17, %v5394_v9  ;;  %v4067_v27 = vpop.f32.mrb[8].mxu1  ;;  %v2944_v0 = vpop.f32.mrb[9].mxu0 }
 0x19b   : > { %v3082_v2 = vsel %vm3030_vm8, 0.0, %v3040_v42  ;;  %v3037_v56 = vrot.slane %v3002_v55, 7  ;;  %v4241_v51 = vadd.f32 %v4227_v34, %v4067_v27  ;;  %v1981_v7 = vpop.f32.mrb[9].mxu1  ;;  %v4228_v39 = vpop.f32.mrb[10].mxu0 }
 0x19c   : > { %v3715_v40 = vpack.c.bf16 %v3082_v2, %v3082_v2  ;;  %v3041_v4 = vrot.slane %v3005_v20, 7  ;;  %v3003_v62 = vmax.f32 %v2987_v48, 0.0  ;;  %v4242_v10 = vadd.f32 %v2944_v0, %v1981_v7  ;;  %v4068_v36 = vpop.f32.mrb[10].mxu1  ;;  %v2947_v61 = vpop.f32.mrb[11].mxu0 }
 0x19d   : > { %v3081_v44 = vsel %vm3030_vm8, 0.0, %v3037_v56  ;;  %v2992_v63 = vadd.f32 %v4241_v51, %v5394_v9  ;;  %v4243_v54 = vadd.f32 %v4228_v39, %v4068_v36  ;;  %v1984_v58 = vpop.f32.mrb[11].mxu1 }
 0x19e   : > { %3208 = vst [vmem:[%s5404_s18 + $0x24] sm:$0xf] %v3715_v40  ;;  %v3042_v57 = vsel %vm3030_vm8, %v3040_v42, %v3041_v4  ;;  %v3090_v6 = vsel %vm3030_vm8, %v3041_v4, 0.0  ;;  %v3038_v16 = vrot.slane %v3003_v62, 7  ;;  %v2990_v5 = vadd.f32 %v4242_v10, %v5394_v9 }
 0x19f   : > { %v3716_v22 = vpack.c.bf16 %v3042_v57, %v3042_v57  ;;  %v3717_v19 = vpack.c.bf16 %v3090_v6, %v3090_v6  ;;  %v3008_v1 = vmax.f32 %v2992_v63, 0.0  ;;  %v2993_v35 = vadd.f32 %v4243_v54, %v5394_v9 }
 0x1a0   : > { %v3039_v38 = vsel %vm3030_vm8, %v3037_v56, %v3038_v16  ;;  %v3089_v41 = vsel %vm3030_vm8, %v3038_v16, 0.0  ;;  %v3006_v25 = vmax.f32 %v2990_v5, 0.0  ;;  %v4244_v26 = vadd.f32 %v2947_v61, %v1984_v58 }
 0x1a1   : > { %3209 = vst [vmem:[%s5404_s18 + $0x28] sm:$0xf] %v3716_v22  ;;  %3210 = vst [vmem:[%s5404_s18 + $0x2c] sm:$0x1] %v3717_v19  ;;  %v3714_v14 = vpack.c.bf16 %v3089_v41, %v3089_v41  ;;  %v3738_v24 = vpack.c.bf16 %v3039_v38, %v3081_v44  ;;  %v3046_v45 = vrot.slane %v3008_v1, 7  ;;  %v3009_v33 = vmax.f32 %v2993_v35, 0.0 }
 0x1a2   : > { %v2991_v46 = vadd.f32 %v4244_v26, %v5394_v9  ;;  %v4071_v47 = vpop.f32.mrb[12].mxu1  ;;  %v4231_v32 = vpop.f32.mrb[12].mxu0  ;;  %v3043_v60 = vrot.slane %v3006_v25, 7 }
 0x1a3   : > { %3750 = vst [vmem:[%s5404_s18 + $0x18] sm:$0xff] %v3738_v24   ;;  %3207 = vst [vmem:[%s5404_s18 + $0x20] sm:$0x1] %v3714_v14  ;;  %v3084_v3 = vsel %vm3030_vm8, 0.0, %v3046_v45  ;;  %v3047_v23 = vrot.slane %v3009_v33, 7  ;;  %v4245_v11 = vadd.f32 %v4231_v32, %v4071_v47  ;;  %v1997_v59 = vpop.f32.mrb[13].mxu1 }
 0x1a4   : > { %v2960_v18 = vpop.f32.mrb[13].mxu0  ;;  %v3721_v37 = vpack.c.bf16 %v3084_v3, %v3084_v3  ;;  %v3007_v15 = vmax.f32 %v2991_v46, 0.0  ;;  %v4072_v12 = vpop.f32.mrb[14].mxu1  ;;  %v3083_v20 = vsel %vm3030_vm8, 0.0, %v3043_v60 }
 0x1a5   : > { %v4246_v52 = vadd.f32 %v2960_v18, %v1997_v59  ;;  %v4232_v13 = vpop.f32.mrb[14].mxu0  ;;  %v3048_v49 = vsel %vm3030_vm8, %v3046_v45, %v3047_v23  ;;  %v3092_v31 = vsel %vm3030_vm8, %v3047_v23, 0.0  ;;  %v2996_v29 = vadd.f32 %v4245_v11, %v5394_v9  ;;  %v2000_v50 = vpop.f32.mrb[15].mxu1 }
 0x1a6   : > { %v4247_v30 = vadd.f32 %v4232_v13, %v4072_v12  ;;  %v2963_v53 = vpop.f32.mrb[15].mxu0  ;;  %3214 = vst [vmem:[%s5404_s18 + $0x3c] sm:$0xf] %v3721_v37  ;;  %v3722_v28 = vpack.c.bf16 %v3048_v49, %v3048_v49  ;;  %v3723_v8 = vpack.c.bf16 %v3092_v31, %v3092_v31  ;;  %v3044_v43 = vrot.slane %v3007_v15, 7 }
 0x1a7   : > { %v2994_v21 = vadd.f32 %v4246_v52, %v5394_v9  ;;  %v3012_v17 = vmax.f32 %v2996_v29, 0.0  ;;  %v4248_v55 = vadd.f32 %v2963_v53, %v2000_v50 }
 0x1a8   : > { %v2997_v42 = vadd.f32 %v4247_v30, %v5394_v9  ;;  %3215 = vst [vmem:[%s5404_s18 + $0x40] sm:$0xf] %v3722_v28  ;;  %3216 = vst [vmem:[%s5404_s18 + $0x44] sm:$0x1] %v3723_v8  ;;  %v3045_v48 = vsel %vm3030_vm8, %v3043_v60, %v3044_v43  ;;  %v3091_v27 = vsel %vm3030_vm8, %v3044_v43, 0.0 }
 0x1a9   : > { %v3010_v34 = vmax.f32 %v2994_v21, 0.0  ;;  %v3720_v2 = vpack.c.bf16 %v3091_v27, %v3091_v27  ;;  %v3743_v56 = vpack.c.bf16 %v3045_v48, %v3083_v20  ;;  %v3052_v51 = vrot.slane %v3012_v17, 7 }
 0x1aa   : > { %v3013_v7 = vmax.f32 %v2997_v42, 0.0  ;;  %v2995_v0 = vadd.f32 %v4248_v55, %v5394_v9 }
 0x1ab   : > { %3751 = vst [vmem:[%s5404_s18 + $0x30] sm:$0xff] %v3743_v56   ;;  %3213 = vst [vmem:[%s5404_s18 + $0x38] sm:$0x1] %v3720_v2  ;;  %v3086_v40 = vsel %vm3030_vm8, 0.0, %v3052_v51  ;;  %v3049_v10 = vrot.slane %v3010_v34, 7 }
 0x1ac   : > { %v3053_v4 = vrot.slane %v3013_v7, 7  ;;  %v3727_v62 = vpack.c.bf16 %v3086_v40, %v3086_v40  ;;  %v3011_v36 = vmax.f32 %v2995_v0, 0.0 }
 0x1ad   : > { %v3085_v9 = vsel %vm3030_vm8, 0.0, %v3049_v10 }
 0x1ae   : > { %v3054_v39 = vsel %vm3030_vm8, %v3052_v51, %v3053_v4  ;;  %v3094_v44 = vsel %vm3030_vm8, %v3053_v4, 0.0  ;;  %3220 = vst [vmem:[%s5404_s18 + $0x54] sm:$0xf] %v3727_v62  ;;  %v3050_v58 = vrot.slane %v3011_v36, 7 }
 0x1af   : > { %v3728_v63 = vpack.c.bf16 %v3054_v39, %v3054_v39  ;;  %v3729_v54 = vpack.c.bf16 %v3094_v44, %v3094_v44 }
 0x1b0   : > { %v3051_v61 = vsel %vm3030_vm8, %v3049_v10, %v3050_v58  ;;  %v3093_v57 = vsel %vm3030_vm8, %v3050_v58, 0.0 }
 0x1b1   : > { %3221 = vst [vmem:[%s5404_s18 + $0x58] sm:$0xf] %v3728_v63  ;;  %3222 = vst [vmem:[%s5404_s18 + $0x5c] sm:$0x1] %v3729_v54  ;;  %v3726_v6 = vpack.c.bf16 %v3093_v57, %v3093_v57  ;;  %v3748_v16 = vpack.c.bf16 %v3051_v61, %v3085_v9 }
 0x1b3   : > { %3752 = vst [vmem:[%s5404_s18 + $0x48] sm:$0xff] %v3748_v16   ;;  %3219 = vst [vmem:[%s5404_s18 + $0x50] sm:$0x1] %v3726_v6 }
 0x1b4 PF: > { %s17_s28 = sadd.s32 1, %s4547_s28   ;;  %s5492_s24 = smov %s4539_s26 }
 0x1b5   : > { %p14_p12 = scmp.ge.s32.totalorder %s17_s28, 6   ;;  %s5493_s25 = smov %s4543_s27 }
 0x1b6   : > { %s5494_s26 = smov %s5497_s29  ;;  %s5495_s27 = smov %s5501_s30 }
 0x1b7   :  { %16 = sbr.rel (!%p14_p12) target bundleno = 3 (0x3), region = 95 }

// kernel: pool_forward.3
= control target key start
LH: loop header
LB: loop body
LE: loop exit
PB: predicated region body
PF: predicated region fallthrough
CT: control target
= control target key end

     0   :  { %s4861_s18 = smov 0   ;;  %s4863_s19 = smov 0   ;;  %s6380_s0 = inlined_call_operand.vmem [shape: bf16[2,16,18,128], index: 0, kind: input, shape index: {}, may-alias: {0,1,2}]   ;;  %s6381_s1 = inlined_call_operand.vmem [shape: bf16[2,16,18,128], index: 1, kind: input, shape index: {}, may-alias: {0,1,2}]   ;;  %s6382_s2 = inlined_call_operand.vmem [shape: bf16[2,16,18,128], index: 2, kind: input, shape index: {}, may-alias: {0,1,2}]   ;;  %s6383_s3 = inlined_call_operand.vmem [shape: bf16[9,128,256], index: 3, kind: input, shape index: {}]   ;;  %s6384_s4 = inlined_call_operand.vmem [shape: f32[1,256], index: 4, kind: input, shape index: {}]   ;;  %s6385_s5 = inlined_call_operand.vmem [shape: bf16[2,16,18,128], index: 5, kind: output, shape index: {}]  }
   0x1   :  { %s4865_s20 = smov 0   ;;  %s4867_s21 = smov 0  }
   0x2   :  { %s4869_s22 = smov 0  }
   0x3 LB: > { %s24_s23 = sadd.s32 1, %s4819_s20  ;;  %s27_s24 = sadd.s32 1, %s4823_s21  ;;  %s4827_s22 = sphi %s4869_s22, %s15_s22   ;;  %s4823_s21 = sphi %s4867_s21, %s6423_s21   ;;  %s4819_s20 = sphi %s4865_s20, %s6422_s20   ;;  %s4815_s19 = sphi %s4863_s19, %s6421_s19   ;;  %s4811_s18 = sphi %s4861_s18, %s6420_s18  }
   0x4   : > { %p25_p0 = scmp.ge.s32.totalorder %s24_s23, 2  ;;  %p3825_p1 = scmp.ge.s32.totalorder %s4827_s22, 1 }
   0x5   : > { %p283_p2 = scmp.lt.s32.totalorder %s4827_s22, 5 }
   0x6   : > { %s6425_s23 = smov (%p25_p0, %s24_s23), 0  ;;  %s6427_s24 = smov (!%p25_p0, %s27_s24), %s4823_s21 }
   0x7   : > { %p284_p3 = pnand %p3825_p1, %p283_p2  ;;  %p29_p4 = scmp.ge.s32.totalorder %s6427_s24, 2 }
   0x8   : > { %v4549_v0 = vld [vmem:[%s6383_s3 + $0x84] ss:$8 sps:$4 sm:$0xff] (!%p284_p3)   ;;  %s4897_s27 = ssub.s32 (!%p284_p3), 1, %s4811_s18  ;;  %v4829_v2 = vmov (!%p284_p3), 0   ;;  %p352_p5 = scmp.lt.s32.totalorder (!%p284_p3), %s4815_s19, 1  ;;  %vm1160_vm4 = vcmask (!%p284_p3), 1042432  }
   0x9   : > { %s6429_s24 = smov (%p29_p4, %s6427_s24), 0  ;;  %287 = sbr.rel (%p284_p3) target bundleno = 636 (0x27c), region = 40 }
   0xa   : > { %v4551_v1 = vld [vmem:[%s6383_s3 + $0x204] ss:$8 sps:$4 sm:$0xff] (!%p284_p3)   ;;  %830 = vmatprep.mubr.bf16.mxu1 (!%p284_p3), %v4829_v2  ;;  %1898 = vmatprep.mubr.bf16.mxu0 (!%p284_p3), %v4829_v2  ;;  %s3826_s30 = sshll.u32 (!%p284_p3), %s4897_s27, 3  ;;  %v4553_v3 = vld [vmem:[%s6383_s3 + $0x80] ss:$8 sps:$4 sm:$0xff] (!%p284_p3)   ;;  %p414_p9 = scmp.gt.s32.totalorder (!%p284_p3), %s4897_s27, 0 }
   0xb   : > { %798 = vmatprep.subr.bf16.mxu1 (!%p284_p3), %v4549_v0  ;;  %v4554_v4 = vld [vmem:[%s6383_s3 + $0x200] ss:$8 sps:$4 sm:$0xff] (!%p284_p3)   ;;  %p354_p6 = scmp.lt.s32.totalorder (!%p284_p3), %s3826_s30, 15  ;;  %1866 = vmatprep.subr.bf16.mxu0 (!%p284_p3), %v4551_v1  ;;  %v4555_v5 = vld [vmem:[%s6383_s3 + $0x94] ss:$8 sps:$4 sm:$0xff] (!%p284_p3)   ;;  %s3829_s28 = sadd.s32 (!%p284_p3), 4294967295, %s3826_s30 }
   0xc   : > { %799 = vmatpush1.bf16.msra.mxu1 (!%p284_p3), %v4553_v3  ;;  %1867 = vmatpush1.bf16.msra.mxu0 (!%p284_p3), %v4554_v4  ;;  %v4557_v6 = vld [vmem:[%s6383_s3 + $0x214] ss:$8 sps:$4 sm:$0xff] (!%p284_p3)   ;;  %v4559_v7 = vld [vmem:[%s6383_s3 + $0x90] ss:$8 sps:$4 sm:$0xff] (!%p284_p3)   ;;  %v4561_v9 = vld [vmem:[%s6383_s3 + $0xa4] ss:$8 sps:$4 sm:$0xff] (!%p284_p3)  }
   0xd   : > { %800 = vmatprep.subr.bf16.mxu1 (!%p284_p3), %v4555_v5  ;;  %v4560_v8 = vld [vmem:[%s6383_s3 + $0x210] ss:$8 sps:$4 sm:$0xff] (!%p284_p3)   ;;  %1868 = vmatprep.subr.bf16.mxu0 (!%p284_p3), %v4557_v6  ;;  %p366_p7 = scmp.gt.s32.totalorder (!%p284_p3), %s3829_s28, 0  ;;  %v4563_v10 = vld [vmem:[%s6383_s3 + $0x224] ss:$8 sps:$4 sm:$0xff] (!%p284_p3)   ;;  %p3830_p8 = scmp.lt.s32.totalorder (!%p284_p3), %s3829_s28, 15 }
   0xe   : > { %v4565_v11 = vld [vmem:[%s6383_s3 + $0xa0] ss:$8 sps:$4 sm:$0xff] (!%p284_p3)   ;;  %v4567_v13 = vld [vmem:[%s6383_s3 + $0xb4] ss:$8 sps:$4 sm:$0xff] (!%p284_p3)   ;;  %v4571_v15 = vld [vmem:[%s6383_s3 + $0xb0] ss:$8 sps:$4 sm:$0xff] (!%p284_p3)  }
   0xf   : > { %v4566_v12 = vld [vmem:[%s6383_s3 + $0x220] ss:$8 sps:$4 sm:$0xff] (!%p284_p3)   ;;  %v4569_v14 = vld [vmem:[%s6383_s3 + $0x234] ss:$8 sps:$4 sm:$0xff] (!%p284_p3)   ;;  %v4572_v16 = vld [vmem:[%s6383_s3 + $0x230] ss:$8 sps:$4 sm:$0xff] (!%p284_p3)  }
  0x10   : > { %s6431_s19 = smov (!%p352_p5, %s4815_s19), 1  ;;  %801 = vmatpush1.bf16.msra.mxu1 %v4559_v7  ;;  %1869 = vmatpush1.bf16.msra.mxu0 %v4560_v8  ;;  %s6433_s28 = smov (!%p366_p7, %s3829_s28), 0  ;;  %v4573_v17 = vld [vmem:[%s6383_s3 + $0xc4] ss:$8 sps:$4 sm:$0xff]   ;;  %v4577_v19 = vld [vmem:[%s6383_s3 + $0xc0] ss:$8 sps:$4 sm:$0xff]  }
  0x11   : > { %s355_s16 = scalar_select %p354_p6, %s3826_s30, 15  ;;  %802 = vmatprep.subr.bf16.mxu1 %v4561_v9  ;;  %1870 = vmatprep.subr.bf16.mxu0 %v4563_v10  ;;  %v4575_v18 = vld [vmem:[%s6383_s3 + $0x244] ss:$8 sps:$4 sm:$0xff]   ;;  %v4578_v20 = vld [vmem:[%s6383_s3 + $0x240] ss:$8 sps:$4 sm:$0xff]   ;;  %vm1161_vm5 = vcmask 1046532  }
  0x12   : > { %s4923_s26 = smul.u32 48, %s6431_s19  ;;  %s6435_s28 = smov (!%p3830_p8, %s6433_s28), 15  ;;  %v4579_v21 = vld [vmem:[%s6383_s3 + $0xd4] ss:$8 sps:$4 sm:$0xff]   ;;  %v4583_v24 = vld [vmem:[%s6383_s3 + $0xd0] ss:$8 sps:$4 sm:$0xff]   ;;  %vm5266_vm6 = vmor %vm1160_vm4, %vm1161_vm5 }
  0x13   : > { %s4503_s7 = smul.u32 3, %s355_s16  ;;  %v4581_v23 = vld [vmem:[%s6383_s3 + $0x254] ss:$8 sps:$4 sm:$0xff]   ;;  %v4584_v26 = vld [vmem:[%s6383_s3 + $0x250] ss:$8 sps:$4 sm:$0xff]   ;;  %p424_p11 = scmp.lt.s32.totalorder %s4897_s27, 1 }
  0x14   : > { %803 = vmatpush1.bf16.msra.mxu1 %v4565_v11  ;;  %1871 = vmatpush1.bf16.msra.mxu0 %v4566_v12  ;;  %s418_s13 = scalar_select %p414_p9, 1, 0  ;;  %v4585_v27 = vld [vmem:[%s6383_s3 + $0xe4] ss:$8 sps:$4 sm:$0xff]   ;;  %v4589_v31 = vld [vmem:[%s6383_s3 + $0xe0] ss:$8 sps:$4 sm:$0xff]  }
  0x15   : > { %s4941_s14 = sadd.s32 %s4923_s26, %s4503_s7  ;;  %804 = vmatprep.subr.bf16.mxu1 %v4567_v13  ;;  %1872 = vmatprep.subr.bf16.mxu0 %v4569_v14  ;;  %s4505_s9 = smul.u32 3, %s6435_s28  ;;  %v4587_v28 = vld [vmem:[%s6383_s3 + $0x264] ss:$8 sps:$4 sm:$0xff]   ;;  %v4590_v32 = vld [vmem:[%s6383_s3 + $0x260] ss:$8 sps:$4 sm:$0xff]  }
  0x16   : > { %s3827_s17 = sshll.u32 %s4941_s14, 2  ;;  %v419_v22 = vstv %s418_s13  ;;  %v4591_v36 = vld [vmem:[%s6383_s3 + $0xf4] ss:$8 sps:$4 sm:$0xff]   ;;  %vm474_vm1 = vsmask.f32 3328  ;;  %p4155_p12 = scmp.ne.s32.totalorder %s4811_s18, 0 }
  0x17   : > { %s4952_s6 = scalar_lea.vmem %s6385_s5, %s3827_s17  ;;  %s374_s19 = sadd.s32 %s4505_s9, %s4923_s26  ;;  %vm4984_vm0 = vcmp.eq.s32.totalorder %v419_v22, 1  ;;  %v4593_v43 = vld [vmem:[%s6383_s3 + $0x274] ss:$8 sps:$4 sm:$0xff]   ;;  %vm475_vm2 = vsmask.f32 7440 }
  0x18   : > { %805 = vmatpush1.bf16.msra.mxu1 %v4571_v15  ;;  %1873 = vmatpush1.bf16.msra.mxu0 %v4572_v16  ;;  %s3835_s15 = sshll.u32 %s374_s19, 2  ;;  %s5022_s25 = scalar_lea.vmem %s6380_s0, %s3827_s17  ;;  %v4595_v47 = vld [vmem:[%s6383_s3 + $0xf0] ss:$8 sps:$4 sm:$0xff]   ;;  %vm5057_vm3 = vmor %vm474_vm1, %vm475_vm2  ;;  %v4599_v60 = vld [vmem:[%s6383_s3 + $0x4] ss:$8 sps:$4 sm:$0xff]  }
  0x19   : > { %806 = vmatprep.subr.bf16.mxu1 %v4573_v17  ;;  %1874 = vmatprep.subr.bf16.mxu0 %v4575_v18  ;;  %s376_s7 = scalar_lea.vmem %s6381_s1, %s3835_s15  ;;  %v4596_v48 = vld [vmem:[%s6383_s3 + $0x270] ss:$8 sps:$4 sm:$0xff]   ;;  %v5045_v52 = vld [vmem:[%s5022_s25] sm:$0xf]  ;;  %v5048_v54 = vld [vmem:[%s5022_s25 + $0x4] sm:$0xf] }
  0x1a   : > { %v415_v29 = vld [vmem:[%s376_s7] sm:$0xf]  ;;  %v416_v30 = vld [vmem:[%s376_s7 + $0x4] sm:$0xf]  ;;  %v417_v33 = vld [vmem:[%s376_s7 + $0x8] sm:$0x1]  ;;  %v5077_v11 = vcombine.low %v5045_v52, %v5048_v54 }
  0x1b   : > { %v5008_v34 = vsel %vm4984_vm0, %v415_v29, 0  ;;  %v5012_v35 = vsel %vm4984_vm0, %v416_v30, 0  ;;  %v5026_v37 = vsel %vm4984_vm0, %v417_v33, 0  ;;  %v5051_v55 = vld [vmem:[%s5022_s25 + $0x8] sm:$0x1]  ;;  %v502_v56 = vshrl.u32 %v5045_v52, 16 }
  0x1c   : > { %807 = vmatpush1.bf16.msra.mxu1 %v4577_v19  ;;  %1875 = vmatpush1.bf16.msra.mxu0 %v4578_v20  ;;  %v478_v38 = vshrl.u32 %v5008_v34, 16  ;;  %v481_v39 = vshll.u32 %v5008_v34, 16  ;;  %v487_v40 = vshll.u32 %v5012_v35, 16  ;;  %v491_v41 = vshrl.u32 %v5012_v35, 16  ;;  %v4602_v4 = vld [vmem:[%s6383_s3 + $0x284] ss:$8 sps:$4 sm:$0xff]  }
  0x1d   : > { %808 = vmatprep.subr.bf16.mxu1 %v4579_v21  ;;  %1876 = vmatprep.subr.bf16.mxu0 %v4581_v23  ;;  %v497_v42 = vshll.u32 %v5026_v37, 16  ;;  %v3883_v46 = vcombine.low %v5008_v34, %v5012_v35  ;;  %v505_v57 = vshll.u32 %v5045_v52, 16  ;;  %v511_v61 = vshll.u32 %v5048_v54, 16  ;;  %v4597_v9 = vld [vmem:[%s6383_s3] ss:$8 sps:$4 sm:$0xff]   ;;  %s382_s9 = ssub.s32 2, %s4811_s18 }
  0x1e   : > { %v480_v44 = vrot.slane %v478_v38, 4  ;;  %v483_v45 = vrot.slane %v481_v39, 5  ;;  %v489_v49 = vrot.slane %v487_v40, 5  ;;  %v493_v50 = vrot.slane %v491_v41, 4  ;;  %v4608_v15 = vld [vmem:[%s6383_s3 + $0x14] ss:$8 sps:$4 sm:$0xff]  }
  0x1f   : > { %v499_v51 = vrot.slane %v497_v42, 5  ;;  %v515_v62 = vshrl.u32 %v5048_v54, 16  ;;  %v521_v63 = vshll.u32 %v5051_v55, 16  ;;  %v504_v1 = vrot.slane %v502_v56, 4  ;;  %v5085_v16 = vld [vmem:[%s5022_s25 + $0xc] sm:$0xf] }
  0x20   : > { %809 = vmatpush1.bf16.msra.mxu1 %v4583_v24  ;;  %1877 = vmatpush1.bf16.msra.mxu0 %v4584_v26  ;;  %v484_v53 = vor.u32 %v483_v45, %v480_v44  ;;  %v494_v59 = vor.u32 %v493_v50, %v489_v49  ;;  %v507_v3 = vrot.slane %v505_v57, 5  ;;  %v513_v6 = vrot.slane %v511_v61, 5  ;;  %v5088_v19 = vld [vmem:[%s5022_s25 + $0x10] sm:$0xf]  ;;  %v5091_v20 = vld [vmem:[%s5022_s25 + $0x14] sm:$0x1] }
  0x21   : > { %810 = vmatprep.subr.bf16.mxu1 %v4585_v27  ;;  %1878 = vmatprep.subr.bf16.mxu0 %v4587_v28  ;;  %v517_v7 = vrot.slane %v515_v62, 4  ;;  %v523_v14 = vrot.slane %v521_v63, 5  ;;  %v526_v21 = vshrl.u32 %v5085_v16, 16  ;;  %v529_v23 = vshll.u32 %v5085_v16, 16  ;;  %v4600_v27 = vld [vmem:[%s6383_s3 + $0x280] ss:$8 sps:$4 sm:$0xff]  }
  0x22   : > { %v485_v0 = vrot.slane %v484_v53, 4  ;;  %v495_v5 = vrot.slane %v494_v59, 4  ;;  %v508_v10 = vor.u32 %v507_v3, %v504_v1  ;;  %v535_v24 = vshll.u32 %v5088_v19, 16  ;;  %v4605_v39 = vld [vmem:[%s6383_s3 + $0x294] ss:$8 sps:$4 sm:$0xff]   ;;  %s3836_s30 = sshll.u32 %s382_s9, 3 }
  0x23   : > { %v518_v13 = vor.u32 %v517_v7, %v513_v6  ;;  %v539_v25 = vshrl.u32 %v5088_v19, 16  ;;  %v528_v28 = vrot.slane %v526_v21, 4  ;;  %v545_v29 = vshll.u32 %v5091_v20, 16  ;;  %v4606_v40 = vld [vmem:[%s6383_s3 + $0x10] ss:$8 sps:$4 sm:$0xff]   ;;  %p384_p10 = scmp.lt.s32.totalorder %s3836_s30, 15 }
  0x24   : > { %811 = vmatpush1.bf16.msra.mxu1 %v4589_v31  ;;  %1879 = vmatpush1.bf16.msra.mxu0 %v4590_v32  ;;  %v490_v8 = vsel %vm5057_vm3, %v485_v0, %v489_v49  ;;  %v500_v12 = vsel %vm5057_vm3, %v495_v5, %v499_v51  ;;  %v509_v18 = vrot.slane %v508_v10, 4  ;;  %v5105_v30 = vcombine.low %v5085_v16, %v5088_v19  ;;  %v4603_v41 = vld [vmem:[%s6383_s3 + $0x290] ss:$8 sps:$4 sm:$0xff]   ;;  %v4617_v45 = vld [vmem:[%s6383_s3 + $0x24] ss:$8 sps:$4 sm:$0xff]  }
  0x25   : > { %812 = vmatprep.subr.bf16.mxu1 %v4591_v36  ;;  %1880 = vmatprep.subr.bf16.mxu0 %v4593_v43  ;;  %v3859_v17 = vcombine.low %v490_v8, %v500_v12  ;;  %v519_v22 = vrot.slane %v518_v13, 4  ;;  %v531_v32 = vrot.slane %v529_v23, 5  ;;  %v537_v33 = vrot.slane %v535_v24, 5  ;;  %v5129_v49 = vld [vmem:[%s5022_s25 + $0x1c] sm:$0xf] }
  0x26   : > { %v514_v26 = vsel %vm5057_vm3, %v509_v18, %v513_v6  ;;  %v541_v36 = vrot.slane %v539_v25, 4  ;;  %v547_v44 = vrot.slane %v545_v29, 5  ;;  %v5132_v50 = vld [vmem:[%s5022_s25 + $0x20] sm:$0x1]  ;;  %v559_v59 = vshll.u32 %v5129_v49, 16 }
  0x27   : > { %v524_v31 = vsel %vm5057_vm3, %v519_v22, %v523_v14  ;;  %v532_v42 = vor.u32 %v531_v32, %v528_v28  ;;  %v4615_v61 = vld [vmem:[%s6383_s3 + $0x20] ss:$8 sps:$4 sm:$0xff]   ;;  %v569_v0 = vshll.u32 %v5132_v50, 16  ;;  %v4624_v14 = vld [vmem:[%s6383_s3 + $0x30] ss:$8 sps:$4 sm:$0xff]  }
  0x28   : > { %813 = vmatpush1.bf16.msra.mxu1 %v4595_v47  ;;  %1881 = vmatpush1.bf16.msra.mxu0 %v4596_v48  ;;  %v3860_v38 = vcombine.low %v514_v26, %v524_v31  ;;  %v542_v43 = vor.u32 %v541_v36, %v537_v33  ;;  %v5123_v47 = vld [vmem:[%s5022_s25 + $0x18] sm:$0xf]  ;;  %v4611_v48 = vld [vmem:[%s6383_s3 + $0x2a4] ss:$8 sps:$4 sm:$0xff]   ;;  %v561_v5 = vrot.slane %v559_v59, 5 }
  0x29   : > { %1039 = vmatprep.subr.bf16.mxu1 %v4599_v60  ;;  %2120 = vmatprep.subr.bf16.mxu0 %v4602_v4  ;;  %v550_v51 = vshrl.u32 %v5123_v47, 16  ;;  %v553_v53 = vshll.u32 %v5123_v47, 16  ;;  %v533_v56 = vrot.slane %v532_v42, 4  ;;  %v563_v60 = vshrl.u32 %v5129_v49, 16  ;;  %v4609_v8 = vld [vmem:[%s6383_s3 + $0x2a0] ss:$8 sps:$4 sm:$0xff]  }
  0x2a   : > { %v543_v57 = vrot.slane %v542_v43, 4  ;;  %v5145_v1 = vcombine.low %v5123_v47, %v5129_v49  ;;  %v571_v12 = vrot.slane %v569_v0, 5  ;;  %v5170_v21 = vld [vmem:[%s5022_s25 + $0x28] sm:$0xf]  ;;  %v5173_v22 = vld [vmem:[%s5022_s25 + $0x2c] sm:$0x1] }
  0x2b   : > { %831 = vmatmul.mubr.bf16.vlgmr.msra.gmra.mrb[0].mxu1 %v3859_v17  ;;  %1899 = vmatmul.mubr.bf16.vlgmr.msra.gmra.mrb[0].mxu0 %v3860_v38  ;;  %v552_v62 = vrot.slane %v550_v51, 4  ;;  %v555_v63 = vrot.slane %v553_v53, 5  ;;  %v538_v3 = vsel %vm5057_vm3, %v533_v56, %v537_v33  ;;  %v565_v6 = vrot.slane %v563_v60, 4  ;;  %v5167_v17 = vld [vmem:[%s5022_s25 + $0x24] sm:$0xf] }
  0x2c   : > { %1040 = vmatpush1.bf16.msra.mxu1 %v4597_v9  ;;  %840 = vmatprep.mubr.bf16.mxu1 %v4829_v2  ;;  %v548_v4 = vsel %vm5057_vm3, %v543_v57, %v547_v44  ;;  %v4614_v9 = vld [vmem:[%s6383_s3 + $0x2b4] ss:$8 sps:$4 sm:$0xff]   ;;  %v574_v23 = vshrl.u32 %v5167_v17, 16  ;;  %v577_v25 = vshll.u32 %v5167_v17, 16  ;;  %v583_v26 = vshll.u32 %v5170_v21, 16 }
  0x2d   : > { %1041 = vmatprep.subr.bf16.mxu1 %v4608_v15  ;;  %2121 = vmatpush1.bf16.msra.mxu0 %v4600_v27  ;;  %v5151_v7 = vcombine.low %v538_v3, %v548_v4  ;;  %v556_v10 = vor.u32 %v555_v63, %v552_v62  ;;  %v566_v13 = vor.u32 %v565_v6, %v561_v5  ;;  %v4626_v15 = vld [vmem:[%s6383_s3 + $0x34] ss:$8 sps:$4 sm:$0xff]   ;;  %v587_v27 = vshrl.u32 %v5170_v21, 16  ;;  %v4612_v28 = vld [vmem:[%s6383_s3 + $0x2b0] ss:$8 sps:$4 sm:$0xff]  }
  0x2e   : > { %1908 = vmatprep.mubr.bf16.mxu0 %v4829_v2  ;;  %2122 = vmatprep.subr.bf16.mxu0 %v4605_v39  ;;  %v576_v31 = vrot.slane %v574_v23, 4  ;;  %v593_v32 = vshll.u32 %v5173_v22, 16  ;;  %v5188_v33 = vcombine.low %v5167_v17, %v5170_v21  ;;  %v585_v39 = vrot.slane %v583_v26, 5  ;;  %v4633_v44 = vld [vmem:[%s6383_s3 + $0x40] ss:$8 sps:$4 sm:$0xff]  }
  0x2f   : > { %v557_v18 = vrot.slane %v556_v10, 4  ;;  %v567_v24 = vrot.slane %v566_v13, 4  ;;  %v4618_v51 = vld [vmem:[%s6383_s3 + $0x2c0] ss:$8 sps:$4 sm:$0xff]   ;;  %v4623_v53 = vld [vmem:[%s6383_s3 + $0x2d4] ss:$8 sps:$4 sm:$0xff]  }
  0x30   : > { %1042 = vmatpush1.bf16.msra.mxu1 %v4606_v40  ;;  %v589_v40 = vrot.slane %v587_v27, 4  ;;  %v595_v59 = vrot.slane %v593_v32, 5  ;;  %v5213_v60 = vld [vmem:[%s5022_s25 + $0x30] sm:$0xf]  ;;  %v5217_v62 = vld [vmem:[%s5022_s25 + $0x34] sm:$0xf] }
  0x31   : > { %1043 = vmatprep.subr.bf16.mxu1 %v4617_v45  ;;  %2123 = vmatpush1.bf16.msra.mxu0 %v4603_v41  ;;  %v562_v29 = vsel %vm5057_vm3, %v557_v18, %v561_v5  ;;  %v572_v36 = vsel %vm5057_vm3, %v567_v24, %v571_v12  ;;  %v4620_v41 = vld [vmem:[%s6383_s3 + $0x2c4] ss:$8 sps:$4 sm:$0xff]   ;;  %v598_v63 = vshrl.u32 %v5213_v60, 16  ;;  %v601_v0 = vshll.u32 %v5213_v60, 16  ;;  %v4639_v4 = vld [vmem:[%s6383_s3 + $0x50] ss:$8 sps:$4 sm:$0xff]  }
  0x32   : > { %2124 = vmatprep.subr.bf16.mxu0 %v4611_v48  ;;  %v590_v43 = vor.u32 %v589_v40, %v585_v39  ;;  %v4635_v45 = vld [vmem:[%s6383_s3 + $0x44] ss:$8 sps:$4 sm:$0xff]   ;;  %v5203_v48 = vcombine.low %v562_v29, %v572_v36  ;;  %v607_v3 = vshll.u32 %v5217_v62, 16  ;;  %v4641_v5 = vld [vmem:[%s6383_s3 + $0x54] ss:$8 sps:$4 sm:$0xff]   ;;  %v1175_v18 = vrot.slane %v5051_v55, 5 }
  0x33   : > { %841 = vmatmul.mubr.bf16.gmra.mrb[4].mxu1 %v3860_v38  ;;  %1909 = vmatmul.mubr.bf16.gmra.mrb[4].mxu0 %v5151_v7  ;;  %v579_v38 = vrot.slane %v577_v25, 5  ;;  %v600_v6 = vrot.slane %v598_v63, 4  ;;  %v4629_v12 = vld [vmem:[%s6383_s3 + $0x2e4] ss:$8 sps:$4 sm:$0xff]   ;;  %v5241_v13 = vld [vmem:[%s5022_s25 + $0x38] sm:$0x1]  ;;  %v5255_v25 = vcombine.low %v5213_v60, %v5217_v62 }
  0x34   : > { %850 = vmatprep.mubr.bf16.mxu1 %v4829_v2  ;;  %1044 = vmatpush1.bf16.msra.mxu1 %v4615_v61  ;;  %v591_v57 = vrot.slane %v590_v43, 4  ;;  %v1172_v61 = vrot.slane %v5048_v54, 5  ;;  %v4621_v54 = vld [vmem:[%s6383_s3 + $0x2d0] ss:$8 sps:$4 sm:$0xff]   ;;  %v5248_v23 = vld [vmem:[%s5022_s25 + $0x3c] sm:$0xf] }
  0x35   : > { %1045 = vmatprep.subr.bf16.mxu1 %v4626_v15  ;;  %2125 = vmatpush1.bf16.msra.mxu0 %v4609_v8  ;;  %v580_v42 = vor.u32 %v579_v38, %v576_v31  ;;  %v603_v8 = vrot.slane %v601_v0, 5  ;;  %v611_v15 = vshrl.u32 %v5217_v62, 16  ;;  %v5251_v24 = vld [vmem:[%s5022_s25 + $0x40] sm:$0xf]  ;;  %v3908_v27 = vrot.slane %v5045_v52, 9 }
  0x36   : > { %1918 = vmatprep.mubr.bf16.mxu0 %v4829_v2  ;;  %2126 = vmatprep.subr.bf16.mxu0 %v4614_v9  ;;  %v596_v10 = vsel %vm5057_vm3, %v591_v57, %v595_v59  ;;  %v4627_v26 = vld [vmem:[%s6383_s3 + $0x2e0] ss:$8 sps:$4 sm:$0xff]   ;;  %v622_v36 = vshrl.u32 %v5248_v23, 16  ;;  %v625_v38 = vshll.u32 %v5248_v23, 16  ;;  %v631_v52 = vshll.u32 %v5251_v24, 16 }
  0x37   : > { %v581_v56 = vrot.slane %v580_v42, 4  ;;  %v604_v29 = vor.u32 %v603_v8, %v600_v6  ;;  %v613_v31 = vrot.slane %v611_v15, 4  ;;  %v635_v42 = vshrl.u32 %v5251_v24, 16  ;;  %v4647_v43 = vld [vmem:[%s6383_s3 + $0x64] ss:$8 sps:$4 sm:$0xff]  }
  0x38   : > { %1046 = vmatpush1.bf16.msra.mxu1 %v4624_v14  ;;  %v5243_v14 = vrot.slane %v607_v3, 5  ;;  %v1179_v59 = vrot.slane %v5088_v19, 5  ;;  %v5296_v63 = vld [vmem:[%s5022_s25 + $0x44] sm:$0x1]  ;;  %v624_v0 = vrot.slane %v622_v36, 4  ;;  %v627_v3 = vrot.slane %v625_v38, 5 }
  0x39   : > { %2127 = vmatpush1.bf16.msra.mxu0 %v4612_v28  ;;  %1047 = vmatprep.subr.bf16.mxu1 %v4635_v45  ;;  %v586_v9 = vsel %vm5057_vm3, %v581_v56, %v585_v39  ;;  %v1174_v28 = vrot.slane %v1172_v61, 4  ;;  %v4645_v39 = vld [vmem:[%s6383_s3 + $0x60] ss:$8 sps:$4 sm:$0xff]   ;;  %v3909_v45 = vrot.slane %v5085_v16, 9  ;;  %v605_v57 = vrot.slane %v604_v29, 4 }
  0x3a   : > { %2128 = vmatprep.subr.bf16.mxu0 %v4620_v41  ;;  %v5262_v55 = vcombine.low %v586_v9, %v596_v10  ;;  %v614_v40 = vor.u32 %v613_v31, %v5243_v14  ;;  %v617_v41 = vshll.u32 %v5241_v13, 16  ;;  %v4638_v16 = vld [vmem:[%s6383_s3 + $0x304] ss:$8 sps:$4 sm:$0xff]   ;;  %v4651_v8 = vld [vmem:[%s6383_s3 + $0x70] ss:$8 sps:$4 sm:$0xff]   ;;  %v1182_v15 = vrot.slane %v5091_v20, 5 }
  0x3b   : > { %851 = vmatmul.mubr.bf16.gmra.mrb[8].mxu1 %v5151_v7  ;;  %1919 = vmatmul.mubr.bf16.gmra.mrb[8].mxu0 %v5203_v48  ;;  %v1176_v56 = vsel %vm5266_vm6, %v1174_v28, %v1175_v18  ;;  %v5309_v6 = vld [vmem:[%s5022_s25 + $0x4c] sm:$0xf]  ;;  %v4653_v9 = vld [vmem:[%s6383_s3 + $0x74] ss:$8 sps:$4 sm:$0xff]   ;;  %v641_v18 = vshll.u32 %v5296_v63, 16  ;;  %v628_v29 = vor.u32 %v627_v3, %v624_v0 }
  0x3c   : > { %860 = vmatprep.mubr.bf16.mxu1 %v4829_v2  ;;  %1048 = vmatpush1.bf16.msra.mxu1 %v4633_v44  ;;  %v4632_v44 = vld [vmem:[%s6383_s3 + $0x2f4] ss:$8 sps:$4 sm:$0xff]   ;;  %v615_v19 = vrot.slane %v614_v40, 4  ;;  %v1180_v40 = vsel %vm5266_vm6, %v3909_v45, %v1179_v59  ;;  %v4650_v45 = vld [vmem:[%s6383_s3 + $0x324] ss:$8 sps:$4 sm:$0xff]  }
  0x3d   : > { %2129 = vmatpush1.bf16.msra.mxu0 %v4618_v51  ;;  %1928 = vmatprep.mubr.bf16.mxu0 %v4829_v2  ;;  %v4630_v51 = vld [vmem:[%s6383_s3 + $0x2f0] ss:$8 sps:$4 sm:$0xff]   ;;  %v4644_v28 = vld [vmem:[%s6383_s3 + $0x314] ss:$8 sps:$4 sm:$0xff]   ;;  %s428_s9 = scalar_select %p424_p11, 1, 0 }
  0x3e   : > { %2130 = vmatprep.subr.bf16.mxu0 %v4623_v53  ;;  %1049 = vmatprep.subr.bf16.mxu1 %v4641_v5  ;;  %v1173_v53 = vsel %vm5266_vm6, %v3908_v27, %v1172_v61  ;;  %v5302_v61 = vrot.slane %v631_v52, 5  ;;  %v619_v5 = vrot.slane %v617_v41, 5  ;;  %v610_v27 = vsel %vm5057_vm3, %v605_v57, %v5243_v14  ;;  %v5358_v57 = vld [vmem:[%s5022_s25 + $0x50] sm:$0x1]  ;;  %v4786_v58 = vld [vmem:[%s6383_s3 + $0x260] ss:$8 sps:$4 sm:$0xff]  }
  0x3f   : > { %v5317_v10 = vcombine.low %v1173_v53, %v1176_v56  ;;  %v655_v14 = vshll.u32 %v5309_v6, 16  ;;  %v659_v52 = vshrl.u32 %v5309_v6, 16  ;;  %v1186_v56 = vrot.slane %v5129_v49, 5 }
  0x40   : > { %1050 = vmatpush1.bf16.msra.mxu1 %v4639_v4  ;;  %v637_v4 = vrot.slane %v635_v42, 4  ;;  %v620_v36 = vsel %vm5057_vm3, %v615_v19, %v619_v5  ;;  %v4642_v42 = vld [vmem:[%s6383_s3 + $0x310] ss:$8 sps:$4 sm:$0xff]   ;;  %v5364_v19 = vcombine.low %v5248_v23, %v5251_v24  ;;  %v3910_v5 = vrot.slane %v5123_v47, 9  ;;  %v4656_v47 = vld [vmem:[%s6383_s3 + $0x334] ss:$8 sps:$4 sm:$0xff]  }
  0x41   : > { %2131 = vmatpush1.bf16.msra.mxu0 %v4621_v54  ;;  %1051 = vmatprep.subr.bf16.mxu1 %v4647_v43  ;;  %v5306_v54 = vld [vmem:[%s5022_s25 + $0x48] sm:$0xf]  ;;  %v643_v43 = vrot.slane %v641_v18, 5  ;;  %v657_v0 = vrot.slane %v655_v14, 5  ;;  %v661_v3 = vrot.slane %v659_v52, 4  ;;  %v1193_v14 = vrot.slane %v5170_v21, 5 }
  0x42   : > { %2132 = vmatprep.subr.bf16.mxu0 %v4629_v12  ;;  %v1181_v12 = vrot.slane %v1179_v59, 4  ;;  %v638_v31 = vor.u32 %v637_v4, %v5302_v61  ;;  %v646_v20 = vshrl.u32 %v5306_v54, 16  ;;  %v649_v38 = vshll.u32 %v5306_v54, 16  ;;  %v4654_v52 = vld [vmem:[%s6383_s3 + $0x330] ss:$8 sps:$4 sm:$0xff]  }
  0x43   : > { %861 = vmatmul.mubr.bf16.gmra.mrb[12].mxu1 %v5203_v48  ;;  %1929 = vmatmul.mubr.bf16.gmra.mrb[12].mxu0 %v5262_v55 }
  0x44   : > { %870 = vmatprep.mubr.bf16.mxu1 %v4829_v2  ;;  %1052 = vmatpush1.bf16.msra.mxu1 %v4645_v39  ;;  %v4659_v39 = vld [vmem:[%s6383_s3 + $0x104] ss:$8 sps:$4 sm:$0xff]   ;;  %v1183_v41 = vsel %vm5266_vm6, %v1181_v12, %v1182_v15  ;;  %v639_v53 = vrot.slane %v638_v31, 4  ;;  %v648_v59 = vrot.slane %v646_v20, 4  ;;  %v4648_v15 = vld [vmem:[%s6383_s3 + $0x320] ss:$8 sps:$4 sm:$0xff]  }
  0x45   : > { %2133 = vmatpush1.bf16.msra.mxu0 %v4627_v26  ;;  %2152 = vmatprep.mubr.bf16.mxu0 %v4829_v2  ;;  %v4636_v26 = vld [vmem:[%s6383_s3 + $0x300] ss:$8 sps:$4 sm:$0xff]   ;;  %v5360_v4 = vcombine.low %v1180_v40, %v1183_v41  ;;  %v3907_v31 = vrot.slane %v5008_v34, 9  ;;  %v4662_v40 = vld [vmem:[%s6383_s3 + $0x344] ss:$8 sps:$4 sm:$0xff]   ;;  %v1165_v41 = vrot.slane %v5012_v35, 5 }
  0x46   : > { %2134 = vmatprep.subr.bf16.mxu0 %v4632_v44  ;;  %1053 = vmatprep.subr.bf16.mxu1 %v4653_v9  ;;  %v5350_v44 = vcombine.low %v610_v27, %v620_v36  ;;  %v1189_v9 = vrot.slane %v5132_v50, 5  ;;  %v644_v12 = vsel %vm5057_vm3, %v639_v53, %v643_v43  ;;  %v665_v27 = vshll.u32 %v5358_v57, 16  ;;  %v4673_v34 = vld [vmem:[%s6383_s3 + $0x124] ss:$8 sps:$4 sm:$0xff]  }
  0x47   : > { %v5384_v50 = vcombine.low %v5306_v54, %v5309_v6  ;;  %v3911_v43 = vrot.slane %v5167_v17, 9  ;;  %v5410_v21 = vsel %vm5266_vm6, %v3907_v31, %v1165_v41  ;;  %v4660_v17 = vld [vmem:[%s6383_s3 + $0x340] ss:$8 sps:$4 sm:$0xff]   ;;  %v4681_v31 = vld [vmem:[%s6383_s3 + $0x370] ss:$8 sps:$4 sm:$0xff]  }
  0x48   : > { %1054 = vmatpush1.bf16.msra.mxu1 %v4651_v8  ;;  %v1188_v8 = vrot.slane %v1186_v56, 4 }
  0x49   : > { %2135 = vmatpush1.bf16.msra.mxu0 %v4630_v51  ;;  %1348 = vmatprep.subr.bf16.mxu1 %v4659_v39  ;;  %v629_v51 = vrot.slane %v628_v29, 4  ;;  %v1168_v39 = vrot.slane %v5026_v37, 5 }
  0x4a   : > { %2368 = vmatprep.subr.bf16.mxu0 %v4638_v16  ;;  %v651_v16 = vrot.slane %v649_v38, 5  ;;  %v1190_v29 = vsel %vm5266_vm6, %v1188_v8, %v1189_v9  ;;  %v667_v38 = vrot.slane %v665_v27, 5  ;;  %v4667_v8 = vld [vmem:[%s6383_s3 + $0x350] ss:$8 sps:$4 sm:$0xff]   ;;  %v4676_v9 = vld [vmem:[%s6383_s3 + $0x364] ss:$8 sps:$4 sm:$0xff]  }
  0x4b   : > { %871 = vmatmul.mubr.bf16.gmra.mrb[16].mxu1 %v5262_v55  ;;  %v634_v49 = vsel %vm5057_vm3, %v629_v51, %v5302_v61  ;;  %v1167_v51 = vrot.slane %v1165_v41, 4  ;;  %v4683_v27 = vld [vmem:[%s6383_s3 + $0x374] ss:$8 sps:$4 sm:$0xff]  }
  0x4c   : > { %880 = vmatprep.mubr.bf16.mxu1 %v4829_v2  ;;  %2153 = vmatmul.mubr.bf16.vlgmr.msra.gmra.mrb[0].mxu0 %v5317_v10  ;;  %v652_v18 = vor.u32 %v651_v16, %v648_v59  ;;  %v5387_v61 = vcombine.low %v634_v49, %v644_v12  ;;  %v4669_v59 = vld [vmem:[%s6383_s3 + $0x354] ss:$8 sps:$4 sm:$0xff]  }
  0x4d   : > { %2369 = vmatpush1.bf16.msra.mxu0 %v4636_v26  ;;  %2162 = vmatprep.mubr.bf16.mxu0 %v4829_v2  ;;  %v662_v26 = vor.u32 %v661_v3, %v657_v0  ;;  %v5426_v16 = vsel %vm5266_vm6, %v1167_v51, %v1168_v39  ;;  %v1194_v3 = vsel %vm5266_vm6, %v3911_v43, %v1193_v14  ;;  %v4680_v39 = vld [vmem:[%s6383_s3 + $0x134] ss:$8 sps:$4 sm:$0xff]   ;;  %v3914_v43 = vrot.slane %v5306_v54, 9 }
  0x4e   : > { %2370 = vmatprep.subr.bf16.mxu0 %v4644_v28  ;;  %v1187_v28 = vsel %vm5266_vm6, %v3910_v5, %v1186_v56  ;;  %v653_v20 = vrot.slane %v652_v18, 4  ;;  %v1195_v56 = vrot.slane %v1193_v14, 4  ;;  %v1200_v5 = vrot.slane %v5217_v62, 5  ;;  %v5511_v51 = vld [vmem:[%s5022_s25 + $0x54] sm:$0xf] }
  0x4f   : > { %v663_v36 = vrot.slane %v662_v26, 4  ;;  %v1203_v62 = vrot.slane %v5241_v13, 5  ;;  %v4674_v26 = vld [vmem:[%s6383_s3 + $0x360] ss:$8 sps:$4 sm:$0xff]   ;;  %v457_v54 = vld [vmem:[%s5022_s25 + $0x5c] sm:$0x1] }
  0x50   : > { %v658_v37 = vsel %vm5057_vm3, %v653_v20, %v657_v0  ;;  %v3931_v0 = vcombine.low %v5410_v21, %v5426_v16  ;;  %v1202_v18 = vrot.slane %v1200_v5, 4  ;;  %v4690_v20 = vld [vmem:[%s6383_s3 + $0x384] ss:$8 sps:$4 sm:$0xff]   ;;  %v4724_v21 = vld [vmem:[%s6383_s3 + $0x1a0] ss:$8 sps:$4 sm:$0xff]  }
  0x51   : > { %2371 = vmatpush1.bf16.msra.mxu0 %v4642_v42  ;;  %v5405_v42 = vcombine.low %v1187_v28, %v1190_v29  ;;  %v668_v53 = vsel %vm5057_vm3, %v663_v36, %v667_v38  ;;  %v4666_v28 = vld [vmem:[%s6383_s3 + $0x114] ss:$8 sps:$4 sm:$0xff]   ;;  %v1207_v29 = vrot.slane %v5251_v24, 5  ;;  %v4664_v24 = vld [vmem:[%s6383_s3 + $0x110] ss:$8 sps:$4 sm:$0xff]   ;;  %v3913_v38 = vrot.slane %v5248_v23, 9 }
  0x52   : > { %2372 = vmatprep.subr.bf16.mxu0 %v4650_v45  ;;  %v1196_v45 = vrot.slane %v5173_v22, 5  ;;  %v5431_v22 = vcombine.low %v658_v37, %v668_v53  ;;  %v4671_v23 = vld [vmem:[%s6383_s3 + $0x120] ss:$8 sps:$4 sm:$0xff]   ;;  %v1217_v37 = vrot.slane %v5358_v57, 5  ;;  %v5516_v53 = vld [vmem:[%s5022_s25 + $0x58] sm:$0xf] }
  0x53   : > { %881 = vmatmul.mubr.bf16.gmra.mrb[20].mxu1 %v5350_v44  ;;  %v1209_v14 = vrot.slane %v1207_v29, 4  ;;  %v1208_v35 = vsel %vm5266_vm6, %v3913_v38, %v1207_v29  ;;  %v2014_v57 = vrot.slane %v5516_v53, 5  ;;  %v4701_v38 = vld [vmem:[%s6383_s3 + $0x164] ss:$8 sps:$4 sm:$0xff]   ;;  %s385_s25 = scalar_select %p384_p10, %s3836_s30, 15 }
  0x54   : > { %890 = vmatprep.mubr.bf16.mxu1 %v4829_v2  ;;  %2163 = vmatmul.mubr.bf16.gmra.mrb[4].mxu0 %v5360_v4  ;;  %v1197_v49 = vsel %vm5266_vm6, %v1195_v56, %v1196_v45  ;;  %v1742_v56 = vshrl.u32 %v5511_v51, 16  ;;  %v4687_v45 = vld [vmem:[%s6383_s3 + $0x144] ss:$8 sps:$4 sm:$0xff]   ;;  %v4733_v16 = vld [vmem:[%s6383_s3 + $0x1b4] ss:$8 sps:$4 sm:$0xff]  }
  0x55   : > { %2172 = vmatprep.mubr.bf16.mxu0 %v4829_v2  ;;  %2373 = vmatpush1.bf16.msra.mxu0 %v4648_v15  ;;  %v5446_v12 = vcombine.low %v1194_v3, %v1197_v49  ;;  %v3912_v15 = vrot.slane %v5213_v60, 9  ;;  %v4657_v60 = vld [vmem:[%s6383_s3 + $0x100] ss:$8 sps:$4 sm:$0xff]   ;;  %v1751_v3 = vshll.u32 %v5516_v53, 16  ;;  %v2016_v29 = vrot.slane %v2014_v57, 4  ;;  %s6437_s25 = smov (!%p384_p10, %s385_s25), 15 }
  0x56   : > { %2374 = vmatprep.subr.bf16.mxu0 %v4656_v47  ;;  %v1204_v47 = vsel %vm5266_vm6, %v1202_v18, %v1203_v62  ;;  %v4694_v62 = vld [vmem:[%s6383_s3 + $0x154] ss:$8 sps:$4 sm:$0xff]   ;;  %s4506_s14 = smul.u32 3, %s6437_s25 }
  0x57   : > { %v1201_v13 = vsel %vm5266_vm6, %v3912_v15, %v1200_v5  ;;  %v1755_v5 = vshrl.u32 %v5516_v53, 16  ;;  %v4685_v15 = vld [vmem:[%s6383_s3 + $0x140] ss:$8 sps:$4 sm:$0xff]   ;;  %v1753_v18 = vrot.slane %v1751_v3, 5  ;;  %v4711_v3 = vld [vmem:[%s6383_s3 + $0x3b4] ss:$8 sps:$4 sm:$0xff]  }
  0x58   : > { %v5479_v36 = vcombine.low %v1201_v13, %v1204_v47  ;;  %v2017_v13 = vrot.slane %v457_v54, 5  ;;  %v1761_v47 = vshll.u32 %v457_v54, 16  ;;  %v4704_v54 = vld [vmem:[%s6383_s3 + $0x3a4] ss:$8 sps:$4 sm:$0xff]   ;;  %s392_s7 = sadd.s32 %s4506_s14, %s4923_s26 }
  0x59   : > { %2375 = vmatpush1.bf16.msra.mxu0 %v4654_v52  ;;  %v1210_v52 = vrot.slane %v5296_v63, 5  ;;  %v1214_v63 = vrot.slane %v5309_v6, 5  ;;  %s3840_s11 = sshll.u32 %s392_s7, 2 }
  0x5a   : > { %2376 = vmatprep.subr.bf16.mxu0 %v4662_v40  ;;  %v4678_v40 = vld [vmem:[%s6383_s3 + $0x130] ss:$8 sps:$4 sm:$0xff]   ;;  %s5692_s13 = scalar_lea.vmem %s6382_s2, %s3840_s11 }
  0x5b   : > { %891 = vmatmul.mubr.bf16.gmra.mrb[24].mxu1 %v5387_v61  ;;  %v1216_v6 = vrot.slane %v1214_v63, 4 }
  0x5c   : > { %900 = vmatprep.mubr.bf16.mxu1 %v4829_v2  ;;  %2173 = vmatmul.mubr.bf16.gmra.mrb[8].mxu0 %v5405_v42 }
  0x5d   : > { %2182 = vmatprep.mubr.bf16.mxu0 %v4829_v2  ;;  %2377 = vmatpush1.bf16.msra.mxu0 %v4660_v17  ;;  %v1745_v17 = vshll.u32 %v5511_v51, 16 }
  0x5e   : > { %2378 = vmatprep.subr.bf16.mxu0 %v4669_v59  ;;  %v1744_v59 = vrot.slane %v1742_v56, 4  ;;  %v4688_v56 = vld [vmem:[%s6383_s3 + $0x380] ss:$8 sps:$4 sm:$0xff]  }
  0x5f   : > { %v1747_v49 = vrot.slane %v1745_v17, 5  ;;  %v4695_v17 = vld [vmem:[%s6383_s3 + $0x390] ss:$8 sps:$4 sm:$0xff]  }
  0x61   : > { %2379 = vmatpush1.bf16.msra.mxu0 %v4667_v8  ;;  %v1215_v8 = vsel %vm5266_vm6, %v3914_v43, %v1214_v63  ;;  %v4699_v63 = vld [vmem:[%s6383_s3 + $0x160] ss:$8 sps:$4 sm:$0xff]  }
  0x62   : > { %2380 = vmatprep.subr.bf16.mxu0 %v4676_v9  ;;  %v1218_v9 = vsel %vm5266_vm6, %v1216_v6, %v1217_v37  ;;  %v4706_v6 = vld [vmem:[%s6383_s3 + $0x170] ss:$8 sps:$4 sm:$0xff]   ;;  %v4714_v37 = vld [vmem:[%s6383_s3 + $0x184] ss:$8 sps:$4 sm:$0xff]  }
  0x63   : > { %901 = vmatmul.mubr.bf16.gmra.mrb[28].mxu1 %v5431_v22 }
  0x64   : > { %1071 = vmatprep.mubr.bf16.mxu1 %v4829_v2  ;;  %2183 = vmatmul.mubr.bf16.gmra.mrb[12].mxu0 %v5446_v12 }
  0x65   : > { %2192 = vmatprep.mubr.bf16.mxu0 %v4829_v2  ;;  %2381 = vmatpush1.bf16.msra.mxu0 %v4674_v26  ;;  %v1748_v26 = vor.u32 %v1747_v49, %v1744_v59  ;;  %v4702_v59 = vld [vmem:[%s6383_s3 + $0x3a0] ss:$8 sps:$4 sm:$0xff]   ;;  %v4717_v49 = vld [vmem:[%s6383_s3 + $0x3c4] ss:$8 sps:$4 sm:$0xff]  }
  0x66   : > { %2382 = vmatprep.subr.bf16.mxu0 %v4683_v27  ;;  %v1757_v27 = vrot.slane %v1755_v5, 4  ;;  %v4715_v5 = vld [vmem:[%s6383_s3 + $0x3c0] ss:$8 sps:$4 sm:$0xff]  }
  0x69   : > { %2383 = vmatpush1.bf16.msra.mxu0 %v4681_v31  ;;  %v1749_v31 = vrot.slane %v1748_v26, 4  ;;  %v4712_v26 = vld [vmem:[%s6383_s3 + $0x180] ss:$8 sps:$4 sm:$0xff]  }
  0x6a   : > { %2638 = vmatprep.subr.bf16.mxu0 %v4690_v20  ;;  %v1758_v20 = vor.u32 %v1757_v27, %v1753_v18  ;;  %v4720_v27 = vld [vmem:[%s6383_s3 + $0x194] ss:$8 sps:$4 sm:$0xff]  }
  0x6b   : > { %1072 = vmatmul.mubr.bf16.vlgmr.msra.gmra.mrb[0].mxu1 %v3883_v46  ;;  %v1211_v46 = vsel %vm5266_vm6, %v1209_v14, %v1210_v52  ;;  %v1763_v14 = vrot.slane %v1761_v47, 5  ;;  %v1754_v52 = vsel %vm5057_vm3, %v1749_v31, %v1753_v18  ;;  %v4728_v18 = vld [vmem:[%s6383_s3 + $0x3e0] ss:$8 sps:$4 sm:$0xff]   ;;  %v4718_v47 = vld [vmem:[%s6383_s3 + $0x190] ss:$8 sps:$4 sm:$0xff]  }
  0x6c   : > { %1349 = vmatpush1.bf16.msra.mxu1 %v4657_v60  ;;  %1081 = vmatprep.mubr.bf16.mxu1 %v4829_v2  ;;  %v5507_v41 = vcombine.low %v1208_v35, %v1211_v46  ;;  %v4021_v60 = vrot.slane %v5511_v51, 9  ;;  %v4739_v31 = vld [vmem:[%s6383_s3 + $0x1c4] ss:$8 sps:$4 sm:$0xff]  }
  0x6d   : > { %1350 = vmatprep.subr.bf16.mxu1 %v4666_v28  ;;  %2193 = vmatmul.mubr.bf16.gmra.mrb[16].mxu0 %v5479_v36  ;;  %v5541_v28 = vcombine.low %v1215_v8, %v1218_v9  ;;  %v4723_v8 = vld [vmem:[%s6383_s3 + $0x3d4] ss:$8 sps:$4 sm:$0xff]   ;;  %v4721_v9 = vld [vmem:[%s6383_s3 + $0x3d0] ss:$8 sps:$4 sm:$0xff]  }
  0x6e   : > { %2202 = vmatprep.mubr.bf16.mxu0 %v4829_v2  ;;  %v2015_v46 = vsel %vm5266_vm6, %v4021_v60, %v2014_v57  ;;  %v4709_v57 = vld [vmem:[%s6383_s3 + $0x3b0] ss:$8 sps:$4 sm:$0xff]  }
  0x6f   : > { %v4734_v60 = vld [vmem:[%s6383_s3 + $0x3f0] ss:$8 sps:$4 sm:$0xff]  }
  0x70   : > { %1351 = vmatpush1.bf16.msra.mxu1 %v4664_v24  ;;  %v4692_v24 = vld [vmem:[%s6383_s3 + $0x150] ss:$8 sps:$4 sm:$0xff]  }
  0x71   : > { %1352 = vmatprep.subr.bf16.mxu1 %v4673_v34  ;;  %v1759_v34 = vrot.slane %v1758_v20, 4  ;;  %v429_v20 = vstv %s428_s9 }
  0x72   : > { %vm5700_vm7 = vcmp.eq.s32.totalorder %v429_v20, 1  ;;  %v4779_v20 = vld [vmem:[%s6383_s3 + $0x234] ss:$8 sps:$4 sm:$0xff]  }
  0x73   : > { %1082 = vmatmul.mubr.bf16.gmra.mrb[4].mxu1 %v5077_v11  ;;  %v1764_v35 = vsel %vm5057_vm3, %v1759_v34, %v1763_v14  ;;  %v425_v34 = vld [vmem:[%s5692_s13] sm:$0xf] }
  0x74   : > { %1091 = vmatprep.mubr.bf16.mxu1 %v4829_v2  ;;  %1353 = vmatpush1.bf16.msra.mxu1 %v4671_v23  ;;  %v2018_v23 = vsel %vm5266_vm6, %v2016_v29, %v2017_v13  ;;  %v4742_v13 = vld [vmem:[%s6383_s3 + $0x404] ss:$8 sps:$4 sm:$0xff]  }
  0x75   : > { %1354 = vmatprep.subr.bf16.mxu1 %v4680_v39  ;;  %2203 = vmatmul.mubr.bf16.gmra.mrb[20].mxu0 %v5507_v41  ;;  %v5563_v39 = vcombine.low %v1754_v52, %v1764_v35  ;;  %v5569_v43 = vcombine.low %v2015_v46, %v2018_v23  ;;  %v4726_v29 = vld [vmem:[%s6383_s3 + $0x1a4] ss:$8 sps:$4 sm:$0xff]   ;;  %v4743_v52 = vld [vmem:[%s6383_s3 + $0x1d0] ss:$8 sps:$4 sm:$0xff]   ;;  %v4749_v23 = vld [vmem:[%s6383_s3 + $0x1e0] ss:$8 sps:$4 sm:$0xff]  }
  0x76   : > { %2212 = vmatprep.mubr.bf16.mxu0 %v4829_v2  ;;  %v426_v35 = vld [vmem:[%s5692_s13 + $0x4] sm:$0xf] }
  0x77   : > { %v4751_v46 = vld [vmem:[%s6383_s3 + $0x1e4] ss:$8 sps:$4 sm:$0xff]  }
  0x78   : > { %1355 = vmatpush1.bf16.msra.mxu1 %v4678_v40  ;;  %v4708_v40 = vld [vmem:[%s6383_s3 + $0x174] ss:$8 sps:$4 sm:$0xff]  }
  0x79   : > { %1356 = vmatprep.subr.bf16.mxu1 %v4687_v45  ;;  %v4697_v45 = vld [vmem:[%s6383_s3 + $0x394] ss:$8 sps:$4 sm:$0xff]  }
  0x7b   : > { %1092 = vmatmul.mubr.bf16.gmra.mrb[8].mxu1 %v5105_v30 }
  0x7c   : > { %1101 = vmatprep.mubr.bf16.mxu1 %v4829_v2  ;;  %1357 = vmatpush1.bf16.msra.mxu1 %v4685_v15  ;;  %v4730_v15 = vld [vmem:[%s6383_s3 + $0x3e4] ss:$8 sps:$4 sm:$0xff]  }
  0x7d   : > { %1358 = vmatprep.subr.bf16.mxu1 %v4694_v62  ;;  %2213 = vmatmul.mubr.bf16.gmra.mrb[24].mxu0 %v5541_v28  ;;  %v4736_v62 = vld [vmem:[%s6383_s3 + $0x3f4] ss:$8 sps:$4 sm:$0xff]  }
  0x7e   : > { %2222 = vmatprep.mubr.bf16.mxu0 %v4829_v2 }
  0x80   : > { %1359 = vmatpush1.bf16.msra.mxu1 %v4692_v24  ;;  %v4745_v24 = vld [vmem:[%s6383_s3 + $0x1d4] ss:$8 sps:$4 sm:$0xff]  }
  0x81   : > { %1360 = vmatprep.subr.bf16.mxu1 %v4701_v38  ;;  %v5697_v38 = vcombine.low %v5511_v51, %v5516_v53  ;;  %v5716_v51 = vsel %vm5700_vm7, %v425_v34, 0  ;;  %v5720_v53 = vsel %vm5700_vm7, %v426_v35, 0  ;;  %v4780_v35 = vld [vmem:[%s6383_s3 + $0x230] ss:$8 sps:$4 sm:$0xff]  }
  0x83   : > { %1102 = vmatmul.mubr.bf16.gmra.mrb[12].mxu1 %v5145_v1 }
  0x84   : > { %1111 = vmatprep.mubr.bf16.mxu1 %v4829_v2  ;;  %1361 = vmatpush1.bf16.msra.mxu1 %v4699_v63  ;;  %v4757_v63 = vld [vmem:[%s6383_s3 + $0x1f4] ss:$8 sps:$4 sm:$0xff]  }
  0x85   : > { %1362 = vmatprep.subr.bf16.mxu1 %v4708_v40  ;;  %2223 = vmatmul.mubr.bf16.gmra.mrb[28].mxu0 %v5569_v43  ;;  %v4071_v40 = vcombine.low %v5716_v51, %v5720_v53 }
  0x86   : > { %2400 = vmatprep.mubr.bf16.mxu0 %v4829_v2 }
  0x88   : > { %1363 = vmatpush1.bf16.msra.mxu1 %v4706_v6  ;;  %v4755_v6 = vld [vmem:[%s6383_s3 + $0x1f0] ss:$8 sps:$4 sm:$0xff]  }
  0x89   : > { %1596 = vmatprep.subr.bf16.mxu1 %v4714_v37  ;;  %v4773_v37 = vld [vmem:[%s6383_s3 + $0x204] ss:$8 sps:$4 sm:$0xff]  }
  0x8b   : > { %1112 = vmatmul.mubr.bf16.gmra.mrb[16].mxu1 %v5188_v33 }
  0x8c   : > { %1121 = vmatprep.mubr.bf16.mxu1 %v4829_v2 }
  0x8d   : > { %2401 = vmatmul.mubr.bf16.vlgmr.msra.gmra.mrb[0].mxu0 %v5105_v30 }
  0x8e   : > { %2639 = vmatpush1.bf16.msra.mxu0 %v4688_v56  ;;  %2410 = vmatprep.mubr.bf16.mxu0 %v4829_v2  ;;  %v4740_v56 = vld [vmem:[%s6383_s3 + $0x400] ss:$8 sps:$4 sm:$0xff]  }
  0x8f   : > { %2640 = vmatprep.subr.bf16.mxu0 %v4697_v45  ;;  %v4748_v45 = vld [vmem:[%s6383_s3 + $0x414] ss:$8 sps:$4 sm:$0xff]  }
  0x92   : > { %2641 = vmatpush1.bf16.msra.mxu0 %v4695_v17  ;;  %v4746_v17 = vld [vmem:[%s6383_s3 + $0x410] ss:$8 sps:$4 sm:$0xff]  }
  0x93   : > { %1122 = vmatmul.mubr.bf16.gmra.mrb[20].mxu1 %v5255_v25  ;;  %2642 = vmatprep.subr.bf16.mxu0 %v4704_v54  ;;  %v4754_v54 = vld [vmem:[%s6383_s3 + $0x424] ss:$8 sps:$4 sm:$0xff]  }
  0x94   : > { %1131 = vmatprep.mubr.bf16.mxu1 %v4829_v2 }
  0x95   : > { %2411 = vmatmul.mubr.bf16.gmra.mrb[4].mxu0 %v5145_v1 }
  0x96   : > { %2420 = vmatprep.mubr.bf16.mxu0 %v4829_v2  ;;  %2643 = vmatpush1.bf16.msra.mxu0 %v4702_v59  ;;  %v4760_v59 = vld [vmem:[%s6383_s3 + $0x434] ss:$8 sps:$4 sm:$0xff]  }
  0x97   : > { %2644 = vmatprep.subr.bf16.mxu0 %v4711_v3  ;;  %v4758_v3 = vld [vmem:[%s6383_s3 + $0x430] ss:$8 sps:$4 sm:$0xff]  }
  0x9a   : > { %2645 = vmatpush1.bf16.msra.mxu0 %v4709_v57  ;;  %v4763_v57 = vld [vmem:[%s6383_s3 + $0x444] ss:$8 sps:$4 sm:$0xff]  }
  0x9b   : > { %1132 = vmatmul.mubr.bf16.gmra.mrb[24].mxu1 %v5364_v19  ;;  %2646 = vmatprep.subr.bf16.mxu0 %v4717_v49  ;;  %v4766_v49 = vld [vmem:[%s6383_s3 + $0x454] ss:$8 sps:$4 sm:$0xff]  }
  0x9c   : > { %1141 = vmatprep.mubr.bf16.mxu1 %v4829_v2 }
  0x9d   : > { %2421 = vmatmul.mubr.bf16.gmra.mrb[8].mxu0 %v5188_v33 }
  0x9e   : > { %2430 = vmatprep.mubr.bf16.mxu0 %v4829_v2  ;;  %2647 = vmatpush1.bf16.msra.mxu0 %v4715_v5  ;;  %v4764_v5 = vld [vmem:[%s6383_s3 + $0x450] ss:$8 sps:$4 sm:$0xff]  }
  0x9f   : > { %2648 = vmatprep.subr.bf16.mxu0 %v4723_v8  ;;  %v4769_v8 = vld [vmem:[%s6383_s3 + $0x464] ss:$8 sps:$4 sm:$0xff]  }
  0xa2   : > { %2649 = vmatpush1.bf16.msra.mxu0 %v4721_v9  ;;  %v4772_v9 = vld [vmem:[%s6383_s3 + $0x474] ss:$8 sps:$4 sm:$0xff]  }
  0xa3   : > { %1142 = vmatmul.mubr.bf16.gmra.mrb[28].mxu1 %v5384_v50  ;;  %2650 = vmatprep.subr.bf16.mxu0 %v4730_v15  ;;  %v4770_v15 = vld [vmem:[%s6383_s3 + $0x470] ss:$8 sps:$4 sm:$0xff]  }
  0xa4   : > { %1380 = vmatprep.mubr.bf16.mxu1 %v4829_v2 }
  0xa5   : > { %2431 = vmatmul.mubr.bf16.gmra.mrb[12].mxu0 %v5255_v25 }
  0xa6   : > { %2440 = vmatprep.mubr.bf16.mxu0 %v4829_v2  ;;  %2651 = vmatpush1.bf16.msra.mxu0 %v4728_v18  ;;  %v4774_v18 = vld [vmem:[%s6383_s3 + $0x200] ss:$8 sps:$4 sm:$0xff]  }
  0xa7   : > { %2652 = vmatprep.subr.bf16.mxu0 %v4736_v62  ;;  %v4775_v62 = vld [vmem:[%s6383_s3 + $0x214] ss:$8 sps:$4 sm:$0xff]  }
  0xaa   : > { %2653 = vmatpush1.bf16.msra.mxu0 %v4734_v60  ;;  %v4776_v60 = vld [vmem:[%s6383_s3 + $0x210] ss:$8 sps:$4 sm:$0xff]  }
  0xab   : > { %1381 = vmatmul.mubr.bf16.vlgmr.msra.gmra.mrb[0].mxu1 %v3931_v0  ;;  %2892 = vmatprep.subr.bf16.mxu0 %v4742_v13  ;;  %v4731_v0 = vld [vmem:[%s6383_s3 + $0x1b0] ss:$8 sps:$4 sm:$0xff]   ;;  %v2523_v13 = vshll.u32 %v5720_v53, 16 }
  0xac   : > { %1597 = vmatpush1.bf16.msra.mxu1 %v4712_v26  ;;  %1390 = vmatprep.mubr.bf16.mxu1 %v4829_v2  ;;  %v2514_v26 = vshrl.u32 %v5716_v51, 16 }
  0xad   : > { %1598 = vmatprep.subr.bf16.mxu1 %v4720_v27  ;;  %2441 = vmatmul.mubr.bf16.gmra.mrb[16].mxu0 %v5364_v19  ;;  %v2527_v27 = vshrl.u32 %v5720_v53, 16 }
  0xae   : > { %2450 = vmatprep.mubr.bf16.mxu0 %v4829_v2 }
  0xb0   : > { %1599 = vmatpush1.bf16.msra.mxu1 %v4718_v47  ;;  %v4777_v47 = vld [vmem:[%s6383_s3 + $0x224] ss:$8 sps:$4 sm:$0xff]  }
  0xb1   : > { %1600 = vmatprep.subr.bf16.mxu1 %v4726_v29  ;;  %v427_v29 = vld [vmem:[%s5692_s13 + $0x8] sm:$0x1] }
  0xb3   : > { %1391 = vmatmul.mubr.bf16.gmra.mrb[4].mxu1 %v5317_v10  ;;  %v4737_v10 = vld [vmem:[%s6383_s3 + $0x1c0] ss:$8 sps:$4 sm:$0xff]  }
  0xb4   : > { %1400 = vmatprep.mubr.bf16.mxu1 %v4829_v2  ;;  %1601 = vmatpush1.bf16.msra.mxu1 %v4724_v21  ;;  %v4778_v21 = vld [vmem:[%s6383_s3 + $0x220] ss:$8 sps:$4 sm:$0xff]  }
  0xb5   : > { %1602 = vmatprep.subr.bf16.mxu1 %v4733_v16  ;;  %2451 = vmatmul.mubr.bf16.gmra.mrb[20].mxu0 %v5384_v50  ;;  %v2516_v16 = vrot.slane %v2514_v26, 4 }
  0xb6   : > { %2460 = vmatprep.mubr.bf16.mxu0 %v4829_v2 }
  0xb8   : > { %1603 = vmatpush1.bf16.msra.mxu1 %v4731_v0 }
  0xb9   : > { %1604 = vmatprep.subr.bf16.mxu1 %v4739_v31  ;;  %v2525_v31 = vrot.slane %v2523_v13, 5 }
  0xbb   : > { %1401 = vmatmul.mubr.bf16.gmra.mrb[8].mxu1 %v5360_v4 }
  0xbc   : > { %1410 = vmatprep.mubr.bf16.mxu1 %v4829_v2  ;;  %1605 = vmatpush1.bf16.msra.mxu1 %v4737_v10  ;;  %v2529_v10 = vrot.slane %v2527_v27, 4 }
  0xbd   : > { %1606 = vmatprep.subr.bf16.mxu1 %v4745_v24  ;;  %2461 = vmatmul.mubr.bf16.gmra.mrb[24].mxu0 %v5697_v38  ;;  %v5831_v24 = vsel %vm5700_vm7, %v427_v29, 0 }
  0xbe   : > { %2470 = vmatprep.mubr.bf16.mxu0 %v4829_v2  ;;  %v2533_v34 = vshll.u32 %v5831_v24, 16 }
  0xc0   : > { %1607 = vmatpush1.bf16.msra.mxu1 %v4743_v52  ;;  %v2530_v52 = vor.u32 %v2529_v10, %v2525_v31 }
  0xc1   : > { %1608 = vmatprep.subr.bf16.mxu1 %v4751_v46  ;;  %v4781_v46 = vld [vmem:[%s6383_s3 + $0x244] ss:$8 sps:$4 sm:$0xff]  }
  0xc3   : > { %1411 = vmatmul.mubr.bf16.gmra.mrb[12].mxu1 %v5405_v42 }
  0xc4   : > { %1420 = vmatprep.mubr.bf16.mxu1 %v4829_v2  ;;  %1609 = vmatpush1.bf16.msra.mxu1 %v4749_v23  ;;  %v2531_v23 = vrot.slane %v2530_v52, 4 }
  0xc5   : > { %1610 = vmatprep.subr.bf16.mxu1 %v4757_v63  ;;  %2471 = vmatmul.mubr.bf16.gmra.mrb[28].mxu0 %v4071_v40  ;;  %v2535_v63 = vrot.slane %v2533_v34, 5  ;;  %v4782_v40 = vld [vmem:[%s6383_s3 + $0x240] ss:$8 sps:$4 sm:$0xff]  }
  0xc6   : > { %2670 = vmatprep.mubr.bf16.mxu0 %v4829_v2 }
  0xc8   : > { %1611 = vmatpush1.bf16.msra.mxu1 %v4755_v6  ;;  %v4783_v6 = vld [vmem:[%s6383_s3 + $0x254] ss:$8 sps:$4 sm:$0xff]  }
  0xc9   : > { %4231 = vmatprep.subr.bf16.mxu1 %v4773_v37  ;;  %v2536_v37 = vsel %vm5057_vm3, %v2531_v23, %v2535_v63 }
  0xcb   : > { %1421 = vmatmul.mubr.bf16.gmra.mrb[16].mxu1 %v5446_v12 }
  0xcc   : > { %1430 = vmatprep.mubr.bf16.mxu1 %v4829_v2 }
  0xcd   : > { %2671 = vmatmul.mubr.bf16.vlgmr.msra.gmra.mrb[0].mxu0 %v5151_v7  ;;  %v4752_v7 = vld [vmem:[%s6383_s3 + $0x420] ss:$8 sps:$4 sm:$0xff]  }
  0xce   : > { %2893 = vmatpush1.bf16.msra.mxu0 %v4740_v56  ;;  %2680 = vmatprep.mubr.bf16.mxu0 %v4829_v2  ;;  %v4784_v56 = vld [vmem:[%s6383_s3 + $0x250] ss:$8 sps:$4 sm:$0xff]  }
  0xcf   : > { %2894 = vmatprep.subr.bf16.mxu0 %v4748_v45  ;;  %v4785_v45 = vld [vmem:[%s6383_s3 + $0x264] ss:$8 sps:$4 sm:$0xff]  }
  0xd2   : > { %2895 = vmatpush1.bf16.msra.mxu0 %v4746_v17 }
  0xd3   : > { %1431 = vmatmul.mubr.bf16.gmra.mrb[20].mxu1 %v5479_v36  ;;  %2896 = vmatprep.subr.bf16.mxu0 %v4754_v54  ;;  %v4787_v54 = vld [vmem:[%s6383_s3 + $0x274] ss:$8 sps:$4 sm:$0xff]  }
  0xd4   : > { %1440 = vmatprep.mubr.bf16.mxu1 %v4829_v2 }
  0xd5   : > { %2681 = vmatmul.mubr.bf16.gmra.mrb[4].mxu0 %v5203_v48  ;;  %v4761_v48 = vld [vmem:[%s6383_s3 + $0x440] ss:$8 sps:$4 sm:$0xff]  }
  0xd6   : > { %2690 = vmatprep.mubr.bf16.mxu0 %v4829_v2  ;;  %2897 = vmatpush1.bf16.msra.mxu0 %v4752_v7 }
  0xd7   : > { %2898 = vmatprep.subr.bf16.mxu0 %v4760_v59 }
  0xda   : > { %2899 = vmatpush1.bf16.msra.mxu0 %v4758_v3  ;;  %v3039_v3 = vlaneseq }
  0xdb   : > { %1441 = vmatmul.mubr.bf16.gmra.mrb[24].mxu1 %v5507_v41  ;;  %2900 = vmatprep.subr.bf16.mxu0 %v4763_v57 }
  0xdc   : > { %1450 = vmatprep.mubr.bf16.mxu1 %v4829_v2 }
  0xdd   : > { %2691 = vmatmul.mubr.bf16.gmra.mrb[8].mxu0 %v5262_v55  ;;  %v4767_v55 = vld [vmem:[%s6383_s3 + $0x460] ss:$8 sps:$4 sm:$0xff]  }
  0xde   : > { %2700 = vmatprep.mubr.bf16.mxu0 %v4829_v2  ;;  %2901 = vmatpush1.bf16.msra.mxu0 %v4761_v48 }
  0xdf   : > { %2902 = vmatprep.subr.bf16.mxu0 %v4766_v49 }
  0xe2   : > { %2903 = vmatpush1.bf16.msra.mxu0 %v4764_v5 }
  0xe3   : > { %1451 = vmatmul.mubr.bf16.gmra.mrb[28].mxu1 %v5541_v28  ;;  %2904 = vmatprep.subr.bf16.mxu0 %v4769_v8  ;;  %v3037_v8 = vld [vmem:[%s6384_s4] sm:$0x3] }
  0xe4   : > { %1628 = vmatprep.mubr.bf16.mxu1 %v4829_v2 }
  0xe5   : > { %2701 = vmatmul.mubr.bf16.gmra.mrb[12].mxu0 %v5350_v44 }
  0xe6   : > { %2710 = vmatprep.mubr.bf16.mxu0 %v4829_v2  ;;  %2905 = vmatpush1.bf16.msra.mxu0 %v4767_v55 }
  0xe7   : > { %2906 = vmatprep.subr.bf16.mxu0 %v4772_v9 }
  0xea   : > { %2907 = vmatpush1.bf16.msra.mxu0 %v4770_v15 }
  0xeb   : > { %1629 = vmatmul.mubr.bf16.vlgmr.msra.gmra.mrb[0].mxu1 %v5077_v11  ;;  %v2517_v11 = vshll.u32 %v5716_v51, 16 }
  0xec   : > { %4239 = vmatpush1.bf16.msra.mxu1 %v4774_v18  ;;  %1638 = vmatprep.mubr.bf16.mxu1 %v4829_v2 }
  0xed   : > { %4232 = vmatprep.subr.bf16.mxu1 %v4775_v62  ;;  %2711 = vmatmul.mubr.bf16.gmra.mrb[16].mxu0 %v5387_v61  ;;  %v2519_v0 = vrot.slane %v2517_v11, 5 }
  0xee   : > { %2720 = vmatprep.mubr.bf16.mxu0 %v4829_v2 }
  0xf0   : > { %4240 = vmatpush1.bf16.msra.mxu1 %v4776_v60 }
  0xf1   : > { %4233 = vmatprep.subr.bf16.mxu1 %v4777_v47 }
  0xf3   : > { %1639 = vmatmul.mubr.bf16.gmra.mrb[4].mxu1 %v5105_v30  ;;  %v2520_v30 = vor.u32 %v2519_v0, %v2516_v16 }
  0xf4   : > { %1648 = vmatprep.mubr.bf16.mxu1 %v4829_v2  ;;  %4241 = vmatpush1.bf16.msra.mxu1 %v4778_v21 }
  0xf5   : > { %4234 = vmatprep.subr.bf16.mxu1 %v4779_v20  ;;  %2721 = vmatmul.mubr.bf16.gmra.mrb[20].mxu0 %v5431_v22  ;;  %v2521_v14 = vrot.slane %v2520_v30, 4 }
  0xf6   : > { %2730 = vmatprep.mubr.bf16.mxu0 %v4829_v2 }
  0xf8   : > { %4242 = vmatpush1.bf16.msra.mxu1 %v4780_v35 }
  0xf9   : > { %4235 = vmatprep.subr.bf16.mxu1 %v4781_v46 }
  0xfb   : > { %1649 = vmatmul.mubr.bf16.gmra.mrb[8].mxu1 %v5145_v1  ;;  %v2526_v1 = vsel %vm5057_vm3, %v2521_v14, %v2525_v31 }
  0xfc   : > { %1658 = vmatprep.mubr.bf16.mxu1 %v4829_v2  ;;  %4243 = vmatpush1.bf16.msra.mxu1 %v4782_v40  ;;  %v4104_v17 = vcombine.low %v2526_v1, %v2536_v37 }
  0xfd   : > { %4236 = vmatprep.subr.bf16.mxu1 %v4783_v6  ;;  %2731 = vmatmul.mubr.bf16.gmra.mrb[24].mxu0 %v5563_v39 }
  0xfe   : > { %2740 = vmatprep.mubr.bf16.mxu0 %v4829_v2 }
 0x100   : > { %4244 = vmatpush1.bf16.msra.mxu1 %v4784_v56 }
 0x101   : > { %4237 = vmatprep.subr.bf16.mxu1 %v4785_v45 }
 0x103   : > { %1659 = vmatmul.mubr.bf16.gmra.mrb[12].mxu1 %v5188_v33  ;;  %v4788_v33 = vld [vmem:[%s6383_s3 + $0x270] ss:$8 sps:$4 sm:$0xff]  }
 0x104   : > { %1668 = vmatprep.mubr.bf16.mxu1 %v4829_v2  ;;  %4245 = vmatpush1.bf16.msra.mxu1 %v4786_v58 }
 0x105   : > { %4238 = vmatprep.subr.bf16.mxu1 %v4787_v54  ;;  %2741 = vmatmul.mubr.bf16.gmra.mrb[28].mxu0 %v4104_v17 }
 0x106   : > { %2924 = vmatprep.mubr.bf16.mxu0 %v4829_v2 }
 0x108   : > { %4246 = vmatpush1.bf16.msra.mxu1 %v4788_v33 }
 0x10b   : > { %1669 = vmatmul.mubr.bf16.gmra.mrb[16].mxu1 %v5255_v25  ;;  %v2786_v25 = vrot.slane %v5720_v53, 5 }
 0x10c   : > { %1678 = vmatprep.mubr.bf16.mxu1 %v4829_v2 }
 0x10d   : > { %2925 = vmatmul.mubr.bf16.vlgmr.msra.gmra.mrb[0].mxu0 %v5360_v4  ;;  %v2788_v4 = vrot.slane %v2786_v25, 4 }
 0x10e   : > { %2934 = vmatprep.mubr.bf16.mxu0 %v4829_v2 }
 0x113   : > { %1679 = vmatmul.mubr.bf16.gmra.mrb[20].mxu1 %v5364_v19  ;;  %v2789_v19 = vrot.slane %v5831_v24, 5 }
 0x114   : > { %1688 = vmatprep.mubr.bf16.mxu1 %v4829_v2 }
 0x115   : > { %2935 = vmatmul.mubr.bf16.gmra.mrb[4].mxu0 %v5405_v42 }
 0x116   : > { %2944 = vmatprep.mubr.bf16.mxu0 %v4829_v2 }
 0x11b   : > { %1689 = vmatmul.mubr.bf16.gmra.mrb[24].mxu1 %v5384_v50 }
 0x11c   : > { %1698 = vmatprep.mubr.bf16.mxu1 %v4829_v2 }
 0x11d   : > { %2945 = vmatmul.mubr.bf16.gmra.mrb[8].mxu0 %v5446_v12 }
 0x11e   : > { %2954 = vmatprep.mubr.bf16.mxu0 %v4829_v2 }
 0x123   : > { %1699 = vmatmul.mubr.bf16.gmra.mrb[28].mxu1 %v5697_v38 }
 0x124   : > { %1938 = vmatprep.mubr.bf16.mxu1 %v4829_v2 }
 0x125   : > { %2955 = vmatmul.mubr.bf16.gmra.mrb[12].mxu0 %v5479_v36 }
 0x126   : > { %2964 = vmatprep.mubr.bf16.mxu0 %v4829_v2 }
 0x12b   : > { %1939 = vmatmul.mubr.bf16.vlgmr.msra.gmra.mrb[16].mxu1 %v5350_v44  ;;  %v4121_v44 = vrot.slane %v5716_v51, 9 }
 0x12c   : > { %1948 = vmatprep.mubr.bf16.mxu1 %v4829_v2 }
 0x12d   : > { %2965 = vmatmul.mubr.bf16.gmra.mrb[16].mxu0 %v5507_v41  ;;  %v2787_v50 = vsel %vm5266_vm6, %v4121_v44, %v2786_v25 }
 0x12e   : > { %2974 = vmatprep.mubr.bf16.mxu0 %v4829_v2 }
 0x133   : > { %1949 = vmatmul.mubr.bf16.gmra.mrb[20].mxu1 %v5387_v61  ;;  %v2790_v61 = vsel %vm5266_vm6, %v2788_v4, %v2789_v19 }
 0x134   : > { %1958 = vmatprep.mubr.bf16.mxu1 %v4829_v2  ;;  %v4138_v42 = vcombine.low %v2787_v50, %v2790_v61 }
 0x135   : > { %2975 = vmatmul.mubr.bf16.gmra.mrb[20].mxu0 %v5541_v28 }
 0x136   : > { %2984 = vmatprep.mubr.bf16.mxu0 %v4829_v2 }
 0x13b   : > { %1959 = vmatmul.mubr.bf16.gmra.mrb[24].mxu1 %v5431_v22 }
 0x13c   : > { %1968 = vmatprep.mubr.bf16.mxu1 %v4829_v2 }
 0x13d   : > { %2985 = vmatmul.mubr.bf16.gmra.mrb[24].mxu0 %v5569_v43 }
 0x13e   : > { %2994 = vmatprep.mubr.bf16.mxu0 %v4829_v2 }
 0x143   : > { %1969 = vmatmul.mubr.bf16.gmra.mrb[28].mxu1 %v5563_v39  ;;  %v3040_v39 = vshrl.u32 %v3039_v3, 7 }
 0x145   : > { %2995 = vmatmul.mubr.bf16.gmra.mrb[28].mxu0 %v4138_v42  ;;  %v3041_v5 = vsub.s32 0, %v3040_v39  ;;  %v3045_v55 = vsub.s32 1, %v3040_v39 }
 0x147   : > { %v5915_v9 = vrot.slane %v3037_v8, %v3041_v5  ;;  %v5917_v18 = vrot.slane %v3037_v8, %v3045_v55 }
 0x1be   : > { %v1630_v22 = vpop.f32.mrb[0].mxu1 }
 0x1bf   : > { %v1632_v12 = vpop.f32.mrb[1].mxu1 }
 0x1c0   : > { %v1634_v36 = vpop.f32.mrb[2].mxu1 }
 0x1c1   : > { %v1636_v41 = vpop.f32.mrb[3].mxu1 }
 0x1c6   : > { %v1640_v28 = vpop.f32.mrb[4].mxu1 }
 0x1c7   : > { %v1642_v38 = vpop.f32.mrb[5].mxu1 }
 0x1c8   : > { %v1644_v51 = vpop.f32.mrb[6].mxu1 }
 0x1c9   : > { %v1646_v43 = vpop.f32.mrb[7].mxu1 }
 0x1ce   : > { %v1650_v53 = vpop.f32.mrb[8].mxu1 }
 0x1cf   : > { %v1652_v2 = vpop.f32.mrb[9].mxu1 }
 0x1d0   : > { %v1654_v7 = vpop.f32.mrb[10].mxu1 }
 0x1d1   : > { %v1656_v59 = vpop.f32.mrb[11].mxu1 }
 0x1d6   : > { %v1660_v57 = vpop.f32.mrb[12].mxu1 }
 0x1d7   : > { %v1662_v32 = vpop.f32.mrb[13].mxu1 }
 0x1d8   : > { %v1664_v48 = vpop.f32.mrb[14].mxu1 }
 0x1d9   : > { %v5910_v49 = vpop.f32.mrb[15].mxu1 }
 0x1e0   : > { %v2926_v15 = vpop.f32.mrb[0].mxu0 }
 0x1e1   : > { %v4247_v62 = vadd.f32 %v2926_v15, %v1630_v22  ;;  %v2928_v26 = vpop.f32.mrb[1].mxu0 }
 0x1e2   : > { %v4248_v11 = vadd.f32 %v2928_v26, %v1632_v12  ;;  %v2930_v27 = vpop.f32.mrb[2].mxu0 }
 0x1e3   : > { %v5920_v60 = vadd.f32 %v4247_v62, %v5915_v9  ;;  %v4249_v13 = vadd.f32 %v2930_v27, %v1634_v36  ;;  %v2932_v47 = vpop.f32.mrb[3].mxu0 }
 0x1e4   : > { %v5923_v29 = vadd.f32 %v4248_v11, %v5917_v18  ;;  %v4250_v21 = vadd.f32 %v2932_v47, %v1636_v41 }
 0x1e5   : > { %v3081_v16 = vmax.f32 %v5920_v60, 0.0  ;;  %v5927_v0 = vadd.f32 %v4249_v13, %v5915_v9 }
 0x1e6   : > { %v3082_v31 = vmax.f32 %v5923_v29, 0.0  ;;  %v5931_v10 = vadd.f32 %v4250_v21, %v5917_v18 }
 0x1e7   : > { %v3083_v20 = vmax.f32 %v5927_v0, 0.0 }
 0x1e8   : > { %v3084_v24 = vmax.f32 %v5931_v10, 0.0  ;;  %v2936_v30 = vpop.f32.mrb[4].mxu0 }
 0x1e9   : > { %v4251_v52 = vadd.f32 %v2936_v30, %v1640_v28  ;;  %v2938_v34 = vpop.f32.mrb[5].mxu0 }
 0x1ea   : > { %v4252_v35 = vadd.f32 %v2938_v34, %v1642_v38  ;;  %v2940_v46 = vpop.f32.mrb[6].mxu0 }
 0x1eb   : > { %v5936_v14 = vadd.f32 %v4251_v52, %v5915_v9  ;;  %v4253_v23 = vadd.f32 %v2940_v46, %v1644_v51  ;;  %v2942_v63 = vpop.f32.mrb[7].mxu0 }
 0x1ec   : > { %v5939_v40 = vadd.f32 %v4252_v35, %v5917_v18  ;;  %v4254_v6 = vadd.f32 %v2942_v63, %v1646_v43 }
 0x1ed   : > { %v3085_v1 = vmax.f32 %v5936_v14, 0.0  ;;  %v5943_v37 = vadd.f32 %v4253_v23, %v5915_v9 }
 0x1ee   : > { %v3086_v56 = vmax.f32 %v5939_v40, 0.0  ;;  %v5947_v45 = vadd.f32 %v4254_v6, %v5917_v18 }
 0x1ef   : > { %v3087_v17 = vmax.f32 %v5943_v37, 0.0 }
 0x1f0   : > { %v2946_v54 = vpop.f32.mrb[8].mxu0 }
 0x1f1   : > { %v4255_v33 = vadd.f32 %v2946_v54, %v1650_v53  ;;  %v2948_v25 = vpop.f32.mrb[9].mxu0 }
 0x1f2   : > { %v4256_v44 = vadd.f32 %v2948_v25, %v1652_v2  ;;  %v2950_v4 = vpop.f32.mrb[10].mxu0 }
 0x1f3   : > { %v5952_v19 = vadd.f32 %v4255_v33, %v5915_v9  ;;  %v4257_v50 = vadd.f32 %v2950_v4, %v1654_v7  ;;  %v2952_v61 = vpop.f32.mrb[11].mxu0 }
 0x1f4   : > { %v5955_v42 = vadd.f32 %v4256_v44, %v5917_v18  ;;  %v4258_v22 = vadd.f32 %v2952_v61, %v1656_v59 }
 0x1f5   : > { %v3089_v12 = vmax.f32 %v5952_v19, 0.0  ;;  %v5959_v36 = vadd.f32 %v4257_v50, %v5915_v9 }
 0x1f6   : > { %v5963_v28 = vadd.f32 %v4258_v22, %v5917_v18 }
 0x1f7   : > { %v3091_v38 = vmax.f32 %v5959_v36, 0.0 }
 0x1f8   : > { %v2956_v43 = vpop.f32.mrb[12].mxu0 }
 0x1f9   : > { %v4259_v53 = vadd.f32 %v2956_v43, %v1660_v57  ;;  %v2958_v2 = vpop.f32.mrb[13].mxu0 }
 0x1fa   : > { %v4260_v7 = vadd.f32 %v2958_v2, %v1662_v32  ;;  %v2960_v3 = vpop.f32.mrb[14].mxu0 }
 0x1fb   : > { %v5968_v59 = vadd.f32 %v4259_v53, %v5915_v9  ;;  %v4261_v39 = vadd.f32 %v2960_v3, %v1664_v48  ;;  %v2962_v5 = vpop.f32.mrb[15].mxu0 }
 0x1fc   : > { %v5971_v8 = vadd.f32 %v4260_v7, %v5917_v18  ;;  %v4262_v55 = vadd.f32 %v2962_v5, %v5910_v49 }
 0x1fd   : > { %v3093_v62 = vmax.f32 %v5968_v59, 0.0  ;;  %v5976_v26 = vadd.f32 %v4261_v39, %v5915_v9 }
 0x1fe   : > { %v1940_v15 = vpop.f32.mrb[16].mxu1  ;;  %v5980_v11 = vadd.f32 %v4262_v55, %v5917_v18 }
 0x1ff   : > { %v1942_v57 = vpop.f32.mrb[17].mxu1  ;;  %v3095_v48 = vmax.f32 %v5976_v26, 0.0 }
 0x200   : > { %v1944_v27 = vpop.f32.mrb[18].mxu1  ;;  %v2966_v21 = vpop.f32.mrb[16].mxu0 }
 0x201   : > { %v1946_v13 = vpop.f32.mrb[19].mxu1  ;;  %v4263_v49 = vadd.f32 %v2966_v21, %v1940_v15  ;;  %v2968_v30 = vpop.f32.mrb[17].mxu0 }
 0x202   : > { %v4264_v52 = vadd.f32 %v2968_v30, %v1942_v57  ;;  %v2970_v34 = vpop.f32.mrb[18].mxu0 }
 0x203   : > { %v5985_v35 = vadd.f32 %v4263_v49, %v5915_v9  ;;  %v4265_v46 = vadd.f32 %v2970_v34, %v1944_v27  ;;  %v2972_v23 = vpop.f32.mrb[19].mxu0 }
 0x204   : > { %v5988_v63 = vadd.f32 %v4264_v52, %v5917_v18  ;;  %v4266_v6 = vadd.f32 %v2972_v23, %v1946_v13 }
 0x205   : > { %v3097_v33 = vmax.f32 %v5985_v35, 0.0  ;;  %v5992_v25 = vadd.f32 %v4265_v46, %v5915_v9 }
 0x206   : > { %v1950_v54 = vpop.f32.mrb[20].mxu1  ;;  %v5996_v50 = vadd.f32 %v4266_v6, %v5917_v18 }
 0x207   : > { %v1952_v44 = vpop.f32.mrb[21].mxu1  ;;  %v3099_v22 = vmax.f32 %v5992_v25, 0.0 }
 0x208   : > { %v1954_v61 = vpop.f32.mrb[22].mxu1  ;;  %v2976_v2 = vpop.f32.mrb[20].mxu0 }
 0x209   : > { %v1956_v43 = vpop.f32.mrb[23].mxu1  ;;  %v4267_v7 = vadd.f32 %v2976_v2, %v1950_v54  ;;  %v2978_v3 = vpop.f32.mrb[21].mxu0 }
 0x20a   : > { %v4268_v39 = vadd.f32 %v2978_v3, %v1952_v44  ;;  %v2980_v5 = vpop.f32.mrb[22].mxu0 }
 0x20b   : > { %v6001_v55 = vadd.f32 %v4267_v7, %v5915_v9  ;;  %v4269_v15 = vadd.f32 %v2980_v5, %v1954_v61  ;;  %v2982_v57 = vpop.f32.mrb[23].mxu0 }
 0x20c   : > { %v6004_v27 = vadd.f32 %v4268_v39, %v5917_v18  ;;  %v4270_v13 = vadd.f32 %v2982_v57, %v1956_v43 }
 0x20d   : > { %v3101_v49 = vmax.f32 %v6001_v55, 0.0  ;;  %v6008_v30 = vadd.f32 %v4269_v15, %v5915_v9 }
 0x20e   : > { %v1960_v21 = vpop.f32.mrb[24].mxu1  ;;  %v6012_v46 = vadd.f32 %v4270_v13, %v5917_v18 }
 0x20f   : > { %v1962_v52 = vpop.f32.mrb[25].mxu1  ;;  %v3103_v6 = vmax.f32 %v6008_v30, 0.0 }
 0x210   : > { %v1964_v23 = vpop.f32.mrb[26].mxu1  ;;  %v2986_v61 = vpop.f32.mrb[24].mxu0 }
 0x211   : > { %v1966_v54 = vpop.f32.mrb[27].mxu1  ;;  %v4271_v43 = vadd.f32 %v2986_v61, %v1960_v21  ;;  %v2988_v2 = vpop.f32.mrb[25].mxu0 }
 0x212   : > { %v4272_v7 = vadd.f32 %v2988_v2, %v1962_v52  ;;  %v2990_v3 = vpop.f32.mrb[26].mxu0 }
 0x213   : > { %v6017_v39 = vadd.f32 %v4271_v43, %v5915_v9  ;;  %v4273_v5 = vadd.f32 %v2990_v3, %v1964_v23  ;;  %v2992_v15 = vpop.f32.mrb[27].mxu0 }
 0x214   : > { %v6020_v57 = vadd.f32 %v4272_v7, %v5917_v18  ;;  %v4274_v13 = vadd.f32 %v2992_v15, %v1966_v54 }
 0x215   : > { %v3105_v53 = vmax.f32 %v6017_v39, 0.0  ;;  %v6024_v4 = vadd.f32 %v4273_v5, %v5915_v9 }
 0x216   : > { %v1970_v34 = vpop.f32.mrb[28].mxu1  ;;  %v6028_v52 = vadd.f32 %v4274_v13, %v5917_v18 }
 0x217   : > { %v1972_v44 = vpop.f32.mrb[29].mxu1  ;;  %v3107_v23 = vmax.f32 %v6024_v4, 0.0 }
 0x218   : > { %v1974_v61 = vpop.f32.mrb[30].mxu1  ;;  %v2996_v7 = vpop.f32.mrb[28].mxu0 }
 0x219   : > { %v1976_v43 = vpop.f32.mrb[31].mxu1  ;;  %v4275_v54 = vadd.f32 %v2996_v7, %v1970_v34  ;;  %v2998_v3 = vpop.f32.mrb[29].mxu0  ;;  %3116 = sbr.rel (%p4155_p12) target bundleno = 544 (0x220), region = 44 }
 0x21a   : > { %v4276_v15 = vadd.f32 %v2998_v3, %v1972_v44  ;;  %v3000_v39 = vpop.f32.mrb[30].mxu0 }
 0x21b   : > { %v3077_v5 = vadd.f32 %v4275_v54, %v5915_v9  ;;  %v4277_v47 = vadd.f32 %v3000_v39, %v1974_v61  ;;  %v3002_v32 = vpop.f32.mrb[31].mxu0  ;;  %v4830_v61 = vmov (!%p4155_p12), 0.0  }
 0x21c   : > { %v6034_v21 = vadd.f32 %v4276_v15, %v5917_v18  ;;  %v4278_v13 = vadd.f32 %v3002_v32, %v1976_v43  ;;  %3117 = vst [vmem:[#allocation2] sm:$0xff] (!%p4155_p12), %v4830_v61  ;;  %3118 = vst [vmem:[#allocation2 + $0x8] sm:$0xff] (!%p4155_p12), %v4830_v61 }
 0x21d   : > { %v3109_v51 = vmax.f32 %v3077_v5, 0.0  ;;  %v3079_v41 = vadd.f32 %v4277_v47, %v5915_v9 }
 0x21e   : > { %v6039_v2 = vadd.f32 %v4278_v13, %v5917_v18 }
 0x21f   : > { %v3111_v34 = vmax.f32 %v3079_v41, 0.0 }
 0x220 PF: > { %v3119_v9 = vmax.f32 %v3081_v16, %v3085_v1  ;;  %v6051_v18 = vmax.f32 %v3089_v12, %v3093_v62  ;;  %v6057_v41 = vmax.f32 %v3097_v33, %v3101_v49  ;;  %v6059_v32 = vmax.f32 %v3105_v53, %v3109_v51 }
 0x221   : > { %v3120_v60 = vmax.f32 %v3083_v20, %v3087_v17  ;;  %v6069_v16 = vmax.f32 %v3091_v38, %v3095_v48  ;;  %v6075_v47 = vmax.f32 %v3099_v22, %v3103_v6  ;;  %v6079_v43 = vmax.f32 %v3107_v23, %v3111_v34 }
 0x222   : > { %v3135_v7 = vmax.f32 %v3119_v9, %v6051_v18  ;;  %v6084_v0 = vmax.f32 %v6057_v41, %v6059_v32  ;;  %vm3203_vm8 = vcmask 1046528   ;;  %v3205_v20 = vrot.slane %v3084_v24, 1 }
 0x223   : > { %v6088_v54 = vld [vmem:[#allocation2] sm:$0xff]  ;;  %v3136_v3 = vmax.f32 %v3120_v60, %v6069_v16  ;;  %v6093_v15 = vmax.f32 %v6075_v47, %v6079_v43  ;;  %v6096_v5 = vld [vmem:[#allocation2 + $0x8] sm:$0xff]  ;;  %v3140_v61 = vmax.f32 %v6069_v16, %v6075_v47  ;;  %v3204_v60 = vrot.slane %v3082_v31, 1 }
 0x224   : > { %v3151_v39 = vmax.f32 %v3135_v7, %v6084_v0  ;;  %v3244_v13 = vsel %vm3203_vm8, %v3205_v20, 0.0  ;;  %vm3284_vm9 = vcmask 1045504   ;;  %v3121_v7 = vmax.f32 %v3085_v1, %v3089_v12 }
 0x225   : > { %v3152_v9 = vmax.f32 %v3136_v3, %v6093_v15  ;;  %v3253_v44 = vmax.f32 %v3084_v24, %v3244_v13  ;;  %v6117_v3 = vmax.f32 %v3093_v62, %v3097_v33  ;;  %v3206_v13 = vsel %vm3203_vm8, %v3204_v60, %v3205_v20 }
 0x226   : > { %v6107_v58 = vmax.f32 %v3151_v39, %v6088_v54  ;;  %v6123_v39 = vmax.f32 %v3101_v49, %v3105_v53  ;;  %v3252_v14 = vmax.f32 %v3082_v31, %v3206_v13  ;;  %v6128_v1 = vmax.f32 %v3109_v51, 0.0 }
 0x227   : > { %v3170_v10 = vmax.f32 %v3152_v9, %v6096_v5  ;;  %v3286_v24 = vrot.slane %v3253_v44, 2  ;;  %v3137_v19 = vmax.f32 %v3121_v7, %v6117_v3  ;;  %v3207_v12 = vrot.slane %v3086_v56, 1 }
 0x228   : > { %3185 = vst [vmem:[#allocation2] sm:$0xff] %v6107_v58  ;;  %v6394_v62 = vmax.f32 %v5947_v45, 0.0  ;;  %v3122_v33 = vmax.f32 %v3087_v17, %v3091_v38  ;;  %v6144_v29 = vmax.f32 %v3095_v48, %v3099_v22  ;;  %v3285_v51 = vrot.slane %v3252_v14, 2 }
 0x229   : > { %3186 = vst [vmem:[#allocation2 + $0x8] sm:$0xff] %v3170_v10  ;;  %v3325_v59 = vsel %vm3284_vm9, %v3286_v24, 0.0  ;;  %v6148_v53 = vmax.f32 %v6123_v39, %v6128_v1  ;;  %v6154_v36 = vmax.f32 %v3103_v6, %v3107_v23  ;;  %vm3365_vm10 = vcmask 1043456  }
 0x22a   : > { %v3208_v35 = vrot.slane %v6394_v62, 1  ;;  %v3334_v31 = vmax.f32 %v3253_v44, %v3325_v59  ;;  %v6158_v38 = vmax.f32 %v3111_v34, 0.0  ;;  %v3148_v26 = vmax.f32 %v6079_v43, 0.0 }
 0x22b   : > { %v3287_v25 = vsel %vm3284_vm9, %v3285_v51, %v3286_v24  ;;  %v3153_v55 = vmax.f32 %v3137_v19, %v6148_v53  ;;  %v6395_v49 = vmov %v6394_v62  ;;  %v3138_v6 = vmax.f32 %v3122_v33, %v6144_v29 }
 0x22c   : > { %v3209_v37 = vsel %vm3203_vm8, %v3207_v12, %v3208_v35  ;;  %v3245_v17 = vsel %vm3203_vm8, %v3208_v35, 0.0  ;;  %v3367_v48 = vrot.slane %v3334_v31, 4  ;;  %v3333_v4 = vmax.f32 %v3252_v14, %v3287_v25 }
 0x22d   : > { %v3254_v22 = vmax.f32 %v3086_v56, %v3209_v37  ;;  %v3255_v30 = vmax.f32 %v6395_v49, %v3245_v17  ;;  %v6171_v44 = vmax.f32 %v6154_v36, %v6158_v38  ;;  %v3139_v20 = vmax.f32 %v6051_v18, %v6057_v41 }
 0x22e   : > { %v3406_v23 = vsel %vm3365_vm10, %v3367_v48, 0.0  ;;  %v3366_v56 = vrot.slane %v3333_v4, 4  ;;  %v3147_v60 = vmax.f32 %v6059_v32, 0.0  ;;  %v3160_v45 = vmax.f32 %v6093_v15, 0.0 }
 0x22f   : > { %v3288_v34 = vrot.slane %v3254_v22, 2  ;;  %v3415_v40 = vmax.f32 %v3334_v31, %v3406_v23  ;;  %v3289_v9 = vrot.slane %v3255_v30, 2  ;;  %vm3478_vm11 = vcmask 1040384  }
 0x230   : > { %v6396_v7 = vmax.f32 %v5955_v42, 0.0  ;;  %v6397_v13 = vmax.f32 %v5963_v28, 0.0  ;;  %v3368_v12 = vsel %vm3365_vm10, %v3366_v56, %v3367_v48  ;;  %v3154_v33 = vmax.f32 %v3138_v6, %v6171_v44 }
 0x231   : > { %v3431_v19 = vmax.f32 %v3415_v40, 0.0  ;;  %v3290_v59 = vsel %vm3284_vm9, %v3288_v34, %v3289_v9  ;;  %v3326_v18 = vsel %vm3284_vm9, %v3289_v9, 0.0  ;;  %v3414_v41 = vmax.f32 %v3333_v4, %v3368_v12 }
 0x232   : > { %v3210_v24 = vrot.slane %v6396_v7, 1  ;;  %v3211_v14 = vrot.slane %v6397_v13, 1  ;;  %v3335_v62 = vmax.f32 %v3254_v22, %v3290_v59  ;;  %v3336_v35 = vmax.f32 %v3255_v30, %v3326_v18 }
 0x233   : > { %v3447_v31 = vadd.f32 %v3431_v19, %v3170_v10  ;;  %v3171_v51 = vmax.f32 %v3153_v55, %v6088_v54  ;;  %v6188_v37 = vmax.f32 %v3139_v20, %v3147_v60  ;;  %v3430_v25 = vmax.f32 %v3414_v41, %v3415_v40 }
 0x234   : > { %v3212_v17 = vsel %vm3203_vm8, %v3210_v24, %v3211_v14  ;;  %v3369_v48 = vrot.slane %v3335_v62, 4  ;;  %v3370_v49 = vrot.slane %v3336_v35, 4  ;;  %v3246_v23 = vsel %vm3203_vm8, %v3211_v14, 0.0 }
 0x235   : > { %v3480_v34 = vrot.slane %v3447_v31, 7  ;;  %v6197_v10 = vmax.f32 %v3140_v61, %v3148_v26  ;;  %v6398_v22 = vmov %v6396_v7  ;;  %v6399_v55 = vmov %v6397_v13 }
 0x236   : > { %v3256_v4 = vmax.f32 %v6398_v22, %v3212_v17  ;;  %v3257_v30 = vmax.f32 %v6399_v55, %v3246_v23  ;;  %v3446_v6 = vadd.f32 %v3430_v25, %v6107_v58  ;;  %v3371_v20 = vsel %vm3365_vm10, %v3369_v48, %v3370_v49 }
 0x237   : > { %v3407_v40 = vsel %vm3365_vm10, %v3370_v49, 0.0  ;;  %v3172_v56 = vmax.f32 %v3154_v33, %v6096_v5  ;;  %v3535_v9 = vsel %vm3478_vm11, %v3480_v34, 0.0  ;;  %v3416_v16 = vmax.f32 %v3335_v62, %v3371_v20 }
 0x238   : > { %v3417_v47 = vmax.f32 %v3336_v35, %v3407_v40  ;;  %v3291_v61 = vrot.slane %v3256_v4, 2  ;;  %v3479_v7 = vrot.slane %v3446_v6, 7  ;;  %v4186_v42 = vpack.c.bf16 %v3535_v9, %v3535_v9 }
 0x239   : > { %v3292_v24 = vrot.slane %v3257_v30, 2  ;;  %v3141_v28 = vmax.f32 %v6117_v3, %v6123_v39  ;;  %v6400_v14 = vmax.f32 %v5971_v8, 0.0  ;;  %v6401_v12 = vmax.f32 %v5980_v11, 0.0 }
 0x23a   : > { %v3432_v13 = vmax.f32 %v3416_v16, %v3417_v47  ;;  %v3433_v58 = vmax.f32 %v3417_v47, 0.0  ;;  %v3481_v18 = vsel %vm3478_vm11, %v3479_v7, %v3480_v34  ;;  %v3527_v41 = vsel %vm3478_vm11, 0.0, %v3479_v7  ;;  %3649 = vst [vmem:[%s4952_s6 + $0x8] sm:$0x1] %v4186_v42 }
 0x23b   : > { %v3213_v19 = vrot.slane %v6400_v14, 1  ;;  %v3214_v59 = vrot.slane %v6401_v12, 1  ;;  %v3293_v62 = vsel %vm3284_vm9, %v3291_v61, %v3292_v24  ;;  %v3327_v35 = vsel %vm3284_vm9, %v3292_v24, 0.0 }
 0x23c   : > { %v4211_v33 = vpack.c.bf16 %v3481_v18, %v3527_v41  ;;  %v3448_v3 = vadd.f32 %v3432_v13, %v3171_v51  ;;  %v3449_v39 = vadd.f32 %v3433_v58, %v3172_v56  ;;  %v3337_v31 = vmax.f32 %v3256_v4, %v3293_v62 }
 0x23d   : > { %v3338_v17 = vmax.f32 %v3257_v30, %v3327_v35  ;;  %v3149_v25 = vmax.f32 %v6128_v1, 0.0  ;;  %v3215_v48 = vsel %vm3203_vm8, %v3213_v19, %v3214_v59  ;;  %v3247_v49 = vsel %vm3203_vm8, %v3214_v59, 0.0 }
 0x23e   : > { %4212 = vst [vmem:[%s4952_s6] sm:$0xff] %v4211_v33   ;;  %v3482_v23 = vrot.slane %v3448_v3, 7  ;;  %v3483_v34 = vrot.slane %v3449_v39, 7  ;;  %v3372_v22 = vrot.slane %v3337_v31, 4  ;;  %v6402_v55 = vmov %v6400_v14 }
 0x23f   : > { %v3258_v6 = vmax.f32 %v6402_v55, %v3215_v48  ;;  %v3373_v20 = vrot.slane %v3338_v17, 4  ;;  %v6403_v40 = vmov %v6401_v12  ;;  %v3142_v4 = vmax.f32 %v6144_v29, %v6154_v36 }
 0x240   : > { %v3259_v51 = vmax.f32 %v6403_v40, %v3247_v49  ;;  %v3150_v30 = vmax.f32 %v6158_v38, 0.0  ;;  %v3528_v56 = vsel %vm3478_vm11, 0.0, %v3482_v23  ;;  %v3484_v9 = vsel %vm3478_vm11, %v3482_v23, %v3483_v34 }
 0x241   : > { %v3536_v16 = vsel %vm3478_vm11, %v3483_v34, 0.0  ;;  %v3294_v8 = vrot.slane %v3258_v6, 2  ;;  %v4187_v47 = vpack.c.bf16 %v3528_v56, %v3528_v56  ;;  %v4188_v61 = vpack.c.bf16 %v3484_v9, %v3484_v9 }
 0x242   : > { %v4189_v7 = vpack.c.bf16 %v3536_v16, %v3536_v16  ;;  %v3374_v11 = vsel %vm3365_vm10, %v3372_v22, %v3373_v20  ;;  %v3408_v42 = vsel %vm3365_vm10, %v3373_v20, 0.0  ;;  %v3157_v29 = vmax.f32 %v3141_v28, %v3149_v25 }
 0x243   : > { %v3418_v24 = vmax.f32 %v3337_v31, %v3374_v11  ;;  %v3295_v36 = vrot.slane %v3259_v51, 2  ;;  %3650 = vst [vmem:[%s4952_s6 + $0xc] sm:$0xf] %v4187_v47  ;;  %3651 = vst [vmem:[%s4952_s6 + $0x10] sm:$0xf] %v4188_v61  ;;  %v3173_v13 = vmax.f32 %v6188_v37, %v6088_v54  ;;  %v3174_v58 = vmax.f32 %v6197_v10, %v6096_v5 }
 0x244   : > { %3652 = vst [vmem:[%s4952_s6 + $0x14] sm:$0x1] %v4189_v7  ;;  %v3419_v14 = vmax.f32 %v3338_v17, %v3408_v42  ;;  %v6404_v19 = vmax.f32 %v5988_v63, 0.0  ;;  %v3158_v28 = vmax.f32 %v3142_v4, %v3150_v30  ;;  %v6405_v41 = vmax.f32 %v5996_v50, 0.0 }
 0x245   : > { %v3296_v59 = vsel %vm3284_vm9, %v3294_v8, %v3295_v36  ;;  %v3328_v18 = vsel %vm3284_vm9, %v3295_v36, 0.0  ;;  %v3175_v10 = vmax.f32 %v3157_v29, %v6088_v54  ;;  %v3159_v39 = vmax.f32 %v6084_v0, 0.0 }
 0x246   : > { %v3216_v12 = vrot.slane %v6404_v19, 1  ;;  %v3217_v62 = vrot.slane %v6405_v41, 1  ;;  %v3434_v35 = vmax.f32 %v3418_v24, %v3419_v14  ;;  %v3435_v33 = vmax.f32 %v3419_v14, 0.0 }
 0x247   : > { %v3339_v37 = vmax.f32 %v3258_v6, %v3296_v59  ;;  %v3340_v3 = vmax.f32 %v3259_v51, %v3328_v18  ;;  %v3176_v22 = vmax.f32 %v3158_v28, %v6096_v5  ;;  %v6406_v55 = vmov %v6404_v19 }
 0x248   : > { %v3218_v31 = vsel %vm3203_vm8, %v3216_v12, %v3217_v62  ;;  %v3248_v17 = vsel %vm3203_vm8, %v3217_v62, 0.0  ;;  %v3450_v48 = vadd.f32 %v3434_v35, %v3173_v13  ;;  %v3451_v49 = vadd.f32 %v3435_v33, %v3174_v58 }
 0x249   : > { %v3375_v23 = vrot.slane %v3339_v37, 4  ;;  %v3376_v34 = vrot.slane %v3340_v3, 4  ;;  %v3260_v20 = vmax.f32 %v6406_v55, %v3218_v31  ;;  %v6407_v6 = vmov %v6405_v41 }
 0x24a   : > { %v3261_v40 = vmax.f32 %v6407_v6, %v3248_v17  ;;  %v6408_v51 = vmax.f32 %v6004_v27, 0.0  ;;  %v3485_v0 = vrot.slane %v3450_v48, 7  ;;  %v3486_v56 = vrot.slane %v3451_v49, 7 }
 0x24b   : > { %v3377_v9 = vsel %vm3365_vm10, %v3375_v23, %v3376_v34  ;;  %v3409_v16 = vsel %vm3365_vm10, %v3376_v34, 0.0  ;;  %v3297_v61 = vrot.slane %v3260_v20, 2  ;;  %v6409_v42 = vmax.f32 %v6012_v46, 0.0 }
 0x24c   : > { %v3219_v4 = vrot.slane %v6408_v51, 1  ;;  %v3420_v8 = vmax.f32 %v3339_v37, %v3377_v9  ;;  %v3421_v47 = vmax.f32 %v3340_v3, %v3409_v16  ;;  %v3298_v7 = vrot.slane %v3261_v40, 2 }
 0x24d   : > { %v3487_v63 = vsel %vm3478_vm11, %v3485_v0, %v3486_v56  ;;  %v3529_v50 = vsel %vm3478_vm11, 0.0, %v3485_v0  ;;  %v3537_v11 = vsel %vm3478_vm11, %v3486_v56, 0.0  ;;  %v3220_v24 = vrot.slane %v6409_v42, 1 }
 0x24e   : > { %v4216_v29 = vpack.c.bf16 %v3487_v63, %v3529_v50  ;;  %v4192_v36 = vpack.c.bf16 %v3537_v11, %v3537_v11  ;;  %v3436_v13 = vmax.f32 %v3420_v8, %v3421_v47  ;;  %v3437_v58 = vmax.f32 %v3421_v47, 0.0 }
 0x24f   : > { %v3299_v14 = vsel %vm3284_vm9, %v3297_v61, %v3298_v7  ;;  %v3329_v19 = vsel %vm3284_vm9, %v3298_v7, 0.0  ;;  %v3221_v12 = vsel %vm3203_vm8, %v3219_v4, %v3220_v24  ;;  %v3249_v59 = vsel %vm3203_vm8, %v3220_v24, 0.0 }
 0x250   : > { %4228 = vst [vmem:[%s4952_s6 + $0x18] sm:$0xff] %v4216_v29   ;;  %3655 = vst [vmem:[%s4952_s6 + $0x20] sm:$0x1] %v4192_v36  ;;  %v3452_v18 = vadd.f32 %v3436_v13, %v3175_v10  ;;  %v3453_v28 = vadd.f32 %v3437_v58, %v3176_v22  ;;  %v3341_v41 = vmax.f32 %v3260_v20, %v3299_v14  ;;  %v6410_v33 = vmov %v6408_v51 }
 0x251   : > { %v3342_v62 = vmax.f32 %v3261_v40, %v3329_v19  ;;  %v3178_v35 = vmax.f32 %v3160_v45, %v6096_v5  ;;  %v3262_v37 = vmax.f32 %v6410_v33, %v3221_v12  ;;  %v6411_v3 = vmov %v6409_v42 }
 0x252   : > { %v3263_v31 = vmax.f32 %v6411_v3, %v3249_v59  ;;  %v3488_v17 = vrot.slane %v3452_v18, 7  ;;  %v3489_v48 = vrot.slane %v3453_v28, 7  ;;  %v3378_v49 = vrot.slane %v3341_v41, 4 }
 0x253   : > { %v3379_v23 = vrot.slane %v3342_v62, 4  ;;  %v3177_v34 = vmax.f32 %v3159_v39, %v6088_v54  ;;  %v3161_v10 = vmax.f32 %v6148_v53, 0.0  ;;  %v3300_v22 = vrot.slane %v3262_v37, 2 }
 0x254   : > { %v3301_v15 = vrot.slane %v3263_v31, 2  ;;  %v3530_v45 = vsel %vm3478_vm11, 0.0, %v3488_v17  ;;  %v3490_v27 = vsel %vm3478_vm11, %v3488_v17, %v3489_v48  ;;  %v3538_v46 = vsel %vm3478_vm11, %v3489_v48, 0.0 }
 0x255   : > { %v3380_v55 = vsel %vm3365_vm10, %v3378_v49, %v3379_v23  ;;  %v4193_v20 = vpack.c.bf16 %v3530_v45, %v3530_v45  ;;  %v4194_v6 = vpack.c.bf16 %v3490_v27, %v3490_v27  ;;  %v4195_v40 = vpack.c.bf16 %v3538_v46, %v3538_v46 }
 0x256   : > { %v3410_v39 = vsel %vm3365_vm10, %v3379_v23, 0.0  ;;  %v3422_v51 = vmax.f32 %v3341_v41, %v3380_v55  ;;  %v3302_v53 = vsel %vm3284_vm9, %v3300_v22, %v3301_v15  ;;  %v3330_v0 = vsel %vm3284_vm9, %v3301_v15, 0.0 }
 0x257   : > { %v3423_v4 = vmax.f32 %v3342_v62, %v3410_v39  ;;  %3656 = vst [vmem:[%s4952_s6 + $0x24] sm:$0xf] %v4193_v20  ;;  %3657 = vst [vmem:[%s4952_s6 + $0x28] sm:$0xf] %v4194_v6  ;;  %v3179_v56 = vmax.f32 %v3161_v10, %v6088_v54  ;;  %v3343_v9 = vmax.f32 %v3262_v37, %v3302_v53  ;;  %v3162_v8 = vmax.f32 %v6171_v44, 0.0 }
 0x258   : > { %3658 = vst [vmem:[%s4952_s6 + $0x2c] sm:$0x1] %v4195_v40  ;;  %v3344_v16 = vmax.f32 %v3263_v31, %v3330_v0  ;;  %v6412_v7 = vmax.f32 %v6020_v57, 0.0  ;;  %v6413_v50 = vmax.f32 %v6028_v52, 0.0  ;;  %v6303_v29 = vmax.f32 %v3147_v60, 0.0 }
 0x259   : > { %v3438_v47 = vmax.f32 %v3422_v51, %v3423_v4  ;;  %v3439_v61 = vmax.f32 %v3423_v4, 0.0  ;;  %v3381_v42 = vrot.slane %v3343_v9, 4  ;;  %v6414_v36 = vmax.f32 %v6034_v21, 0.0 }
 0x25a   : > { %v3222_v63 = vrot.slane %v6412_v7, 1  ;;  %v3223_v11 = vrot.slane %v6413_v50, 1  ;;  %v3382_v24 = vrot.slane %v3344_v16, 4  ;;  %v6415_v18 = vmov %v6412_v7 }
 0x25b   : > { %v3225_v13 = vrot.slane %v6414_v36, 1  ;;  %v3454_v58 = vadd.f32 %v3438_v47, %v3177_v34  ;;  %v3455_v14 = vadd.f32 %v3439_v61, %v3178_v35  ;;  %v6416_v32 = vmov %v6413_v50 }
 0x25c   : > { %v3224_v44 = vsel %vm3203_vm8, %v3222_v63, %v3223_v11  ;;  %v3250_v19 = vsel %vm3203_vm8, %v3223_v11, 0.0  ;;  %v3383_v12 = vsel %vm3365_vm10, %v3381_v42, %v3382_v24  ;;  %v3411_v59 = vsel %vm3365_vm10, %v3382_v24, 0.0 }
 0x25d   : > { %v3264_v28 = vmax.f32 %v6415_v18, %v3224_v44  ;;  %v3265_v60 = vmax.f32 %v6416_v32, %v3250_v19  ;;  %v3491_v41 = vrot.slane %v3454_v58, 7  ;;  %v3492_v62 = vrot.slane %v3455_v14, 7 }
 0x25e   : > { %v3424_v33 = vmax.f32 %v3343_v9, %v3383_v12  ;;  %v3425_v37 = vmax.f32 %v3344_v16, %v3411_v59  ;;  %v3180_v35 = vmax.f32 %v3162_v8, %v6096_v5  ;;  %v6417_v17 = vmax.f32 %v6039_v2, 0.0 }
 0x25f   : > { %v3303_v3 = vrot.slane %v3264_v28, 2  ;;  %v3304_v31 = vrot.slane %v3265_v60, 2  ;;  %v3493_v49 = vsel %vm3478_vm11, %v3491_v41, %v3492_v62  ;;  %v3531_v57 = vsel %vm3478_vm11, 0.0, %v3491_v41 }
 0x260   : > { %v3226_v48 = vrot.slane %v6417_v17, 1  ;;  %v3539_v52 = vsel %vm3478_vm11, %v3492_v62, 0.0  ;;  %v3440_v23 = vmax.f32 %v3424_v33, %v3425_v37  ;;  %v4221_v34 = vpack.c.bf16 %v3493_v49, %v3531_v57 }
 0x261   : > { %v4198_v10 = vpack.c.bf16 %v3539_v52, %v3539_v52  ;;  %v3441_v22 = vmax.f32 %v3425_v37, 0.0  ;;  %v3305_v15 = vsel %vm3284_vm9, %v3303_v3, %v3304_v31  ;;  %v3331_v27 = vsel %vm3284_vm9, %v3304_v31, 0.0 }
 0x262   : > { %v3456_v45 = vadd.f32 %v3440_v23, %v3179_v56  ;;  %v3345_v46 = vmax.f32 %v3264_v28, %v3305_v15  ;;  %v3227_v55 = vsel %vm3203_vm8, %v3225_v13, %v3226_v48  ;;  %4229 = vst [vmem:[%s4952_s6 + $0x30] sm:$0xff] %v4221_v34   ;;  %v3346_v6 = vmax.f32 %v3265_v60, %v3331_v27 }
 0x263   : > { %3661 = vst [vmem:[%s4952_s6 + $0x38] sm:$0x1] %v4198_v10  ;;  %v3457_v20 = vadd.f32 %v3441_v22, %v3180_v35  ;;  %v3251_v40 = vsel %vm3203_vm8, %v3226_v48, 0.0  ;;  %v6418_v39 = vmov %v6414_v36  ;;  %v6419_v0 = vmov %v6417_v17 }
 0x264   : > { %v3266_v51 = vmax.f32 %v6418_v39, %v3227_v55  ;;  %v3494_v4 = vrot.slane %v3456_v45, 7  ;;  %v3384_v53 = vrot.slane %v3345_v46, 4  ;;  %v3267_v9 = vmax.f32 %v6419_v0, %v3251_v40 }
 0x265   : > { %v3495_v56 = vrot.slane %v3457_v20, 7  ;;  %v3164_v16 = vmax.f32 %v3148_v26, 0.0  ;;  %v3385_v8 = vrot.slane %v3346_v6, 4  ;;  %v3181_v7 = vmax.f32 %v6303_v29, %v6088_v54 }
 0x266   : > { %v3306_v47 = vrot.slane %v3266_v51, 2  ;;  %v3532_v61 = vsel %vm3478_vm11, 0.0, %v3494_v4  ;;  %v3307_v21 = vrot.slane %v3267_v9, 2  ;;  %v3165_v14 = vmax.f32 %v3149_v25, 0.0 }
 0x267   : > { %v4199_v63 = vpack.c.bf16 %v3532_v61, %v3532_v61  ;;  %v3496_v50 = vsel %vm3478_vm11, %v3494_v4, %v3495_v56  ;;  %v3540_v2 = vsel %vm3478_vm11, %v3495_v56, 0.0  ;;  %v3386_v11 = vsel %vm3365_vm10, %v3384_v53, %v3385_v8 }
 0x268   : > { %v4200_v42 = vpack.c.bf16 %v3496_v50, %v3496_v50  ;;  %v4201_v43 = vpack.c.bf16 %v3540_v2, %v3540_v2  ;;  %v3412_v26 = vsel %vm3365_vm10, %v3385_v8, 0.0  ;;  %v3426_v24 = vmax.f32 %v3345_v46, %v3386_v11 }
 0x269   : > { %3662 = vst [vmem:[%s4952_s6 + $0x3c] sm:$0xf] %v4199_v63  ;;  %v3182_v36 = vmax.f32 %v3164_v16, %v6096_v5  ;;  %v3427_v13 = vmax.f32 %v3346_v6, %v3412_v26  ;;  %v3308_v29 = vsel %vm3284_vm9, %v3306_v47, %v3307_v21  ;;  %v3332_v58 = vsel %vm3284_vm9, %v3307_v21, 0.0 }
 0x26a   : > { %3663 = vst [vmem:[%s4952_s6 + $0x40] sm:$0xf] %v4200_v42  ;;  %3664 = vst [vmem:[%s4952_s6 + $0x44] sm:$0x1] %v4201_v43  ;;  %v3347_v44 = vmax.f32 %v3266_v51, %v3308_v29  ;;  %v3348_v19 = vmax.f32 %v3267_v9, %v3332_v58  ;;  %v3166_v32 = vmax.f32 %v3150_v30, 0.0  ;;  %v3183_v62 = vmax.f32 %v3165_v14, %v6088_v54 }
 0x26b   : > { %v3442_v12 = vmax.f32 %v3426_v24, %v3427_v13  ;;  %v3443_v59 = vmax.f32 %v3427_v13, 0.0 }
 0x26c   : > { %v3387_v18 = vrot.slane %v3347_v44, 4  ;;  %v3388_v28 = vrot.slane %v3348_v19, 4  ;;  %v3184_v31 = vmax.f32 %v3166_v32, %v6096_v5 }
 0x26d   : > { %v3458_v60 = vadd.f32 %v3442_v12, %v3181_v7  ;;  %v3459_v41 = vadd.f32 %v3443_v59, %v3182_v36 }
 0x26e   : > { %v3389_v33 = vsel %vm3365_vm10, %v3387_v18, %v3388_v28  ;;  %v3413_v1 = vsel %vm3365_vm10, %v3388_v28, 0.0 }
 0x26f   : > { %v3497_v25 = vrot.slane %v3458_v60, 7  ;;  %v3498_v37 = vrot.slane %v3459_v41, 7  ;;  %v3428_v35 = vmax.f32 %v3347_v44, %v3389_v33  ;;  %v3429_v3 = vmax.f32 %v3348_v19, %v3413_v1 }
 0x271   : > { %v3499_v17 = vsel %vm3478_vm11, %v3497_v25, %v3498_v37  ;;  %v3533_v38 = vsel %vm3478_vm11, 0.0, %v3497_v25  ;;  %v3541_v30 = vsel %vm3478_vm11, %v3498_v37, 0.0  ;;  %v3444_v48 = vmax.f32 %v3428_v35, %v3429_v3 }
 0x272   : > { %v4226_v54 = vpack.c.bf16 %v3499_v17, %v3533_v38  ;;  %v4204_v49 = vpack.c.bf16 %v3541_v30, %v3541_v30  ;;  %v3445_v57 = vmax.f32 %v3429_v3, 0.0 }
 0x273   : > { %v3460_v52 = vadd.f32 %v3444_v48, %v3183_v62 }
 0x274   : > { %4230 = vst [vmem:[%s4952_s6 + $0x48] sm:$0xff] %v4226_v54   ;;  %3667 = vst [vmem:[%s4952_s6 + $0x50] sm:$0x1] %v4204_v49  ;;  %v3461_v23 = vadd.f32 %v3445_v57, %v3184_v31 }
 0x275   : > { %v3500_v34 = vrot.slane %v3460_v52, 7 }
 0x276   : > { %v3501_v10 = vrot.slane %v3461_v23, 7 }
 0x277   : > { %v3534_v5 = vsel %vm3478_vm11, 0.0, %v3500_v34 }
 0x278   : > { %v4205_v22 = vpack.c.bf16 %v3534_v5, %v3534_v5  ;;  %v3502_v15 = vsel %vm3478_vm11, %v3500_v34, %v3501_v10  ;;  %v3542_v45 = vsel %vm3478_vm11, %v3501_v10, 0.0 }
 0x279   : > { %v4206_v27 = vpack.c.bf16 %v3502_v15, %v3502_v15  ;;  %v4207_v46 = vpack.c.bf16 %v3542_v45, %v3542_v45 }
 0x27a   : > { %3668 = vst [vmem:[%s4952_s6 + $0x54] sm:$0xf] %v4205_v22 }
 0x27b   : > { %3669 = vst [vmem:[%s4952_s6 + $0x58] sm:$0xf] %v4206_v27  ;;  %3670 = vst [vmem:[%s4952_s6 + $0x5c] sm:$0x1] %v4207_v46 }
 0x27c PF: > { %s15_s22 = sadd.s32 1, %s4827_s22   ;;  %s6420_s18 = smov %s4819_s20 }
 0x27d   : > { %p12_p13 = scmp.ge.s32.totalorder %s15_s22, 6   ;;  %s6421_s19 = smov %s4823_s21 }
 0x27e   : > { %s6422_s20 = smov %s6425_s23  ;;  %s6423_s21 = smov %s6429_s24 }
 0x27f   :  { %14 = sbr.rel (!%p12_p13) target bundleno = 3 (0x3), region = 88 }

</bundles_post_ra>
